<compile_context>
chip_gen: v7x
topology: tpu7x:2x2x1
jax: 0.10.0
libtpu: 0.0.40
codegen_flags: <defaults>
</compile_context>

<pallas_src>
import jax
import jax.numpy as jnp
from jax.experimental import pallas as pl
from jax.experimental.pallas import tpu as pltpu

HIDDEN = 512      # conv1_da output channels (fixed by the module)
_VPU_MAX_C = 64   # below this, layer 1 runs as VPU FMAs instead of an MXU dot


def _round_up(v, m):
    return ((v + m - 1) // m) * m


def _da_head_kernel(x_ref, w1_ref, b1_ref, w2_ref, b2_ref, o_ref):
    # x_ref:  (1, C, ts)   NCHW tile: channels on sublanes, pixels on lanes
    # w1_ref: (512, C)     conv1_da weight (out, in) -- used directly
    # b1_ref: (512, 1)     conv1_da bias
    # w2_ref: (1, 512)     conv2_da weight (out, in)
    # b2_ref: (1, 1)       conv2_da bias
    # o_ref:  (1, 1, ts)   lane-dense output tile
    x = x_ref[0]                 # (C, ts)
    w1 = w1_ref[...]             # (512, C)
    C, ts = x.shape

    if C < _VPU_MAX_C:
        # Tiny contraction: C broadcast FMAs on the VPU avoid paying a full
        # 128/256-wide MXU contraction (and its padding) for a C-wide sum.
        acc = jnp.zeros((HIDDEN, ts), jnp.float32)
        for c in range(C):       # static, small, fully unrolled
            acc = acc + (w1[:, c:c + 1].astype(jnp.float32)
                         * x[c:c + 1, :].astype(jnp.float32))
        t = acc + b1_ref[...]
    else:
        t = jnp.dot(w1, x, preferred_element_type=jnp.float32) + b1_ref[...]

    t = jnp.maximum(t, 0.0)      # ReLU in f32
    o = jnp.dot(w2_ref[...], t, preferred_element_type=jnp.float32)  # (1, ts)
    o_ref[0] = o + b2_ref[...]


def da_feature_head(feature, w1, b1, w2, b2, *, block_pixels=512, use_bf16=False):
    """feature: (B, C, H, W) float32 -> (B, 1, H, W) float32.

    w1: (512, C), b1: (512,), w2: (1, 512), b2: (1,)  (PyTorch conv shapes,
    kernel_size=1 squeezed).
    """
    B, C, H, W = feature.shape
    P = H * W
    x = feature.reshape(B, C, P)                 # free reshape, stays NCHW

    # Lane-dense pixel tile: multiple of 128, no larger than the padded P.
    ts = max(128, (min(block_pixels, _round_up(P, 128)) // 128) * 128)
    p_pad = pl.cdiv(P, ts) * ts
    if p_pad != P:
        x = jnp.pad(x, ((0, 0), (0, 0), (0, p_pad - P)))
    nt = p_pad // ts

    in_dtype = jnp.bfloat16 if use_bf16 else x.dtype
    x = x.astype(in_dtype)
    w1k = w1.astype(in_dtype)
    b1k = b1.reshape(HIDDEN, 1).astype(jnp.float32)
    w2k = w2.reshape(1, HIDDEN).astype(jnp.float32)
    b2k = b2.reshape(1, 1).astype(jnp.float32)

    # VMEM budget: double-buffered x/out tiles + resident weights + (512, ts)
    # f32 intermediate.  Only raise the scoped limit when actually needed,
    # capped well under v7x's 64 MiB per-TC VMEM.
    itemsize = jnp.dtype(in_dtype).itemsize
    est = ((2 * C * ts + HIDDEN * C) * itemsize
           + (2 * ts + HIDDEN * ts + 2 * HIDDEN + 1) * 4)
    cp_kwargs = {"dimension_semantics": ("parallel", "parallel")}
    if est > 8 * 1024 * 1024:
        cp_kwargs["vmem_limit_bytes"] = int(
            min(max(2 * est, 32 * 1024 * 1024), 48 * 1024 * 1024))

    out = pl.pallas_call(
        _da_head_kernel,
        out_shape=jax.ShapeDtypeStruct((B, 1, p_pad), jnp.float32),
        grid_spec=pltpu.PrefetchScalarGridSpec(
            num_scalar_prefetch=0,
            grid=(nt, B),                                   # pixel tiles leading
            in_specs=[
                pl.BlockSpec((1, C, ts), lambda i, b: (b, 0, i)),     # x tile
                pl.BlockSpec((HIDDEN, C), lambda i, b: (0, 0)),       # w1 (full)
                pl.BlockSpec((HIDDEN, 1), lambda i, b: (0, 0)),       # b1
                pl.BlockSpec((1, HIDDEN), lambda i, b: (0, 0)),       # w2 (full)
                pl.BlockSpec((1, 1), lambda i, b: (0, 0)),            # b2
            ],
            out_specs=pl.BlockSpec((1, 1, ts), lambda i, b: (b, 0, i)),
        ),
        compiler_params=pltpu.CompilerParams(**cp_kwargs),
    )(x, w1k, b1k, w2k, b2k)

    out = out[:, :, :P]                          # drop pixel padding
    return out.reshape(B, 1, H, W)               # free reshape back to NCHW


def init_params(key, in_channels):
    """Match the PyTorch init: normal(std=0.001) weights, zero bias."""
    k1, k2 = jax.random.split(key)
    w1 = 0.001 * jax.random.normal(k1, (HIDDEN, in_channels), jnp.float32)
    b1 = jnp.zeros((HIDDEN,), jnp.float32)
    w2 = 0.001 * jax.random.normal(k2, (1, HIDDEN), jnp.float32)
    b2 = jnp.zeros((1,), jnp.float32)
    return w1, b1, w2, b2


def _reference(feature, w1, b1, w2, b2):
    """Pure-JAX reference of the same math (1x1 convs as channel matmuls)."""
    B, C, H, W = feature.shape
    x = feature.reshape(B, C, H * W)
    t = jnp.maximum(jnp.einsum("oc,bcp->bop", w1, x) + b1[None, :, None], 0.0)
    o = jnp.einsum("oh,bhp->bop", w2, t) + b2[None, :, None]
    return o.reshape(B, 1, H, W)


if __name__ == "__main__":
    key = jax.random.PRNGKey(0)
    k_feat, k_params, k_feat2, k_params2 = jax.random.split(key, 4)

    # Primary small test (small-C VPU path): B=2, C=4, H=W=16.
    B, C, H, W = 2, 4, 16, 16
    feature = jax.random.normal(k_feat, (B, C, H, W), jnp.float32)
    w1, b1, w2, b2 = init_params(k_params, C)
    out = jax.block_until_ready(da_feature_head(feature, w1, b1, w2, b2))
    ref = _reference(feature, w1, b1, w2, b2)
    assert out.shape == (B, 1, H, W)
    assert jnp.allclose(out, ref, atol=1e-5, rtol=1e-4)

    # Second test: larger C exercises the MXU path and tail-pixel padding
    # (H*W = 144 is not a multiple of 128).
    B2, C2, H2, W2 = 1, 128, 12, 12
    feature2 = jax.random.normal(k_feat2, (B2, C2, H2, W2), jnp.float32)
    params2 = init_params(k_params2, C2)
    out2 = jax.block_until_ready(da_feature_head(feature2, *params2))
    ref2 = _reference(feature2, *params2)
    assert out2.shape == (B2, 1, H2, W2)
    assert jnp.allclose(out2, ref2, atol=1e-5, rtol=1e-4)

    print("KERNEL_OK")
</pallas_src>

<mosaic_0001>
module attributes {stable_mosaic.version = 11 : i64} {
  func.func @_da_head_kernel(%arg0: i32, %arg1: i32, %arg2: memref<1x4x256xf32, #tpu.memory_space<vmem>>, %arg3: memref<512x4xf32, #tpu.memory_space<vmem>>, %arg4: memref<512x1xf32, #tpu.memory_space<vmem>>, %arg5: memref<1x512xf32, #tpu.memory_space<vmem>>, %arg6: memref<1x1xf32, #tpu.memory_space<vmem>>, %arg7: memref<1x1x256xf32, #tpu.memory_space<vmem>>) attributes {dimension_semantics = [#tpu.dimension_semantics<parallel>, #tpu.dimension_semantics<parallel>], iteration_bounds = array<i64: 1, 2>, scalar_prefetch = 0 : i64, scratch_operands = 0 : i64, tpu.core_type = #tpu.core_type<tc>, window_params = [{transform_indices = @transform_0, window_bounds = array<i64: 1, 4, 256>}, {pipeline_mode = #tpu.pipeline_mode<synchronous>, transform_indices = @transform_1, window_bounds = array<i64: 512, 4>}, {pipeline_mode = #tpu.pipeline_mode<synchronous>, transform_indices = @transform_2, window_bounds = array<i64: 512, 1>}, {pipeline_mode = #tpu.pipeline_mode<synchronous>, transform_indices = @transform_3, window_bounds = array<i64: 1, 512>}, {pipeline_mode = #tpu.pipeline_mode<synchronous>, transform_indices = @transform_4, window_bounds = array<i64: 1, 1>}, {transform_indices = @transform_5, window_bounds = array<i64: 1, 1, 256>}]} {
    %c0 = arith.constant 0 : index
    %c0_0 = arith.constant 0 : index
    %c0_1 = arith.constant 0 : index
    %0 = vector.load %arg2[%c0, %c0_0, %c0_1] : memref<1x4x256xf32, #tpu.memory_space<vmem>>, vector<1x4x256xf32>
    %1 = vector.shape_cast %0 : vector<1x4x256xf32> to vector<4x256xf32>
    %c0_2 = arith.constant 0 : index
    %c0_3 = arith.constant 0 : index
    %2 = vector.load %arg3[%c0_2, %c0_3] : memref<512x4xf32, #tpu.memory_space<vmem>>, vector<512x4xf32>
    %cst = arith.constant 0.000000e+00 : f32
    %3 = vector.broadcast %cst : f32 to vector<512x256xf32>
    %4 = vector.extract_strided_slice %2 {offsets = [0, 0], sizes = [512, 1], strides = [1, 1]} : vector<512x4xf32> to vector<512x1xf32>
    %5 = vector.extract_strided_slice %1 {offsets = [0, 0], sizes = [1, 256], strides = [1, 1]} : vector<4x256xf32> to vector<1x256xf32>
    %6 = vector.broadcast %4 : vector<512x1xf32> to vector<512x256xf32>
    %7 = vector.broadcast %5 : vector<1x256xf32> to vector<512x256xf32>
    %8 = arith.mulf %6, %7 : vector<512x256xf32>
    %9 = arith.addf %3, %8 : vector<512x256xf32>
    %10 = vector.extract_strided_slice %2 {offsets = [0, 1], sizes = [512, 1], strides = [1, 1]} : vector<512x4xf32> to vector<512x1xf32>
    %11 = vector.extract_strided_slice %1 {offsets = [1, 0], sizes = [1, 256], strides = [1, 1]} : vector<4x256xf32> to vector<1x256xf32>
    %12 = vector.broadcast %10 : vector<512x1xf32> to vector<512x256xf32>
    %13 = vector.broadcast %11 : vector<1x256xf32> to vector<512x256xf32>
    %14 = arith.mulf %12, %13 : vector<512x256xf32>
    %15 = arith.addf %9, %14 : vector<512x256xf32>
    %16 = vector.extract_strided_slice %2 {offsets = [0, 2], sizes = [512, 1], strides = [1, 1]} : vector<512x4xf32> to vector<512x1xf32>
    %17 = vector.extract_strided_slice %1 {offsets = [2, 0], sizes = [1, 256], strides = [1, 1]} : vector<4x256xf32> to vector<1x256xf32>
    %18 = vector.broadcast %16 : vector<512x1xf32> to vector<512x256xf32>
    %19 = vector.broadcast %17 : vector<1x256xf32> to vector<512x256xf32>
    %20 = arith.mulf %18, %19 : vector<512x256xf32>
    %21 = arith.addf %15, %20 : vector<512x256xf32>
    %22 = vector.extract_strided_slice %2 {offsets = [0, 3], sizes = [512, 1], strides = [1, 1]} : vector<512x4xf32> to vector<512x1xf32>
    %23 = vector.extract_strided_slice %1 {offsets = [3, 0], sizes = [1, 256], strides = [1, 1]} : vector<4x256xf32> to vector<1x256xf32>
    %24 = vector.broadcast %22 : vector<512x1xf32> to vector<512x256xf32>
    %25 = vector.broadcast %23 : vector<1x256xf32> to vector<512x256xf32>
    %26 = arith.mulf %24, %25 : vector<512x256xf32>
    %27 = arith.addf %21, %26 : vector<512x256xf32>
    %c0_4 = arith.constant 0 : index
    %c0_5 = arith.constant 0 : index
    %28 = vector.load %arg4[%c0_4, %c0_5] : memref<512x1xf32, #tpu.memory_space<vmem>>, vector<512x1xf32>
    %29 = vector.broadcast %28 : vector<512x1xf32> to vector<512x256xf32>
    %30 = arith.addf %27, %29 : vector<512x256xf32>
    %cst_6 = arith.constant 0.000000e+00 : f32
    %31 = vector.broadcast %cst_6 : f32 to vector<512x256xf32>
    %32 = arith.maximumf %30, %31 : vector<512x256xf32>
    %c0_7 = arith.constant 0 : index
    %c0_8 = arith.constant 0 : index
    %33 = vector.load %arg5[%c0_7, %c0_8] : memref<1x512xf32, #tpu.memory_space<vmem>>, vector<1x512xf32>
    %cst_9 = arith.constant dense<0.000000e+00> : vector<1x256xf32>
    %34 = tpu.matmul %33, %32, %cst_9 {dimension_numbers = #tpu.dot_dimension_numbers<[1], [0], [0], [1], [0, 0, 1, 1], [], []>} : vector<1x512xf32>, vector<512x256xf32>, vector<1x256xf32> -> vector<1x256xf32>
    %c0_10 = arith.constant 0 : index
    %c0_11 = arith.constant 0 : index
    %35 = vector.load %arg6[%c0_10, %c0_11] : memref<1x1xf32, #tpu.memory_space<vmem>>, vector<1x1xf32>
    %36 = vector.broadcast %35 : vector<1x1xf32> to vector<1x256xf32>
    %37 = arith.addf %34, %36 : vector<1x256xf32>
    %c0_12 = arith.constant 0 : index
    %c0_13 = arith.constant 0 : index
    %c0_14 = arith.constant 0 : index
    %38 = vector.load %arg7[%c0_12, %c0_13, %c0_14] : memref<1x1x256xf32, #tpu.memory_space<vmem>>, vector<1x1x256xf32>
    %39 = vector.shape_cast %38 : vector<1x1x256xf32> to vector<1x256xf32>
    %40 = vector.shape_cast %37 : vector<1x256xf32> to vector<1x1x256xf32>
    tpu.vector_store %arg7[%c0_12, %c0_13, %c0_14], %40 {strides = array<i32>} : memref<1x1x256xf32, #tpu.memory_space<vmem>>, vector<1x1x256xf32>,
    return
  }
  func.func @transform_0(%arg0: i32, %arg1: i32) -> (i32, i32, i32) {
    %c0_i32 = arith.constant 0 : i32
    %c0_i32_0 = arith.constant 0 : i32
    return %arg1, %c0_i32, %arg0 : i32, i32, i32
  }
  func.func @transform_1(%arg0: i32, %arg1: i32) -> (i32, i32) {
    %c0_i32 = arith.constant 0 : i32
    %c0_i32_0 = arith.constant 0 : i32
    %c0_i32_1 = arith.constant 0 : i32
    return %c0_i32, %c0_i32_0 : i32, i32
  }
  func.func @transform_2(%arg0: i32, %arg1: i32) -> (i32, i32) {
    %c0_i32 = arith.constant 0 : i32
    %c0_i32_0 = arith.constant 0 : i32
    %c0_i32_1 = arith.constant 0 : i32
    return %c0_i32, %c0_i32_0 : i32, i32
  }
  func.func @transform_3(%arg0: i32, %arg1: i32) -> (i32, i32) {
    %c0_i32 = arith.constant 0 : i32
    %c0_i32_0 = arith.constant 0 : i32
    %c0_i32_1 = arith.constant 0 : i32
    return %c0_i32, %c0_i32_0 : i32, i32
  }
  func.func @transform_4(%arg0: i32, %arg1: i32) -> (i32, i32) {
    %c0_i32 = arith.constant 0 : i32
    %c0_i32_0 = arith.constant 0 : i32
    %c0_i32_1 = arith.constant 0 : i32
    return %c0_i32, %c0_i32_0 : i32, i32
  }
  func.func @transform_5(%arg0: i32, %arg1: i32) -> (i32, i32, i32) {
    %c0_i32 = arith.constant 0 : i32
    %c0_i32_0 = arith.constant 0 : i32
    return %arg1, %c0_i32, %arg0 : i32, i32, i32
  }
}

</mosaic_0001>

<bundles_post_ra>
// kernel: tpu_custom_call.1
= control target key start
LH: loop header
LB: loop body
LE: loop exit
PB: predicated region body
PF: predicated region fallthrough
CT: control target
= control target key end

     0   :  { %s6914_s0 = inlined_call_operand.vmem [shape: f32[2,4,256], index: 0, kind: input, shape index: {}]   ;;  %s6915_s1 = inlined_call_operand.vmem [shape: f32[512,4], index: 1, kind: input, shape index: {}]   ;;  %s6916_s2 = inlined_call_operand.vmem [shape: f32[512,1], index: 2, kind: input, shape index: {}]   ;;  %s6917_s3 = inlined_call_operand.vmem [shape: f32[1,512], index: 3, kind: input, shape index: {}]   ;;  %s6918_s4 = inlined_call_operand.<no memory space> [shape: f32[1,1], index: 4, kind: input, shape index: {}]   ;;  %s6919_s5 = inlined_call_operand.hbm [shape: f32[2,1,256], index: 5, kind: output, shape index: {}]  }
   0x1   :  { %v10_v0 = vstv %s6918_s4 }
   0x2   :  { %11 = vst [vmem:[#allocation2] sm:$0x1] %v10_v0 }
   0x3   :  { %12 = vsyncpa [#allocation4], 0 }
   0x4   :  { %14 = vsyncpa [#allocation4 + $0x1], 0  ;;  %s3806_s20 = smov 0   ;;  %s3808_s21 = smov 0  }
   0x5   :  { %s3810_s22 = smov 0   ;;  %s3812_s23 = smov 0  }
   0x6   :  { %s3814_s24 = smov 0   ;;  %s3816_s25 = smov 0  }
   0x7 LB: > { %s3436_s4 = sadd.s32 4294967295, %s3765_s25   ;;  %s3437_s26 = sadd.s32 4294967294, %s3765_s25   ;;  %s3765_s25 = sphi %s3816_s25, %s20_s25   ;;  %s3761_s24 = sphi %s3814_s24, %s7888_s24   ;;  %s3757_s23 = sphi %s3812_s23, %s7887_s23   ;;  %s3753_s22 = sphi %s3810_s22, %s7886_s22   ;;  %s3749_s21 = sphi %s3808_s21, %s7885_s21   ;;  %s3745_s20 = sphi %s3806_s20, %s7884_s20  }
   0x8   : > { %s29_s27 = sadd.s32 1, %s3761_s24  ;;  %s153_s28 = sadd.s32 1, %s3753_s22 }
   0x9   : > { %p30_p0 = scmp.ge.s32.totalorder %s29_s27, 2  ;;  %p163_p1 = scmp.ne.s32.totalorder %s3753_s22, %s3749_s21 }
   0xa   : > { %p164_p2 = scmp.eq.s32.totalorder %s3436_s4, 1  ;;  %p169_p3 = scmp.ne.s32.totalorder %s3749_s21, %s3745_s20 }
   0xb   : > { %s7890_s27 = smov (%p30_p0, %s29_s27), 0  ;;  %p170_p5 = scmp.eq.s32.totalorder %s3437_s26, 1 }
   0xc   : > { %p3846_p4 = por %p164_p2, %p163_p1  ;;  %s148_s30 = ssub.s32 %s3761_s24, %s7890_s27 }
   0xd   : > { %p3440_p6 = scmp.ge.s32.totalorder %s3765_s25, 1  ;;  %p151_p7 = scmp.eq.s32.totalorder %s148_s30, 0 }
   0xe   : > { %p3853_p8 = por %p170_p5, %p169_p3  ;;  %p213_p9 = scmp.lt.s32.totalorder %s3765_s25, 3 }
   0xf   : > { %s3859_s7 = scalar_select %p151_p7, %s3753_s22, %s153_s28  }
  0x10   : > { %p214_p10 = pnand %p3440_p6, %p213_p9 }
  0x12   : > { %217 = sbr.rel (%p214_p10) target bundleno = 1133 (0x46d), region = 40 }
  0x19   : > { %v3864_v1 = vld [vmem:[%s6915_s1 + $0x10] sm:$0xff]  ;;  %v3869_v2 = vld [vmem:[%s6915_s1] sm:$0xff]  ;;  %v3767_v3 = vmov 1   ;;  %v6920_v4 = vmov 0   ;;  %v3878_v5 = vld [vmem:[%s6915_s1 + $0x18] sm:$0xff]  ;;  %v6922_v39 = vmov 2  }
  0x1a   : > { %3644 = vset.pattern.permute.xlu0 %v3767_v3  ;;  %3643 = vset.pattern.permute.xlu1 %v6920_v4  ;;  %v3885_v6 = vld [vmem:[%s6915_s1 + $0x28] sm:$0xff]  ;;  %v3892_v7 = vld [vmem:[%s6915_s1 + $0x38] sm:$0xff]  ;;  %v4112_v42 = vld [vmem:[%s6915_s1 + $0x20] sm:$0xff]  ;;  %p246_p11 = scmp.lt.s32.totalorder %s3757_s23, 1  ;;  %s242_s26 = sand.u32 1, %s3749_s21  }
  0x1b   : > { %333 = vperm.xlu1 %3643, %v3864_v1   ;;  %917 = vperm.xlu0 %3644, %v3869_v2   ;;  %v3899_v8 = vld [vmem:[%s6915_s1 + $0x48] sm:$0xff]  ;;  %v3906_v9 = vld [vmem:[%s6915_s1 + $0x58] sm:$0xff]  ;;  %v4123_v45 = vld [vmem:[%s6915_s1 + $0x30] sm:$0xff]  ;;  %s3441_s28 = sshll.u32 %s242_s26, 1  ;;  %s3344_s13 = scalar_lea.sflag [#allocation4], %s242_s26 }
  0x1c   : > { %v3913_v10 = vld [vmem:[%s6915_s1 + $0x68] sm:$0xff]  ;;  %v3920_v11 = vld [vmem:[%s6915_s1 + $0x78] sm:$0xff]  ;;  %v4134_v48 = vld [vmem:[%s6915_s1 + $0x40] sm:$0xff]  ;;  %s247_s4 = scalar_select %p246_p11, %s3757_s23, 1 }
  0x1d   : > { %v3927_v12 = vld [vmem:[%s6915_s1 + $0x88] sm:$0xff]  ;;  %v3934_v13 = vld [vmem:[%s6915_s1 + $0x98] sm:$0xff]  ;;  %v4145_v51 = vld [vmem:[%s6915_s1 + $0x50] sm:$0xff]  ;;  %s244_s8 = scalar_lea.vmem [#allocation3], %s3441_s28 }
  0x1e   : > { %v3941_v14 = vld [vmem:[%s6915_s1 + $0xa8] sm:$0xff]  ;;  %v3948_v15 = vld [vmem:[%s6915_s1 + $0xb8] sm:$0xff]  ;;  %v4156_v54 = vld [vmem:[%s6915_s1 + $0x60] sm:$0xff]  ;;  %s3449_s30 = sshll.u32 %s247_s4, 3  ;;  %s3360_s9 = sshll.u32 %s244_s8, 4  ;;  %s6869_s9 = int_to_ptr.vmem [resolvable:$true] %s3360_s9 }
  0x1f   : > { %338 = vperm.xlu1 %3643, %v3878_v5   ;;  %929 = vperm.xlu0 %3644, %v3878_v5   ;;  %v3955_v16 = vld [vmem:[%s6915_s1 + $0xc8] sm:$0xff]  ;;  %v3962_v17 = vld [vmem:[%s6915_s1 + $0xd8] sm:$0xff]  ;;  %v4167_v57 = vld [vmem:[%s6915_s1 + $0x70] sm:$0xff]  ;;  %s253_s14 = scalar_lea.vmem %s6914_s0, %s3449_s30  ;;  %s3450_s30 = sshll.u32 %s3757_s23, 5 }
  0x20   : > { %v3969_v18 = vld [vmem:[%s6915_s1 + $0xe8] sm:$0xff]  ;;  %v3976_v19 = vld [vmem:[%s6915_s1 + $0xf8] sm:$0xff]  ;;  %v4178_v60 = vld [vmem:[%s6915_s1 + $0x80] sm:$0xff]  ;;  %s6867_s12 = scalar_lea.hbm %s6919_s5, %s3450_s30  ;;  %s3772_s23 = smov [#allocation3]  }
  0x21   : > { %v3983_v20 = vld [vmem:[%s6915_s1 + $0x108] sm:$0xff]  ;;  %v3990_v21 = vld [vmem:[%s6915_s1 + $0x118] sm:$0xff]  ;;  %v4189_v63 = vld [vmem:[%s6915_s1 + $0x90] sm:$0xff]  ;;  %s3691_s15 = sshll.u32 %s3772_s23, 4  ;;  %s3692_s15 = int_to_ptr.vmem [resolvable:$false] %s3691_s15 }
  0x22   : > { %v3997_v22 = vld [vmem:[%s6915_s1 + $0x128] sm:$0xff]  ;;  %v4004_v23 = vld [vmem:[%s6915_s1 + $0x138] sm:$0xff]  ;;  %v4200_v4 = vld [vmem:[%s6915_s1 + $0xa0] sm:$0xff]  ;;  %s3693_s16 = scalar_lea.vmem %s3692_s15, 64  ;;  %p3694_p1 = scmp.lt.s32.totalorder %s6869_s9, %s3692_s15 }
  0x23   : > { %348 = vperm.xlu1 %3643, %v3885_v6   ;;  %937 = vperm.xlu0 %3644, %v3885_v6   ;;  %v4011_v24 = vld [vmem:[%s6915_s1 + $0x148] sm:$0xff]  ;;  %v4018_v25 = vld [vmem:[%s6915_s1 + $0x158] sm:$0xff] }
  0x24   : > { %v4025_v26 = vld [vmem:[%s6915_s1 + $0x168] sm:$0xff]  ;;  %v4032_v27 = vld [vmem:[%s6915_s1 + $0x178] sm:$0xff] }
  0x25   : > { %v4039_v28 = vld [vmem:[%s6915_s1 + $0x188] sm:$0xff]  ;;  %v4046_v29 = vld [vmem:[%s6915_s1 + $0x198] sm:$0xff] }
  0x26   : > { %v4053_v30 = vld [vmem:[%s6915_s1 + $0x1a8] sm:$0xff]  ;;  %v4060_v31 = vld [vmem:[%s6915_s1 + $0x1b8] sm:$0xff] }
  0x27   : > { %358 = vperm.xlu1 %3643, %v3892_v7   ;;  %945 = vperm.xlu0 %3644, %v3892_v7   ;;  %v4067_v32 = vld [vmem:[%s6915_s1 + $0x1c8] sm:$0xff]  ;;  %v4074_v33 = vld [vmem:[%s6915_s1 + $0x1d8] sm:$0xff] }
  0x28   : > { %v4081_v34 = vld [vmem:[%s6915_s1 + $0x1e8] sm:$0xff]  ;;  %v4088_v35 = vld [vmem:[%s6915_s1 + $0x1f8] sm:$0xff] }
  0x29   : > { %v4095_v36 = vld [vmem:[%s6915_s1 + $0x8] sm:$0xff] }
  0x2b   : > { %368 = vperm.xlu1 %3643, %v3899_v8   ;;  %953 = vperm.xlu0 %3644, %v3899_v8  }
  0x2f   : > { %378 = vperm.xlu1 %3643, %v3906_v9   ;;  %961 = vperm.xlu0 %3644, %v3906_v9  }
  0x33   : > { %388 = vperm.xlu1 %3643, %v3913_v10   ;;  %969 = vperm.xlu0 %3644, %v3913_v10  }
  0x37   : > { %398 = vperm.xlu1 %3643, %v3920_v11   ;;  %977 = vperm.xlu0 %3644, %v3920_v11  }
  0x3b   : > { %408 = vperm.xlu1 %3643, %v3927_v12   ;;  %985 = vperm.xlu0 %3644, %v3927_v12  }
  0x3f   : > { %418 = vperm.xlu1 %3643, %v3934_v13   ;;  %993 = vperm.xlu0 %3644, %v3934_v13  }
  0x43   : > { %428 = vperm.xlu1 %3643, %v3941_v14   ;;  %1001 = vperm.xlu0 %3644, %v3941_v14  }
  0x47   : > { %438 = vperm.xlu1 %3643, %v3948_v15   ;;  %1009 = vperm.xlu0 %3644, %v3948_v15  }
  0x4b   : > { %448 = vperm.xlu1 %3643, %v3955_v16   ;;  %1017 = vperm.xlu0 %3644, %v3955_v16  }
  0x4f   : > { %458 = vperm.xlu1 %3643, %v3962_v17   ;;  %1025 = vperm.xlu0 %3644, %v3962_v17  }
  0x53   : > { %468 = vperm.xlu1 %3643, %v3969_v18   ;;  %1033 = vperm.xlu0 %3644, %v3969_v18  }
  0x57   : > { %478 = vperm.xlu1 %3643, %v3976_v19   ;;  %1041 = vperm.xlu0 %3644, %v3976_v19  }
  0x5b   : > { %488 = vperm.xlu1 %3643, %v3983_v20   ;;  %1049 = vperm.xlu0 %3644, %v3983_v20  }
  0x5f   : > { %498 = vperm.xlu1 %3643, %v3990_v21   ;;  %1057 = vperm.xlu0 %3644, %v3990_v21  }
  0x63   : > { %508 = vperm.xlu1 %3643, %v3997_v22   ;;  %1065 = vperm.xlu0 %3644, %v3997_v22  }
  0x67   : > { %518 = vperm.xlu1 %3643, %v4004_v23   ;;  %1073 = vperm.xlu0 %3644, %v4004_v23  }
  0x6b   : > { %528 = vperm.xlu1 %3643, %v4011_v24   ;;  %1081 = vperm.xlu0 %3644, %v4011_v24  }
  0x6f   : > { %538 = vperm.xlu1 %3643, %v4018_v25   ;;  %1089 = vperm.xlu0 %3644, %v4018_v25  }
  0x73   : > { %548 = vperm.xlu1 %3643, %v4025_v26   ;;  %1097 = vperm.xlu0 %3644, %v4025_v26  }
  0x77   : > { %558 = vperm.xlu1 %3643, %v4032_v27   ;;  %1105 = vperm.xlu0 %3644, %v4032_v27  }
  0x7b   : > { %568 = vperm.xlu1 %3643, %v4039_v28   ;;  %1113 = vperm.xlu0 %3644, %v4039_v28  }
  0x7f   : > { %578 = vperm.xlu1 %3643, %v4046_v29   ;;  %1121 = vperm.xlu0 %3644, %v4046_v29  }
  0x83   : > { %588 = vperm.xlu1 %3643, %v4053_v30   ;;  %1129 = vperm.xlu0 %3644, %v4053_v30  }
  0x87   : > { %598 = vperm.xlu1 %3643, %v4060_v31   ;;  %1137 = vperm.xlu0 %3644, %v4060_v31  }
  0x8b   : > { %608 = vperm.xlu1 %3643, %v4067_v32   ;;  %1145 = vperm.xlu0 %3644, %v4067_v32  }
  0x8f   : > { %618 = vperm.xlu1 %3643, %v4074_v33   ;;  %1153 = vperm.xlu0 %3644, %v4074_v33  }
  0x93   : > { %628 = vperm.xlu1 %3643, %v4081_v34   ;;  %1161 = vperm.xlu0 %3644, %v4081_v34  }
  0x97   : > { %638 = vperm.xlu1 %3643, %v4088_v35   ;;  %1169 = vperm.xlu0 %3644, %v4088_v35  }
  0x9a   : > { %v4097_v37 = vpop.permute.xlu1 %333  ;;  %v4099_v38 = vpop.permute.xlu0 %917 }
  0x9b   : > { %7191 = vst [vmem:[#allocation6_spill] sm:$0xff] %v4097_v37  ;;  %7192 = vst [vmem:[#allocation7_spill] sm:$0xff] %v4099_v38  ;;  %3645 = vset.pattern.permute.xlu1 %v3767_v3  ;;  %3647 = vset.pattern.permute.xlu0 %v6922_v39  ;;  %v4332_v38 = vld [vmem:[%s6915_s1 + $0x160] sm:$0xff]  ;;  %v4343_v37 = vld [vmem:[%s6915_s1 + $0x170] sm:$0xff] }
  0x9c   : > { %921 = vperm.xlu1 %3645, %v4095_v36   ;;  %1451 = vperm.xlu0 %3647, %v4095_v36  }
  0x9e   : > { %v4105_v40 = vpop.permute.xlu1 %338  ;;  %v4107_v41 = vpop.permute.xlu0 %929 }
  0x9f   : > { %7193 = vst [vmem:[#allocation8_spill] sm:$0xff] %v4105_v40  ;;  %7194 = vst [vmem:[#allocation9_spill] sm:$0xff] %v4107_v41  ;;  %v4376_v41 = vld [vmem:[%s6915_s1 + $0x1a0] sm:$0xff]  ;;  %v4387_v40 = vld [vmem:[%s6915_s1 + $0x1b0] sm:$0xff] }
  0xa0   : > { %925 = vperm.xlu1 %3645, %v3864_v1   ;;  %1463 = vperm.xlu0 %3647, %v4112_v42  }
  0xa2   : > { %v4116_v43 = vpop.permute.xlu1 %348  ;;  %v4118_v44 = vpop.permute.xlu0 %937 }
  0xa3   : > { %7195 = vst [vmem:[#allocation10_spill] sm:$0xff] %v4116_v43  ;;  %7196 = vst [vmem:[#allocation11_spill] sm:$0xff] %v4118_v44  ;;  %v4354_v44 = vld [vmem:[%s6915_s1 + $0x180] sm:$0xff]  ;;  %v4365_v43 = vld [vmem:[%s6915_s1 + $0x190] sm:$0xff] }
  0xa4   : > { %933 = vperm.xlu1 %3645, %v4112_v42   ;;  %1471 = vperm.xlu0 %3647, %v4123_v45  }
  0xa6   : > { %v4127_v46 = vpop.permute.xlu1 %358  ;;  %v4129_v47 = vpop.permute.xlu0 %945 }
  0xa7   : > { %7197 = vst [vmem:[#allocation12_spill] sm:$0xff] %v4127_v46  ;;  %7198 = vst [vmem:[#allocation13_spill] sm:$0xff] %v4129_v47  ;;  %v4310_v47 = vld [vmem:[%s6915_s1 + $0x140] sm:$0xff]  ;;  %v4321_v46 = vld [vmem:[%s6915_s1 + $0x150] sm:$0xff] }
  0xa8   : > { %941 = vperm.xlu1 %3645, %v4123_v45   ;;  %1479 = vperm.xlu0 %3647, %v4134_v48  }
  0xaa   : > { %v4138_v49 = vpop.permute.xlu1 %368  ;;  %v4140_v50 = vpop.permute.xlu0 %953 }
  0xab   : > { %7199 = vst [vmem:[#allocation14_spill] sm:$0xff] %v4138_v49  ;;  %7200 = vst [vmem:[#allocation15_spill] sm:$0xff] %v4140_v50  ;;  %v4288_v50 = vld [vmem:[%s6915_s1 + $0x120] sm:$0xff]  ;;  %v4299_v49 = vld [vmem:[%s6915_s1 + $0x130] sm:$0xff] }
  0xac   : > { %949 = vperm.xlu1 %3645, %v4134_v48   ;;  %1487 = vperm.xlu0 %3647, %v4145_v51   ;;  %7232 = vst [vmem:[#allocation47_spill] sm:$0xff] %v4288_v50  ;;  %7235 = vst [vmem:[#allocation50_spill] sm:$0xff] %v4299_v49 }
  0xae   : > { %v4149_v52 = vpop.permute.xlu1 %378  ;;  %v4151_v53 = vpop.permute.xlu0 %961 }
  0xaf   : > { %7201 = vst [vmem:[#allocation16_spill] sm:$0xff] %v4149_v52  ;;  %7202 = vst [vmem:[#allocation17_spill] sm:$0xff] %v4151_v53  ;;  %v4266_v53 = vld [vmem:[%s6915_s1 + $0x100] sm:$0xff]  ;;  %v4277_v52 = vld [vmem:[%s6915_s1 + $0x110] sm:$0xff] }
  0xb0   : > { %957 = vperm.xlu1 %3645, %v4145_v51   ;;  %1495 = vperm.xlu0 %3647, %v4156_v54   ;;  %7226 = vst [vmem:[#allocation41_spill] sm:$0xff] %v4266_v53  ;;  %7229 = vst [vmem:[#allocation44_spill] sm:$0xff] %v4277_v52 }
  0xb2   : > { %v4160_v55 = vpop.permute.xlu1 %388  ;;  %v4162_v56 = vpop.permute.xlu0 %969 }
  0xb3   : > { %7203 = vst [vmem:[#allocation18_spill] sm:$0xff] %v4160_v55  ;;  %7204 = vst [vmem:[#allocation19_spill] sm:$0xff] %v4162_v56  ;;  %v4244_v56 = vld [vmem:[%s6915_s1 + $0xe0] sm:$0xff]  ;;  %v4255_v55 = vld [vmem:[%s6915_s1 + $0xf0] sm:$0xff] }
  0xb4   : > { %965 = vperm.xlu1 %3645, %v4156_v54   ;;  %1503 = vperm.xlu0 %3647, %v4167_v57   ;;  %7220 = vst [vmem:[#allocation35_spill] sm:$0xff] %v4244_v56  ;;  %7223 = vst [vmem:[#allocation38_spill] sm:$0xff] %v4255_v55 }
  0xb6   : > { %v4171_v58 = vpop.permute.xlu1 %398  ;;  %v4173_v59 = vpop.permute.xlu0 %977 }
  0xb7   : > { %7205 = vst [vmem:[#allocation20_spill] sm:$0xff] %v4171_v58  ;;  %7206 = vst [vmem:[#allocation21_spill] sm:$0xff] %v4173_v59  ;;  %v4222_v59 = vld [vmem:[%s6915_s1 + $0xc0] sm:$0xff]  ;;  %v4233_v58 = vld [vmem:[%s6915_s1 + $0xd0] sm:$0xff] }
  0xb8   : > { %973 = vperm.xlu1 %3645, %v4167_v57   ;;  %1511 = vperm.xlu0 %3647, %v4178_v60   ;;  %7217 = vst [vmem:[#allocation32_spill] sm:$0xff] %v4233_v58 }
  0xba   : > { %v4182_v61 = vpop.permute.xlu1 %408  ;;  %v4184_v62 = vpop.permute.xlu0 %985 }
  0xbb   : > { %7207 = vst [vmem:[#allocation22_spill] sm:$0xff] %v4182_v61  ;;  %7208 = vst [vmem:[#allocation23_spill] sm:$0xff] %v4184_v62  ;;  %v4211_v61 = vld [vmem:[%s6915_s1 + $0xb0] sm:$0xff] }
  0xbc   : > { %981 = vperm.xlu1 %3645, %v4178_v60   ;;  %1519 = vperm.xlu0 %3647, %v4189_v63  }
  0xbe   : > { %v4193_v0 = vpop.permute.xlu1 %418  ;;  %v4195_v3 = vpop.permute.xlu0 %993 }
  0xbf   : > { %7209 = vst [vmem:[#allocation24_spill] sm:$0xff] %v4193_v0  ;;  %7210 = vst [vmem:[#allocation25_spill] sm:$0xff] %v4195_v3 }
  0xc0   : > { %989 = vperm.xlu1 %3645, %v4189_v63   ;;  %1527 = vperm.xlu0 %3647, %v4200_v4  }
  0xc2   : > { %v4204_v39 = vpop.permute.xlu1 %428  ;;  %v4206_v62 = vpop.permute.xlu0 %1001 }
  0xc3   : > { %7211 = vst [vmem:[#allocation26_spill] sm:$0xff] %v4204_v39  ;;  %7212 = vst [vmem:[#allocation27_spill] sm:$0xff] %v4206_v62 }
  0xc4   : > { %997 = vperm.xlu1 %3645, %v4200_v4   ;;  %1535 = vperm.xlu0 %3647, %v4211_v61  }
  0xc6   : > { %v4215_v3 = vpop.permute.xlu1 %438  ;;  %v4217_v0 = vpop.permute.xlu0 %1009 }
  0xc7   : > { %7213 = vst [vmem:[#allocation28_spill] sm:$0xff] %v4215_v3  ;;  %7214 = vst [vmem:[#allocation29_spill] sm:$0xff] %v4217_v0 }
  0xc8   : > { %1005 = vperm.xlu1 %3645, %v4211_v61   ;;  %1543 = vperm.xlu0 %3647, %v4222_v59  }
  0xca   : > { %v4226_v62 = vpop.permute.xlu1 %448  ;;  %v4228_v39 = vpop.permute.xlu0 %1017 }
  0xcb   : > { %7215 = vst [vmem:[#allocation30_spill] sm:$0xff] %v4226_v62  ;;  %7216 = vst [vmem:[#allocation31_spill] sm:$0xff] %v4228_v39 }
  0xcc   : > { %1013 = vperm.xlu1 %3645, %v4222_v59   ;;  %1551 = vperm.xlu0 %3647, %v4233_v58  }
  0xce   : > { %v4237_v0 = vpop.permute.xlu1 %458  ;;  %v4239_v3 = vpop.permute.xlu0 %1025 }
  0xcf   : > { %7218 = vst [vmem:[#allocation33_spill] sm:$0xff] %v4237_v0  ;;  %7219 = vst [vmem:[#allocation34_spill] sm:$0xff] %v4239_v3 }
  0xd0   : > { %1021 = vperm.xlu1 %3645, %v4233_v58   ;;  %1559 = vperm.xlu0 %3647, %v4244_v56  }
  0xd2   : > { %v4248_v39 = vpop.permute.xlu1 %468  ;;  %v4250_v62 = vpop.permute.xlu0 %1033 }
  0xd3   : > { %7221 = vst [vmem:[#allocation36_spill] sm:$0xff] %v4248_v39  ;;  %7222 = vst [vmem:[#allocation37_spill] sm:$0xff] %v4250_v62 }
  0xd4   : > { %1029 = vperm.xlu1 %3645, %v4244_v56   ;;  %1567 = vperm.xlu0 %3647, %v4255_v55  }
  0xd6   : > { %v4259_v3 = vpop.permute.xlu1 %478  ;;  %v4261_v0 = vpop.permute.xlu0 %1041 }
  0xd7   : > { %7224 = vst [vmem:[#allocation39_spill] sm:$0xff] %v4259_v3  ;;  %7225 = vst [vmem:[#allocation40_spill] sm:$0xff] %v4261_v0 }
  0xd8   : > { %1037 = vperm.xlu1 %3645, %v4255_v55   ;;  %1575 = vperm.xlu0 %3647, %v4266_v53   ;;  %v6999_v55 = vmov 3  }
  0xda   : > { %v4270_v62 = vpop.permute.xlu1 %488  ;;  %v4272_v39 = vpop.permute.xlu0 %1049 }
  0xdb   : > { %7227 = vst [vmem:[#allocation42_spill] sm:$0xff] %v4270_v62  ;;  %7228 = vst [vmem:[#allocation43_spill] sm:$0xff] %v4272_v39 }
  0xdc   : > { %1045 = vperm.xlu1 %3645, %v4266_v53   ;;  %1583 = vperm.xlu0 %3647, %v4277_v52   ;;  %v4431_v53 = vld [vmem:[%s6915_s1 + $0x1f0] sm:$0xff] }
  0xde   : > { %v4281_v0 = vpop.permute.xlu1 %498  ;;  %v4283_v3 = vpop.permute.xlu0 %1057 }
  0xdf   : > { %7230 = vst [vmem:[#allocation45_spill] sm:$0xff] %v4281_v0  ;;  %7231 = vst [vmem:[#allocation46_spill] sm:$0xff] %v4283_v3 }
  0xe0   : > { %1053 = vperm.xlu1 %3645, %v4277_v52   ;;  %1591 = vperm.xlu0 %3647, %v4288_v50   ;;  %v4420_v52 = vld [vmem:[%s6915_s1 + $0x1e0] sm:$0xff] }
  0xe2   : > { %v4292_v39 = vpop.permute.xlu1 %508  ;;  %v4294_v62 = vpop.permute.xlu0 %1065 }
  0xe3   : > { %7233 = vst [vmem:[#allocation48_spill] sm:$0xff] %v4292_v39  ;;  %7234 = vst [vmem:[#allocation49_spill] sm:$0xff] %v4294_v62 }
  0xe4   : > { %1061 = vperm.xlu1 %3645, %v4288_v50   ;;  %1599 = vperm.xlu0 %3647, %v4299_v49   ;;  %v4409_v50 = vld [vmem:[%s6915_s1 + $0x1d0] sm:$0xff] }
  0xe6   : > { %v4303_v3 = vpop.permute.xlu1 %518  ;;  %v4305_v0 = vpop.permute.xlu0 %1073 }
  0xe7   : > { %7236 = vst [vmem:[#allocation51_spill] sm:$0xff] %v4303_v3  ;;  %7237 = vst [vmem:[#allocation52_spill] sm:$0xff] %v4305_v0 }
  0xe8   : > { %1069 = vperm.xlu1 %3645, %v4299_v49   ;;  %1607 = vperm.xlu0 %3647, %v4310_v47   ;;  %v4398_v49 = vld [vmem:[%s6915_s1 + $0x1c0] sm:$0xff] }
  0xea   : > { %v4314_v62 = vpop.permute.xlu1 %528  ;;  %v4316_v39 = vpop.permute.xlu0 %1081 }
  0xeb   : > { %7238 = vst [vmem:[#allocation53_spill] sm:$0xff] %v4314_v62  ;;  %7239 = vst [vmem:[#allocation54_spill] sm:$0xff] %v4316_v39 }
  0xec   : > { %1077 = vperm.xlu1 %3645, %v4310_v47   ;;  %1615 = vperm.xlu0 %3647, %v4321_v46  }
  0xee   : > { %v4325_v0 = vpop.permute.xlu1 %538  ;;  %v4327_v3 = vpop.permute.xlu0 %1089 }
  0xef   : > { %7240 = vst [vmem:[#allocation55_spill] sm:$0xff] %v4325_v0  ;;  %7241 = vst [vmem:[#allocation56_spill] sm:$0xff] %v4327_v3 }
  0xf0   : > { %1085 = vperm.xlu1 %3645, %v4321_v46   ;;  %1623 = vperm.xlu0 %3647, %v4332_v38  }
  0xf2   : > { %v4336_v39 = vpop.permute.xlu1 %548  ;;  %v4338_v62 = vpop.permute.xlu0 %1097 }
  0xf3   : > { %7242 = vst [vmem:[#allocation57_spill] sm:$0xff] %v4336_v39  ;;  %7243 = vst [vmem:[#allocation58_spill] sm:$0xff] %v4338_v62 }
  0xf4   : > { %1093 = vperm.xlu1 %3645, %v4332_v38   ;;  %1631 = vperm.xlu0 %3647, %v4343_v37  }
  0xf6   : > { %v4347_v3 = vpop.permute.xlu1 %558  ;;  %v4349_v0 = vpop.permute.xlu0 %1105 }
  0xf7   : > { %7244 = vst [vmem:[#allocation59_spill] sm:$0xff] %v4347_v3  ;;  %7245 = vst [vmem:[#allocation60_spill] sm:$0xff] %v4349_v0 }
  0xf8   : > { %1101 = vperm.xlu1 %3645, %v4343_v37   ;;  %1639 = vperm.xlu0 %3647, %v4354_v44  }
  0xfa   : > { %v4358_v62 = vpop.permute.xlu1 %568  ;;  %v4360_v39 = vpop.permute.xlu0 %1113 }
  0xfb   : > { %7246 = vst [vmem:[#allocation61_spill] sm:$0xff] %v4358_v62  ;;  %7247 = vst [vmem:[#allocation62_spill] sm:$0xff] %v4360_v39 }
  0xfc   : > { %1109 = vperm.xlu1 %3645, %v4354_v44   ;;  %1647 = vperm.xlu0 %3647, %v4365_v43  }
  0xfe   : > { %v4369_v0 = vpop.permute.xlu1 %578  ;;  %v4371_v3 = vpop.permute.xlu0 %1121 }
  0xff   : > { %7248 = vst [vmem:[#allocation63_spill] sm:$0xff] %v4369_v0  ;;  %7249 = vst [vmem:[#allocation64_spill] sm:$0xff] %v4371_v3 }
 0x100   : > { %1117 = vperm.xlu1 %3645, %v4365_v43   ;;  %1655 = vperm.xlu0 %3647, %v4376_v41  }
 0x102   : > { %v4380_v39 = vpop.permute.xlu1 %588  ;;  %v4382_v62 = vpop.permute.xlu0 %1129 }
 0x103   : > { %7250 = vst [vmem:[#allocation65_spill] sm:$0xff] %v4380_v39  ;;  %7251 = vst [vmem:[#allocation66_spill] sm:$0xff] %v4382_v62 }
 0x104   : > { %1125 = vperm.xlu1 %3645, %v4376_v41   ;;  %1663 = vperm.xlu0 %3647, %v4387_v40  }
 0x106   : > { %v4391_v3 = vpop.permute.xlu1 %598  ;;  %v4393_v0 = vpop.permute.xlu0 %1137 }
 0x107   : > { %7252 = vst [vmem:[#allocation67_spill] sm:$0xff] %v4391_v3  ;;  %7253 = vst [vmem:[#allocation68_spill] sm:$0xff] %v4393_v0 }
 0x108   : > { %1133 = vperm.xlu1 %3645, %v4387_v40   ;;  %1671 = vperm.xlu0 %3647, %v4398_v49  }
 0x10a   : > { %v4402_v62 = vpop.permute.xlu1 %608  ;;  %v4404_v39 = vpop.permute.xlu0 %1145 }
 0x10b   : > { %7254 = vst [vmem:[#allocation69_spill] sm:$0xff] %v4402_v62  ;;  %7255 = vst [vmem:[#allocation70_spill] sm:$0xff] %v4404_v39 }
 0x10c   : > { %1141 = vperm.xlu1 %3645, %v4398_v49   ;;  %1679 = vperm.xlu0 %3647, %v4409_v50  }
 0x10e   : > { %v4413_v0 = vpop.permute.xlu1 %618  ;;  %v4415_v3 = vpop.permute.xlu0 %1153 }
 0x10f   : > { %7256 = vst [vmem:[#allocation71_spill] sm:$0xff] %v4413_v0  ;;  %7257 = vst [vmem:[#allocation72_spill] sm:$0xff] %v4415_v3 }
 0x110   : > { %1149 = vperm.xlu1 %3645, %v4409_v50   ;;  %1687 = vperm.xlu0 %3647, %v4420_v52  }
 0x112   : > { %v4424_v39 = vpop.permute.xlu1 %628  ;;  %v4426_v62 = vpop.permute.xlu0 %1161 }
 0x113   : > { %7258 = vst [vmem:[#allocation73_spill] sm:$0xff] %v4424_v39  ;;  %7259 = vst [vmem:[#allocation74_spill] sm:$0xff] %v4426_v62  ;;  %v7263_v39 = vmov 2  }
 0x114   : > { %1157 = vperm.xlu1 %3645, %v4420_v52   ;;  %1695 = vperm.xlu0 %3647, %v4431_v53  }
 0x116   : > { %v4435_v3 = vpop.permute.xlu1 %638  ;;  %v4437_v0 = vpop.permute.xlu0 %1169 }
 0x117   : > { %7260 = vst [vmem:[#allocation75_spill] sm:$0xff] %v4435_v3  ;;  %7261 = vst [vmem:[#allocation76_spill] sm:$0xff] %v4437_v0 }
 0x118   : > { %1165 = vperm.xlu1 %3645, %v4431_v53   ;;  %3648 = vset.pattern.permute.xlu0 %v6999_v55 }
 0x119   : > { %1977 = vperm.xlu0 %3648, %v3869_v2  }
 0x11b   : > { %v4442_v62 = vpop.permute.xlu1 %921  ;;  %v4445_v56 = vpop.permute.xlu0 %1451 }
 0x11c   : > { %7262 = vst [vmem:[#allocation77_spill] sm:$0xff] %v4442_v62  ;;  %3646 = vset.pattern.permute.xlu1 %v7263_v39  ;;  %7264 = vst [vmem:[#allocation78_spill] sm:$0xff] %v4445_v56 }
 0x11d   : > { %1447 = vperm.xlu1 %3646, %v3869_v2   ;;  %1989 = vperm.xlu0 %3648, %v3878_v5  }
 0x11f   : > { %v4449_v3 = vpop.permute.xlu1 %925  ;;  %v4451_v0 = vpop.permute.xlu0 %1463 }
 0x120   : > { %7265 = vst [vmem:[#allocation79_spill] sm:$0xff] %v4451_v0 }
 0x121   : > { %1455 = vperm.xlu1 %3646, %v3864_v1   ;;  %1997 = vperm.xlu0 %3648, %v3885_v6  }
 0x123   : > { %v4455_v55 = vpop.permute.xlu1 %933  ;;  %v4457_v58 = vpop.permute.xlu0 %1471 }
 0x124   : > { %7266 = vst [vmem:[#allocation80_spill] sm:$0xff] %v4457_v58 }
 0x125   : > { %1459 = vperm.xlu1 %3646, %v3878_v5   ;;  %2005 = vperm.xlu0 %3648, %v3892_v7  }
 0x127   : > { %v4461_v39 = vpop.permute.xlu1 %941  ;;  %v4463_v56 = vpop.permute.xlu0 %1479 }
 0x128   : > { %7267 = vst [vmem:[#allocation81_spill] sm:$0xff] %v4463_v56 }
 0x129   : > { %1467 = vperm.xlu1 %3646, %v3885_v6   ;;  %2013 = vperm.xlu0 %3648, %v3899_v8  }
 0x12b   : > { %v4467_v0 = vpop.permute.xlu1 %949  ;;  %v4469_v62 = vpop.permute.xlu0 %1487 }
 0x12c   : > { %7268 = vst [vmem:[#allocation82_spill] sm:$0xff] %v4469_v62 }
 0x12d   : > { %1475 = vperm.xlu1 %3646, %v3892_v7   ;;  %2021 = vperm.xlu0 %3648, %v3906_v9  }
 0x12f   : > { %v4473_v58 = vpop.permute.xlu1 %957  ;;  %v4475_v5 = vpop.permute.xlu0 %1495 }
 0x130   : > { %7269 = vst [vmem:[#allocation83_spill] sm:$0xff] %v4475_v5 }
 0x131   : > { %1483 = vperm.xlu1 %3646, %v3899_v8   ;;  %2029 = vperm.xlu0 %3648, %v3913_v10  }
 0x133   : > { %v4479_v56 = vpop.permute.xlu1 %965  ;;  %v4481_v6 = vpop.permute.xlu0 %1503 }
 0x134   : > { %7270 = vst [vmem:[#allocation84_spill] sm:$0xff] %v4481_v6 }
 0x135   : > { %1491 = vperm.xlu1 %3646, %v3906_v9   ;;  %2037 = vperm.xlu0 %3648, %v3920_v11  }
 0x137   : > { %v4485_v62 = vpop.permute.xlu1 %973  ;;  %v4487_v7 = vpop.permute.xlu0 %1511 }
 0x138   : > { %7271 = vst [vmem:[#allocation85_spill] sm:$0xff] %v4485_v62  ;;  %7272 = vst [vmem:[#allocation86_spill] sm:$0xff] %v4487_v7 }
 0x139   : > { %1499 = vperm.xlu1 %3646, %v3913_v10   ;;  %2045 = vperm.xlu0 %3648, %v3927_v12  }
 0x13b   : > { %v4491_v5 = vpop.permute.xlu1 %981  ;;  %v4493_v8 = vpop.permute.xlu0 %1519 }
 0x13c   : > { %7273 = vst [vmem:[#allocation87_spill] sm:$0xff] %v4491_v5  ;;  %7274 = vst [vmem:[#allocation88_spill] sm:$0xff] %v4493_v8 }
 0x13d   : > { %1507 = vperm.xlu1 %3646, %v3920_v11   ;;  %2053 = vperm.xlu0 %3648, %v3934_v13  }
 0x13f   : > { %v4497_v6 = vpop.permute.xlu1 %989  ;;  %v4499_v9 = vpop.permute.xlu0 %1527 }
 0x140   : > { %7275 = vst [vmem:[#allocation89_spill] sm:$0xff] %v4497_v6  ;;  %7276 = vst [vmem:[#allocation90_spill] sm:$0xff] %v4499_v9 }
 0x141   : > { %1515 = vperm.xlu1 %3646, %v3927_v12   ;;  %2061 = vperm.xlu0 %3648, %v3941_v14  }
 0x143   : > { %v4503_v7 = vpop.permute.xlu1 %997  ;;  %v4505_v10 = vpop.permute.xlu0 %1535 }
 0x144   : > { %7277 = vst [vmem:[#allocation91_spill] sm:$0xff] %v4503_v7  ;;  %7278 = vst [vmem:[#allocation92_spill] sm:$0xff] %v4505_v10 }
 0x145   : > { %1523 = vperm.xlu1 %3646, %v3934_v13   ;;  %2069 = vperm.xlu0 %3648, %v3948_v15  }
 0x147   : > { %v4509_v8 = vpop.permute.xlu1 %1005  ;;  %v4511_v11 = vpop.permute.xlu0 %1543 }
 0x148   : > { %7279 = vst [vmem:[#allocation93_spill] sm:$0xff] %v4509_v8  ;;  %7280 = vst [vmem:[#allocation94_spill] sm:$0xff] %v4511_v11 }
 0x149   : > { %1531 = vperm.xlu1 %3646, %v3941_v14   ;;  %2077 = vperm.xlu0 %3648, %v3955_v16  }
 0x14b   : > { %v4515_v9 = vpop.permute.xlu1 %1013  ;;  %v4517_v12 = vpop.permute.xlu0 %1551 }
 0x14c   : > { %7281 = vst [vmem:[#allocation95_spill] sm:$0xff] %v4515_v9  ;;  %7282 = vst [vmem:[#allocation96_spill] sm:$0xff] %v4517_v12 }
 0x14d   : > { %1539 = vperm.xlu1 %3646, %v3948_v15   ;;  %2085 = vperm.xlu0 %3648, %v3962_v17  }
 0x14f   : > { %v4521_v10 = vpop.permute.xlu1 %1021  ;;  %v4523_v13 = vpop.permute.xlu0 %1559 }
 0x150   : > { %7283 = vst [vmem:[#allocation97_spill] sm:$0xff] %v4521_v10  ;;  %7284 = vst [vmem:[#allocation98_spill] sm:$0xff] %v4523_v13 }
 0x151   : > { %1547 = vperm.xlu1 %3646, %v3955_v16   ;;  %2093 = vperm.xlu0 %3648, %v3969_v18  }
 0x153   : > { %v4527_v11 = vpop.permute.xlu1 %1029  ;;  %v4529_v14 = vpop.permute.xlu0 %1567 }
 0x154   : > { %7285 = vst [vmem:[#allocation99_spill] sm:$0xff] %v4527_v11  ;;  %7286 = vst [vmem:[#allocation100_spill] sm:$0xff] %v4529_v14 }
 0x155   : > { %1555 = vperm.xlu1 %3646, %v3962_v17   ;;  %2101 = vperm.xlu0 %3648, %v3976_v19  }
 0x157   : > { %v4533_v12 = vpop.permute.xlu1 %1037  ;;  %v4535_v15 = vpop.permute.xlu0 %1575 }
 0x158   : > { %7287 = vst [vmem:[#allocation101_spill] sm:$0xff] %v4533_v12 }
 0x159   : > { %1563 = vperm.xlu1 %3646, %v3969_v18   ;;  %2109 = vperm.xlu0 %3648, %v3983_v20  }
 0x15b   : > { %v4539_v13 = vpop.permute.xlu1 %1045  ;;  %v4541_v16 = vpop.permute.xlu0 %1583 }
 0x15d   : > { %1571 = vperm.xlu1 %3646, %v3976_v19   ;;  %2117 = vperm.xlu0 %3648, %v3990_v21  }
 0x15f   : > { %v4545_v14 = vpop.permute.xlu1 %1053  ;;  %v4547_v17 = vpop.permute.xlu0 %1591 }
 0x160   : > { %7288 = vst [vmem:[#allocation102_spill] sm:$0xff] %v4545_v14  ;;  %7289 = vst [vmem:[#allocation103_spill] sm:$0xff] %v4547_v17 }
 0x161   : > { %1579 = vperm.xlu1 %3646, %v3983_v20   ;;  %2125 = vperm.xlu0 %3648, %v3997_v22  }
 0x163   : > { %v4551_v12 = vpop.permute.xlu1 %1061  ;;  %v4553_v18 = vpop.permute.xlu0 %1599 }
 0x164   : > { %7290 = vst [vmem:[#allocation104_spill] sm:$0xff] %v4551_v12  ;;  %7291 = vst [vmem:[#allocation105_spill] sm:$0xff] %v4553_v18  ;;  %v2555_v12 = vld [vmem:[%s6916_s2 + $0x188] sm:$0xff] }
 0x165   : > { %1587 = vperm.xlu1 %3646, %v3990_v21   ;;  %2133 = vperm.xlu0 %3648, %v4004_v23  }
 0x167   : > { %v4557_v11 = vpop.permute.xlu1 %1069  ;;  %v4559_v19 = vpop.permute.xlu0 %1607 }
 0x168   : > { %7292 = vst [vmem:[#allocation106_spill] sm:$0xff] %v4557_v11  ;;  %7293 = vst [vmem:[#allocation107_spill] sm:$0xff] %v4559_v19 }
 0x169   : > { %1595 = vperm.xlu1 %3646, %v3997_v22   ;;  %2137 = vperm.xlu0 %3648, %v4310_v47  }
 0x16b   : > { %v4563_v10 = vpop.permute.xlu1 %1077  ;;  %v4565_v20 = vpop.permute.xlu0 %1615 }
 0x16c   : > { %7294 = vst [vmem:[#allocation108_spill] sm:$0xff] %v4563_v10  ;;  %7295 = vst [vmem:[#allocation109_spill] sm:$0xff] %v4565_v20  ;;  %v7447_v10 = vld [vmem:[#allocation27_spill] sm:$0xff] }
 0x16d   : > { %1603 = vperm.xlu1 %3646, %v4004_v23   ;;  %2145 = vperm.xlu0 %3648, %v4321_v46  }
 0x16f   : > { %v4569_v9 = vpop.permute.xlu1 %1085  ;;  %v4571_v21 = vpop.permute.xlu0 %1623 }
 0x170   : > { %7296 = vst [vmem:[#allocation110_spill] sm:$0xff] %v4569_v9  ;;  %7297 = vst [vmem:[#allocation111_spill] sm:$0xff] %v4571_v21  ;;  %v7444_v9 = vld [vmem:[#allocation25_spill] sm:$0xff] }
 0x171   : > { %1611 = vperm.xlu1 %3646, %v4011_v24   ;;  %2153 = vperm.xlu0 %3648, %v4332_v38  }
 0x173   : > { %v4575_v8 = vpop.permute.xlu1 %1093  ;;  %v4577_v22 = vpop.permute.xlu0 %1631 }
 0x174   : > { %7298 = vst [vmem:[#allocation112_spill] sm:$0xff] %v4575_v8  ;;  %7299 = vst [vmem:[#allocation113_spill] sm:$0xff] %v4577_v22 }
 0x175   : > { %1619 = vperm.xlu1 %3646, %v4018_v25   ;;  %2161 = vperm.xlu0 %3648, %v4343_v37  }
 0x177   : > { %v4581_v7 = vpop.permute.xlu1 %1101  ;;  %v4583_v23 = vpop.permute.xlu0 %1639 }
 0x178   : > { %7300 = vst [vmem:[#allocation114_spill] sm:$0xff] %v4581_v7  ;;  %7301 = vst [vmem:[#allocation115_spill] sm:$0xff] %v4583_v23 }
 0x179   : > { %1627 = vperm.xlu1 %3646, %v4025_v26   ;;  %2169 = vperm.xlu0 %3648, %v4354_v44  }
 0x17b   : > { %v4587_v6 = vpop.permute.xlu1 %1109  ;;  %v4589_v5 = vpop.permute.xlu0 %1647 }
 0x17c   : > { %7302 = vst [vmem:[#allocation116_spill] sm:$0xff] %v4587_v6  ;;  %7303 = vst [vmem:[#allocation117_spill] sm:$0xff] %v4589_v5 }
 0x17d   : > { %1635 = vperm.xlu1 %3646, %v4032_v27   ;;  %2177 = vperm.xlu0 %3648, %v4365_v43  }
 0x17f   : > { %v4593_v22 = vpop.permute.xlu1 %1117  ;;  %v4595_v62 = vpop.permute.xlu0 %1655 }
 0x180   : > { %7304 = vst [vmem:[#allocation118_spill] sm:$0xff] %v4593_v22  ;;  %7305 = vst [vmem:[#allocation119_spill] sm:$0xff] %v4595_v62 }
 0x181   : > { %1643 = vperm.xlu1 %3646, %v4039_v28   ;;  %2185 = vperm.xlu0 %3648, %v4376_v41  }
 0x183   : > { %v4599_v23 = vpop.permute.xlu1 %1125  ;;  %v4601_v26 = vpop.permute.xlu0 %1663 }
 0x184   : > { %7306 = vst [vmem:[#allocation120_spill] sm:$0xff] %v4599_v23  ;;  %7307 = vst [vmem:[#allocation121_spill] sm:$0xff] %v4601_v26 }
 0x185   : > { %1651 = vperm.xlu1 %3646, %v4046_v29   ;;  %2193 = vperm.xlu0 %3648, %v4387_v40  }
 0x187   : > { %v4605_v5 = vpop.permute.xlu1 %1133  ;;  %v4607_v27 = vpop.permute.xlu0 %1671 }
 0x188   : > { %7308 = vst [vmem:[#allocation122_spill] sm:$0xff] %v4605_v5  ;;  %7309 = vst [vmem:[#allocation123_spill] sm:$0xff] %v4607_v27 }
 0x189   : > { %1659 = vperm.xlu1 %3646, %v4053_v30   ;;  %2201 = vperm.xlu0 %3648, %v4398_v49  }
 0x18b   : > { %v4611_v62 = vpop.permute.xlu1 %1141  ;;  %v4613_v28 = vpop.permute.xlu0 %1679 }
 0x18c   : > { %7310 = vst [vmem:[#allocation124_spill] sm:$0xff] %v4611_v62  ;;  %7311 = vst [vmem:[#allocation125_spill] sm:$0xff] %v4613_v28 }
 0x18d   : > { %1667 = vperm.xlu1 %3646, %v4060_v31   ;;  %2209 = vperm.xlu0 %3648, %v4409_v50  }
 0x18f   : > { %v4617_v26 = vpop.permute.xlu1 %1149  ;;  %v4619_v29 = vpop.permute.xlu0 %1687 }
 0x190   : > { %7312 = vst [vmem:[#allocation126_spill] sm:$0xff] %v4617_v26  ;;  %7313 = vst [vmem:[#allocation127_spill] sm:$0xff] %v4619_v29  ;;  %v7318_v26 = vmov 0  }
 0x191   : > { %1675 = vperm.xlu1 %3646, %v4067_v32   ;;  %2217 = vperm.xlu0 %3648, %v4420_v52  }
 0x193   : > { %v4623_v27 = vpop.permute.xlu1 %1157  ;;  %v4625_v30 = vpop.permute.xlu0 %1695 }
 0x194   : > { %7314 = vst [vmem:[#allocation128_spill] sm:$0xff] %v4623_v27  ;;  %7315 = vst [vmem:[#allocation129_spill] sm:$0xff] %v4625_v30  ;;  %v7322_v30 = vmov 3  }
 0x195   : > { %1683 = vperm.xlu1 %3646, %v4074_v33   ;;  %2225 = vperm.xlu0 %3648, %v4431_v53  }
 0x197   : > { %v4629_v28 = vpop.permute.xlu1 %1165 }
 0x198   : > { %7316 = vst [vmem:[#allocation130_spill] sm:$0xff] %v4629_v28  ;;  %v4632_v31 = vpop.permute.xlu0 %1977 }
 0x199   : > { %1691 = vperm.xlu1 %3646, %v4081_v34   ;;  %7317 = vst [vmem:[#allocation131_spill] sm:$0xff] %v4632_v31  ;;  %3673 = vset.pattern.permute.xlu0 %v7318_v26 }
 0x19a   : > { %323 = vperm.xlu0 %3673, %v3869_v2  }
 0x19c   : > { %v4636_v32 = vpop.permute.xlu1 %1447  ;;  %v4639_v29 = vpop.permute.xlu0 %1989 }
 0x19d   : > { %7319 = vst [vmem:[#allocation132_spill] sm:$0xff] %v4636_v32  ;;  %1699 = vperm.xlu1 %3646, %v4088_v35   ;;  %7320 = vst [vmem:[#allocation133_spill] sm:$0xff] %v4639_v29 }
 0x19e   : > { %328 = vperm.xlu0 %3673, %v4095_v36  }
 0x1a0   : > { %v4642_v33 = vpop.permute.xlu1 %1455  ;;  %v4645_v28 = vpop.permute.xlu0 %1997 }
 0x1a1   : > { %7321 = vst [vmem:[#allocation134_spill] sm:$0xff] %v4642_v33  ;;  %3649 = vset.pattern.permute.xlu1 %v7322_v30  ;;  %7323 = vst [vmem:[#allocation135_spill] sm:$0xff] %v4645_v28  ;;  %v7440_v28 = vld [vmem:[#allocation22_spill] sm:$0xff] }
 0x1a2   : > { %1981 = vperm.xlu1 %3649, %v4095_v36   ;;  %343 = vperm.xlu0 %3673, %v4112_v42  }
 0x1a4   : > { %v4649_v34 = vpop.permute.xlu1 %1459  ;;  %v4651_v2 = vpop.permute.xlu0 %2005 }
 0x1a5   : > { %7324 = vst [vmem:[#allocation136_spill] sm:$0xff] %v4649_v34  ;;  %7325 = vst [vmem:[#allocation137_spill] sm:$0xff] %v4651_v2 }
 0x1a6   : > { %1985 = vperm.xlu1 %3649, %v3864_v1   ;;  %353 = vperm.xlu0 %3673, %v4123_v45  }
 0x1a8   : > { %v4655_v35 = vpop.permute.xlu1 %1467  ;;  %v4657_v27 = vpop.permute.xlu0 %2013 }
 0x1a9   : > { %7326 = vst [vmem:[#allocation138_spill] sm:$0xff] %v4655_v35  ;;  %7327 = vst [vmem:[#allocation139_spill] sm:$0xff] %v4657_v27 }
 0x1aa   : > { %1993 = vperm.xlu1 %3649, %v4112_v42   ;;  %363 = vperm.xlu0 %3673, %v4134_v48  }
 0x1ac   : > { %v4661_v62 = vpop.permute.xlu1 %1475  ;;  %v4663_v36 = vpop.permute.xlu0 %2021 }
 0x1ad   : > { %7328 = vst [vmem:[#allocation140_spill] sm:$0xff] %v4661_v62  ;;  %7329 = vst [vmem:[#allocation141_spill] sm:$0xff] %v4663_v36  ;;  %v7434_v36 = vld [vmem:[#allocation17_spill] sm:$0xff] }
 0x1ae   : > { %2001 = vperm.xlu1 %3649, %v4123_v45   ;;  %373 = vperm.xlu0 %3673, %v4145_v51  }
 0x1b0   : > { %v4667_v5 = vpop.permute.xlu1 %1483  ;;  %v4669_v1 = vpop.permute.xlu0 %2029 }
 0x1b1   : > { %7330 = vst [vmem:[#allocation142_spill] sm:$0xff] %v4667_v5  ;;  %7331 = vst [vmem:[#allocation143_spill] sm:$0xff] %v4669_v1  ;;  %v7437_v5 = vld [vmem:[#allocation19_spill] sm:$0xff] }
 0x1b2   : > { %2009 = vperm.xlu1 %3649, %v4134_v48   ;;  %383 = vperm.xlu0 %3673, %v4156_v54  }
 0x1b4   : > { %v4673_v23 = vpop.permute.xlu1 %1491  ;;  %v4675_v42 = vpop.permute.xlu0 %2037 }
 0x1b5   : > { %7332 = vst [vmem:[#allocation144_spill] sm:$0xff] %v4673_v23  ;;  %7333 = vst [vmem:[#allocation145_spill] sm:$0xff] %v4675_v42 }
 0x1b6   : > { %2017 = vperm.xlu1 %3649, %v4145_v51   ;;  %393 = vperm.xlu0 %3673, %v4167_v57  }
 0x1b8   : > { %v4679_v22 = vpop.permute.xlu1 %1499  ;;  %v4681_v45 = vpop.permute.xlu0 %2045 }
 0x1b9   : > { %7334 = vst [vmem:[#allocation146_spill] sm:$0xff] %v4679_v22  ;;  %7335 = vst [vmem:[#allocation147_spill] sm:$0xff] %v4681_v45 }
 0x1ba   : > { %2025 = vperm.xlu1 %3649, %v4156_v54   ;;  %403 = vperm.xlu0 %3673, %v4178_v60  }
 0x1bc   : > { %v4685_v6 = vpop.permute.xlu1 %1507  ;;  %v4687_v48 = vpop.permute.xlu0 %2053 }
 0x1bd   : > { %7336 = vst [vmem:[#allocation148_spill] sm:$0xff] %v4685_v6  ;;  %7337 = vst [vmem:[#allocation149_spill] sm:$0xff] %v4687_v48 }
 0x1be   : > { %2033 = vperm.xlu1 %3649, %v4167_v57   ;;  %413 = vperm.xlu0 %3673, %v4189_v63  }
 0x1c0   : > { %v4691_v7 = vpop.permute.xlu1 %1515  ;;  %v4693_v51 = vpop.permute.xlu0 %2061 }
 0x1c1   : > { %7338 = vst [vmem:[#allocation150_spill] sm:$0xff] %v4691_v7  ;;  %7339 = vst [vmem:[#allocation151_spill] sm:$0xff] %v4693_v51 }
 0x1c2   : > { %2041 = vperm.xlu1 %3649, %v4178_v60   ;;  %423 = vperm.xlu0 %3673, %v4200_v4  }
 0x1c4   : > { %v4697_v45 = vpop.permute.xlu1 %1523  ;;  %v4699_v54 = vpop.permute.xlu0 %2069 }
 0x1c5   : > { %7340 = vst [vmem:[#allocation152_spill] sm:$0xff] %v4697_v45  ;;  %7341 = vst [vmem:[#allocation153_spill] sm:$0xff] %v4699_v54  ;;  %v7346_v45 = vld [vmem:[#allocation32_spill] sm:$0xff] }
 0x1c6   : > { %2049 = vperm.xlu1 %3649, %v4189_v63   ;;  %433 = vperm.xlu0 %3673, %v4211_v61  }
 0x1c8   : > { %v4703_v48 = vpop.permute.xlu1 %1531  ;;  %v4705_v57 = vpop.permute.xlu0 %2077 }
 0x1c9   : > { %7342 = vst [vmem:[#allocation154_spill] sm:$0xff] %v4703_v48  ;;  %7343 = vst [vmem:[#allocation155_spill] sm:$0xff] %v4705_v57  ;;  %v7349_v48 = vld [vmem:[#allocation35_spill] sm:$0xff] }
 0x1ca   : > { %2057 = vperm.xlu1 %3649, %v4200_v4   ;;  %443 = vperm.xlu0 %3673, %v4222_v59  }
 0x1cc   : > { %v4709_v51 = vpop.permute.xlu1 %1539  ;;  %v4711_v60 = vpop.permute.xlu0 %2085 }
 0x1cd   : > { %7344 = vst [vmem:[#allocation156_spill] sm:$0xff] %v4709_v51  ;;  %7345 = vst [vmem:[#allocation157_spill] sm:$0xff] %v4711_v60  ;;  %v7352_v51 = vld [vmem:[#allocation38_spill] sm:$0xff] }
 0x1ce   : > { %2065 = vperm.xlu1 %3649, %v4211_v61   ;;  %453 = vperm.xlu0 %3673, %v7346_v45  }
 0x1d0   : > { %v4715_v54 = vpop.permute.xlu1 %1547  ;;  %v4717_v63 = vpop.permute.xlu0 %2093 }
 0x1d1   : > { %7347 = vst [vmem:[#allocation32_spill] sm:$0xff] %v4715_v54  ;;  %7348 = vst [vmem:[#allocation158_spill] sm:$0xff] %v4717_v63  ;;  %v7355_v54 = vld [vmem:[#allocation41_spill] sm:$0xff] }
 0x1d2   : > { %2073 = vperm.xlu1 %3649, %v4222_v59   ;;  %463 = vperm.xlu0 %3673, %v7349_v48  }
 0x1d4   : > { %v4721_v57 = vpop.permute.xlu1 %1555  ;;  %v4723_v4 = vpop.permute.xlu0 %2101 }
 0x1d5   : > { %7350 = vst [vmem:[#allocation35_spill] sm:$0xff] %v4721_v57  ;;  %7351 = vst [vmem:[#allocation159_spill] sm:$0xff] %v4723_v4  ;;  %v7358_v57 = vld [vmem:[#allocation44_spill] sm:$0xff] }
 0x1d6   : > { %2081 = vperm.xlu1 %3649, %v7346_v45   ;;  %473 = vperm.xlu0 %3673, %v7352_v51  }
 0x1d8   : > { %v4727_v60 = vpop.permute.xlu1 %1563  ;;  %v4729_v61 = vpop.permute.xlu0 %2109 }
 0x1d9   : > { %7353 = vst [vmem:[#allocation38_spill] sm:$0xff] %v4727_v60  ;;  %7354 = vst [vmem:[#allocation160_spill] sm:$0xff] %v4729_v61  ;;  %v7361_v60 = vld [vmem:[#allocation47_spill] sm:$0xff] }
 0x1da   : > { %2089 = vperm.xlu1 %3649, %v7349_v48   ;;  %483 = vperm.xlu0 %3673, %v7355_v54  }
 0x1dc   : > { %v4733_v63 = vpop.permute.xlu1 %1571  ;;  %v4735_v59 = vpop.permute.xlu0 %2117 }
 0x1dd   : > { %7356 = vst [vmem:[#allocation41_spill] sm:$0xff] %v4733_v63  ;;  %7357 = vst [vmem:[#allocation161_spill] sm:$0xff] %v4735_v59  ;;  %v7364_v63 = vld [vmem:[#allocation50_spill] sm:$0xff] }
 0x1de   : > { %2097 = vperm.xlu1 %3649, %v7352_v51   ;;  %493 = vperm.xlu0 %3673, %v7358_v57  }
 0x1e0   : > { %v4739_v4 = vpop.permute.xlu1 %1579  ;;  %v4741_v45 = vpop.permute.xlu0 %2125 }
 0x1e1   : > { %7359 = vst [vmem:[#allocation44_spill] sm:$0xff] %v4739_v4  ;;  %7360 = vst [vmem:[#allocation162_spill] sm:$0xff] %v4741_v45 }
 0x1e2   : > { %2105 = vperm.xlu1 %3649, %v7355_v54   ;;  %503 = vperm.xlu0 %3673, %v7361_v60  }
 0x1e4   : > { %v4745_v7 = vpop.permute.xlu1 %1587  ;;  %v4747_v48 = vpop.permute.xlu0 %2133 }
 0x1e5   : > { %7362 = vst [vmem:[#allocation47_spill] sm:$0xff] %v4745_v7  ;;  %7363 = vst [vmem:[#allocation163_spill] sm:$0xff] %v4747_v48 }
 0x1e6   : > { %2113 = vperm.xlu1 %3649, %v7358_v57   ;;  %513 = vperm.xlu0 %3673, %v7364_v63   ;;  %v2506_v57 = vld [vmem:[%s6916_s2] sm:$0xff] }
 0x1e8   : > { %v4751_v42 = vpop.permute.xlu1 %1595  ;;  %v4753_v51 = vpop.permute.xlu0 %2137 }
 0x1e9   : > { %7365 = vst [vmem:[#allocation50_spill] sm:$0xff] %v4751_v42  ;;  %7366 = vst [vmem:[#allocation164_spill] sm:$0xff] %v4753_v51 }
 0x1ea   : > { %2121 = vperm.xlu1 %3649, %v7361_v60   ;;  %523 = vperm.xlu0 %3673, %v4310_v47   ;;  %v2538_v60 = vld [vmem:[%s6916_s2 + $0x100] sm:$0xff] }
 0x1ec   : > { %v4757_v6 = vpop.permute.xlu1 %1603  ;;  %v4759_v54 = vpop.permute.xlu0 %2145 }
 0x1ed   : > { %7367 = vst [vmem:[#allocation165_spill] sm:$0xff] %v4757_v6  ;;  %7368 = vst [vmem:[#allocation166_spill] sm:$0xff] %v4759_v54 }
 0x1ee   : > { %2129 = vperm.xlu1 %3649, %v7364_v63   ;;  %533 = vperm.xlu0 %3673, %v4321_v46  }
 0x1f0   : > { %v4763_v21 = vpop.permute.xlu1 %1611  ;;  %v4768_v8 = vpop.permute.xlu0 %2153 }
 0x1f1   : > { %7369 = vst [vmem:[#allocation167_spill] sm:$0xff] %v4763_v21  ;;  %7370 = vst [vmem:[#allocation168_spill] sm:$0xff] %v4768_v8  ;;  %v2539_v8 = vld [vmem:[%s6916_s2 + $0x108] sm:$0xff]  ;;  %v7411_v21 = vld [vmem:[#allocation9_spill] sm:$0xff] }
 0x1f2   : > { %3650 = vset.pattern.permute.xlu1 %v7318_v26  ;;  %543 = vperm.xlu0 %3673, %v4332_v38  }
 0x1f3   : > { %2572 = vperm.xlu1 %3650, %v2506_v57   ;;  %v2509_v57 = vld [vmem:[%s6916_s2 + $0x18] sm:$0xff] }
 0x1f4   : > { %v4772_v47 = vpop.permute.xlu1 %1619  ;;  %v4777_v46 = vpop.permute.xlu0 %2161 }
 0x1f5   : > { %7371 = vst [vmem:[#allocation169_spill] sm:$0xff] %v4772_v47  ;;  %7372 = vst [vmem:[#allocation170_spill] sm:$0xff] %v4777_v46 }
 0x1f6   : > { %553 = vperm.xlu0 %3673, %v4343_v37  }
 0x1f7   : > { %2732 = vperm.xlu1 %3650, %v2538_v60   ;;  %v2541_v60 = vld [vmem:[%s6916_s2 + $0x118] sm:$0xff] }
 0x1f8   : > { %v4780_v63 = vpop.permute.xlu1 %1627  ;;  %v4785_v1 = vpop.permute.xlu0 %2169 }
 0x1f9   : > { %7373 = vst [vmem:[#allocation171_spill] sm:$0xff] %v4780_v63  ;;  %7374 = vst [vmem:[#allocation172_spill] sm:$0xff] %v4785_v1  ;;  %v2516_v63 = vld [vmem:[%s6916_s2 + $0x50] sm:$0xff] }
 0x1fa   : > { %563 = vperm.xlu0 %3673, %v4354_v44  }
 0x1fb   : > { %2737 = vperm.xlu1 %3650, %v2539_v8   ;;  %v2511_v8 = vld [vmem:[%s6916_s2 + $0x28] sm:$0xff] }
 0x1fc   : > { %v4788_v38 = vpop.permute.xlu1 %1635  ;;  %v4793_v46 = vpop.permute.xlu0 %2177 }
 0x1fd   : > { %7375 = vst [vmem:[#allocation173_spill] sm:$0xff] %v4788_v38  ;;  %7376 = vst [vmem:[#allocation174_spill] sm:$0xff] %v4793_v46  ;;  %v2512_v38 = vld [vmem:[%s6916_s2 + $0x30] sm:$0xff] }
 0x1fe   : > { %573 = vperm.xlu0 %3673, %v4365_v43  }
 0x1ff   : > { %2587 = vperm.xlu1 %3650, %v2509_v57   ;;  %v2543_v57 = vld [vmem:[%s6916_s2 + $0x128] sm:$0xff] }
 0x200   : > { %v4796_v37 = vpop.permute.xlu1 %1643  ;;  %v4801_v1 = vpop.permute.xlu0 %2185 }
 0x201   : > { %7377 = vst [vmem:[#allocation175_spill] sm:$0xff] %v4796_v37  ;;  %7378 = vst [vmem:[#allocation176_spill] sm:$0xff] %v4801_v1  ;;  %v4907_v37 = vld [vmem:[%s253_s14] sm:$0xff]  ;;  %s3687_s14 = scalar_lea.vmem %s6869_s9, 32 }
 0x202   : > { %583 = vperm.xlu0 %3673, %v4376_v41   ;;  %p3688_p12 = scmp.ne.s32.totalorder %s6869_s9, %s3687_s14  ;;  %p3695_p2 = scmp.lt.s32.totalorder %s3693_s16, %s3687_s14 }
 0x203   : > { %2747 = vperm.xlu1 %3650, %v2541_v60   ;;  %v2513_v60 = vld [vmem:[%s6916_s2 + $0x38] sm:$0xff] }
 0x204   : > { %v4804_v44 = vpop.permute.xlu1 %1651  ;;  %v4809_v46 = vpop.permute.xlu0 %2193  ;;  %p3689_p13 = pnand %p3688_p12, %p3846_p4  ;;  %p3696_p3 = por %p3695_p2, %p3694_p1 }
 0x205   : > { %7379 = vst [vmem:[#allocation177_spill] sm:$0xff] %v4804_v44  ;;  %7380 = vst [vmem:[#allocation178_spill] sm:$0xff] %v4809_v46 }
 0x206   : > { %593 = vperm.xlu0 %3673, %v4387_v40   ;;  %p3690_p0 = pneg %p3689_p13 }
 0x207   : > { %2597 = vperm.xlu1 %3650, %v2511_v8  }
 0x208   : > { %v4812_v43 = vpop.permute.xlu1 %1659  ;;  %v4817_v1 = vpop.permute.xlu0 %2201  ;;  %p3697_p5 = pnand %p3696_p3, %p3690_p0 }
 0x209   : > { %7381 = vst [vmem:[#allocation179_spill] sm:$0xff] %v4812_v43  ;;  %7382 = vst [vmem:[#allocation180_spill] sm:$0xff] %v4817_v1 }
 0x20a   : > { %603 = vperm.xlu0 %3673, %v4398_v49  }
 0x20b   : > { %2757 = vperm.xlu1 %3650, %v2543_v57  }
 0x20c   : > { %v4820_v41 = vpop.permute.xlu1 %1667  ;;  %v4825_v46 = vpop.permute.xlu0 %2209 }
 0x20d   : > { %7383 = vst [vmem:[#allocation181_spill] sm:$0xff] %v4820_v41  ;;  %7384 = vst [vmem:[#allocation182_spill] sm:$0xff] %v4825_v46  ;;  %v2540_v46 = vld [vmem:[%s6916_s2 + $0x110] sm:$0xff] }
 0x20e   : > { %613 = vperm.xlu0 %3673, %v4409_v50   ;;  %v2544_v50 = vld [vmem:[%s6916_s2 + $0x130] sm:$0xff] }
 0x20f   : > { %2607 = vperm.xlu1 %3650, %v2513_v60  }
 0x210   : > { %v4828_v40 = vpop.permute.xlu1 %1675  ;;  %v4830_v8 = vpop.permute.xlu0 %2217 }
 0x211   : > { %7385 = vst [vmem:[#allocation183_spill] sm:$0xff] %v4828_v40  ;;  %7386 = vst [vmem:[#allocation184_spill] sm:$0xff] %v4830_v8  ;;  %v2546_v40 = vld [vmem:[%s6916_s2 + $0x140] sm:$0xff] }
 0x212   : > { %623 = vperm.xlu0 %3673, %v4420_v52   ;;  %v2507_v52 = vld [vmem:[%s6916_s2 + $0x8] sm:$0xff] }
 0x213   : > { %3651 = vset.pattern.permute.xlu1 %v7322_v30 }
 0x214   : > { %2141 = vperm.xlu1 %3651, %v4011_v24   ;;  %v4835_v49 = vpop.permute.xlu1 %1683  ;;  %v4837_v57 = vpop.permute.xlu0 %2225 }
 0x215   : > { %7387 = vst [vmem:[#allocation185_spill] sm:$0xff] %v4835_v49  ;;  %7388 = vst [vmem:[#allocation186_spill] sm:$0xff] %v4837_v57  ;;  %v2514_v57 = vld [vmem:[%s6916_s2 + $0x40] sm:$0xff]  ;;  %v7082_v49 = vlaneseq }
 0x216   : > { %633 = vperm.xlu0 %3673, %v4431_v53   ;;  %v2508_v53 = vld [vmem:[%s6916_s2 + $0x10] sm:$0xff] }
 0x218   : > { %3652 = vset.pattern.permute.xlu1 %v7318_v26  ;;  %v4844_v60 = vpop.permute.xlu1 %1691 }
 0x219   : > { %7389 = vst [vmem:[#allocation187_spill] sm:$0xff] %v4844_v60  ;;  %2762 = vperm.xlu1 %3652, %v2544_v50   ;;  %v4849_v24 = vpop.permute.xlu0 %323  ;;  %v2515_v50 = vld [vmem:[%s6916_s2 + $0x48] sm:$0xff] }
 0x21a   : > { %7390 = vst [vmem:[#allocation188_spill] sm:$0xff] %v4849_v24  ;;  %2577 = vperm.xlu0 %3673, %v2507_v52   ;;  %v7415_v24 = vld [vmem:[#allocation11_spill] sm:$0xff] }
 0x21c   : > { %v4854_v8 = vpop.permute.xlu1 %1699 }
 0x21d   : > { %7391 = vst [vmem:[#allocation189_spill] sm:$0xff] %v4854_v8  ;;  %2612 = vperm.xlu1 %3652, %v2514_v57   ;;  %v4860_v60 = vpop.permute.xlu0 %328  ;;  %v2510_v57 = vld [vmem:[%s6916_s2 + $0x20] sm:$0xff] }
 0x21e   : > { %7392 = vst [vmem:[#allocation190_spill] sm:$0xff] %v4860_v60  ;;  %2582 = vperm.xlu0 %3673, %v2508_v53  }
 0x221   : > { %2617 = vperm.xlu1 %3652, %v2515_v50   ;;  %v4868_v52 = vpop.permute.xlu1 %1981  ;;  %v4871_v8 = vpop.permute.xlu0 %343  ;;  %v4883_v50 = vshrl.u32 %v7082_v49, 7 }
 0x222   : > { %7393 = vst [vmem:[#allocation191_spill] sm:$0xff] %v4868_v52  ;;  %7394 = vst [vmem:[#allocation192_spill] sm:$0xff] %v4871_v8  ;;  %2742 = vperm.xlu0 %3673, %v2540_v46   ;;  %v2542_v46 = vld [vmem:[%s6916_s2 + $0x120] sm:$0xff]  ;;  %v2517_v8 = vld [vmem:[%s6916_s2 + $0x58] sm:$0xff] }
 0x223   : > { %7397 = vst [vmem:[#allocation195_spill] sm:$0xff] %v4883_v50  ;;  %v4895_v41 = vsub.s32 1, %v4883_v50  ;;  %v1178_v49 = vsub.s32 5, %v4883_v50  ;;  %v4904_v43 = vsub.s32 0, %v4883_v50  ;;  %v648_v44 = vsub.s32 4, %v4883_v50 }
 0x225   : > { %3653 = vset.pattern.permute.xlu1 %v7322_v30  ;;  %v4877_v1 = vpop.permute.xlu1 %1985  ;;  %v4879_v53 = vpop.permute.xlu0 %353  ;;  %7398 = vst [vmem:[#allocation196_spill] sm:$0xff] %v4895_v41  ;;  %7401 = vst [vmem:[#allocation199_spill] sm:$0xff] %v4904_v43  ;;  %v1179_v52 = vrot.slane %v4907_v37, %v1178_v49 }
 0x226   : > { %7395 = vst [vmem:[#allocation193_spill] sm:$0xff] %v4877_v1  ;;  %7396 = vst [vmem:[#allocation194_spill] sm:$0xff] %v4879_v53  ;;  %2149 = vperm.xlu1 %3653, %v4018_v25   ;;  %2592 = vperm.xlu0 %3673, %v2510_v57   ;;  %v2545_v53 = vld [vmem:[%s6916_s2 + $0x138] sm:$0xff] }
 0x229   : > { %v4897_v25 = vpop.permute.xlu1 %1993  ;;  %v4900_v57 = vpop.permute.xlu0 %363 }
 0x22a   : > { %7399 = vst [vmem:[#allocation197_spill] sm:$0xff] %v4897_v25  ;;  %7400 = vst [vmem:[#allocation198_spill] sm:$0xff] %v4900_v57  ;;  %3654 = vset.pattern.permute.xlu1 %v7318_v26  ;;  %2752 = vperm.xlu0 %3673, %v2542_v46   ;;  %v1175_v25 = vrot.slane %v4907_v37, %v4895_v41  ;;  %v649_v46 = vrot.slane %v4907_v37, %v648_v44  ;;  %v4940_v44 = vsub.s32 2, %v4883_v50 }
 0x22b   : > { %2772 = vperm.xlu1 %3654, %v2546_v40   ;;  %v645_v40 = vrot.slane %v4907_v37, %v4904_v43 }
 0x22c   : > { %7407 = vst [vmem:[#allocation205_spill] sm:$0xff] %v4940_v44  ;;  %v4949_v54 = vrot.slane %v649_v46, %v4904_v43 }
 0x22d   : > { %v4917_v1 = vpop.permute.xlu1 %2001  ;;  %v4920_v57 = vpop.permute.xlu0 %373  ;;  %v4946_v47 = vrot.slane %v645_v40, %v4904_v43  ;;  %v1705_v43 = vrot.slane %v4907_v37, %v4940_v44 }
 0x22e   : > { %7402 = vst [vmem:[#allocation200_spill] sm:$0xff] %v4917_v1  ;;  %7403 = vst [vmem:[#allocation201_spill] sm:$0xff] %v4920_v57  ;;  %2602 = vperm.xlu0 %3673, %v2512_v38   ;;  %v4932_v1 = vrot.slane %v1175_v25, %v4895_v41  ;;  %v4937_v57 = vrot.slane %v1179_v52, %v4895_v41  ;;  %v2547_v52 = vld [vmem:[%s6916_s2 + $0x148] sm:$0xff]  ;;  %v7410_v25 = vld [vmem:[#allocation8_spill] sm:$0xff] }
 0x22f   : > { %2622 = vperm.xlu1 %3654, %v2516_v63   ;;  %v1708_v63 = vsub.s32 6, %v4883_v50  ;;  %7409 = vst [vmem:[#allocation207_spill] sm:$0xff] %v4946_v47  ;;  %v666_v41 = vmul.f32 %v4946_v47, %v7410_v25 }
 0x230   : > { %7404 = vst [vmem:[#allocation202_spill] sm:$0xff] %v4932_v1  ;;  %7406 = vst [vmem:[#allocation204_spill] sm:$0xff] %v4937_v57  ;;  %v1197_v46 = vmul.f32 %v4937_v57, %v7411_v21  ;;  %v1200_v48 = vmul.f32 %v4932_v1, %v7415_v24  ;;  %v1212_v4 = vmul.f32 %v4932_v1, %v7434_v36 }
 0x231   : > { %v4934_v49 = vpop.permute.xlu1 %2009  ;;  %v4943_v38 = vpop.permute.xlu0 %383  ;;  %v1709_v51 = vrot.slane %v4907_v37, %v1708_v63  ;;  %v2549_v63 = vld [vmem:[%s6916_s2 + $0x158] sm:$0xff]  ;;  %v1217_v62 = vmul.f32 %v4937_v57, %v7437_v5  ;;  %v1228_v33 = vmul.f32 %v4932_v1, %v7444_v9  ;;  %v1233_v19 = vmul.f32 %v4937_v57, %v7447_v10 }
 0x232   : > { %7405 = vst [vmem:[#allocation203_spill] sm:$0xff] %v4934_v49  ;;  %7408 = vst [vmem:[#allocation206_spill] sm:$0xff] %v4943_v38  ;;  %2767 = vperm.xlu0 %3673, %v2545_v53   ;;  %v667_v49 = vmul.f32 %v4949_v54, %v7410_v25  ;;  %v1196_v38 = vmul.f32 %v4932_v1, %v7411_v21  ;;  %v7413_v53 = vld [vmem:[#allocation10_spill] sm:$0xff] }
 0x233   : > { %2627 = vperm.xlu1 %3654, %v2517_v8   ;;  %v670_v8 = vmul.f32 %v4946_v47, %v7413_v53  ;;  %v671_v25 = vmul.f32 %v4949_v54, %v7413_v53  ;;  %v3676_v21 = vld [vmem:[%s6915_s1 + $0x168] sm:$0xff] }
 0x234   : > { %v5002_v42 = vadd.f32 %v1196_v38, %v666_v41  ;;  %v5004_v59 = vadd.f32 %v1197_v46, %v667_v49  ;;  %v7428_v41 = vld [vmem:[#allocation12_spill] sm:$0xff]  ;;  %v7429_v46 = vld [vmem:[#allocation13_spill] sm:$0xff] }
 0x235   : > { %v4960_v40 = vpop.permute.xlu1 %2017  ;;  %v4969_v60 = vpop.permute.xlu0 %393  ;;  %v5011_v22 = vadd.f32 %v1200_v48, %v670_v8  ;;  %v674_v49 = vmul.f32 %v4946_v47, %v7428_v41  ;;  %v675_v38 = vmul.f32 %v4949_v54, %v7428_v41  ;;  %v1205_v48 = vmul.f32 %v4937_v57, %v7429_v46 }
 0x236   : > { %7412 = vst [vmem:[#allocation8_spill] sm:$0xff] %v4960_v40  ;;  %7414 = vst [vmem:[#allocation9_spill] sm:$0xff] %v4969_v60  ;;  %v1201_v40 = vmul.f32 %v4937_v57, %v7415_v24  ;;  %2777 = vperm.xlu0 %3673, %v2547_v52   ;;  %v7416_v60 = vld [vmem:[#allocation6_spill] sm:$0xff]  ;;  %v7418_v52 = vld [vmem:[#allocation7_spill] sm:$0xff] }
 0x237   : > { %3655 = vset.pattern.permute.xlu1 %v7322_v30  ;;  %v4986_v53 = vmul.f32 %v4946_v47, %v7416_v60  ;;  %v4990_v6 = vmul.f32 %v4949_v54, %v7416_v60  ;;  %v4996_v45 = vmul.f32 %v4932_v1, %v7418_v52  ;;  %7421 = vst [vmem:[#allocation7_spill] sm:$0xff] %v5002_v42  ;;  %7422 = vst [vmem:[#allocation208_spill] sm:$0xff] %v5004_v59  ;;  %v2548_v60 = vld [vmem:[%s6916_s2 + $0x150] sm:$0xff] }
 0x238   : > { %2157 = vperm.xlu1 %3655, %v3676_v21   ;;  %v5000_v21 = vmul.f32 %v4937_v57, %v7418_v52  ;;  %7424 = vst [vmem:[#allocation210_spill] sm:$0xff] %v5011_v22  ;;  %v5019_v52 = vrot.slane %v1709_v51, %v4940_v44  ;;  %v2551_v51 = vld [vmem:[%s6916_s2 + $0x168] sm:$0xff]  ;;  %v7439_v22 = vld [vmem:[#allocation21_spill] sm:$0xff] }
 0x239   : > { %v4992_v24 = vpop.permute.xlu1 %2025  ;;  %7419 = vst [vmem:[#allocation11_spill] sm:$0xff] %v4996_v45  ;;  %v5006_v7 = vpop.permute.xlu0 %403  ;;  %v5016_v45 = vrot.slane %v1705_v43, %v4940_v44  ;;  %v7430_v43 = vld [vmem:[#allocation14_spill] sm:$0xff]  ;;  %v7433_v44 = vld [vmem:[#allocation16_spill] sm:$0xff]  ;;  %v1220_v2 = vmul.f32 %v4932_v1, %v7439_v22  ;;  %v1221_v59 = vmul.f32 %v4937_v57, %v7439_v22  ;;  %v7441_v42 = vld [vmem:[#allocation23_spill] sm:$0xff] }
 0x23a   : > { %7417 = vst [vmem:[#allocation10_spill] sm:$0xff] %v4992_v24  ;;  %7420 = vst [vmem:[#allocation6_spill] sm:$0xff] %v5000_v21  ;;  %v5013_v24 = vadd.f32 %v1201_v40, %v671_v25  ;;  %2787 = vperm.xlu0 %3673, %v2549_v63   ;;  %v678_v40 = vmul.f32 %v4946_v47, %v7430_v43  ;;  %v679_v8 = vmul.f32 %v4949_v54, %v7430_v43  ;;  %v7431_v25 = vld [vmem:[#allocation15_spill] sm:$0xff]  ;;  %v7443_v22 = vld [vmem:[#allocation24_spill] sm:$0xff] }
 0x23b   : > { %7423 = vst [vmem:[#allocation209_spill] sm:$0xff] %v5006_v7  ;;  %7426 = vst [vmem:[#allocation212_spill] sm:$0xff] %v5016_v45  ;;  %v1204_v7 = vmul.f32 %v4932_v1, %v7429_v46  ;;  %v1208_v63 = vmul.f32 %v4932_v1, %v7431_v25  ;;  %v1209_v41 = vmul.f32 %v4937_v57, %v7431_v25  ;;  %v7436_v25 = vld [vmem:[#allocation18_spill] sm:$0xff] }
 0x23c   : > { %7425 = vst [vmem:[#allocation211_spill] sm:$0xff] %v5013_v24  ;;  %7427 = vst [vmem:[#allocation213_spill] sm:$0xff] %v5019_v52  ;;  %3656 = vset.pattern.permute.xlu1 %v7318_v26  ;;  %v682_v21 = vmul.f32 %v4946_v47, %v7433_v44  ;;  %v683_v61 = vmul.f32 %v4949_v54, %v7433_v44  ;;  %v1213_v43 = vmul.f32 %v4937_v57, %v7434_v36  ;;  %v7438_v36 = vld [vmem:[#allocation20_spill] sm:$0xff] }
 0x23d   : > { %2782 = vperm.xlu1 %3656, %v2548_v60   ;;  %v5041_v46 = vpop.permute.xlu1 %2033  ;;  %v5051_v23 = vpop.permute.xlu0 %413  ;;  %v2518_v60 = vld [vmem:[%s6916_s2 + $0x60] sm:$0xff]  ;;  %v687_v27 = vmul.f32 %v4949_v54, %v7436_v25  ;;  %v1216_v44 = vmul.f32 %v4932_v1, %v7437_v5  ;;  %v691_v24 = vmul.f32 %v4949_v54, %v7438_v36  ;;  %v694_v5 = vmul.f32 %v4946_v47, %v7440_v28 }
 0x23e   : > { %7432 = vst [vmem:[#allocation12_spill] sm:$0xff] %v5041_v46  ;;  %7435 = vst [vmem:[#allocation13_spill] sm:$0xff] %v5051_v23  ;;  %v686_v46 = vmul.f32 %v4946_v47, %v7436_v25  ;;  %2797 = vperm.xlu0 %3673, %v2551_v51   ;;  %v690_v23 = vmul.f32 %v4946_v47, %v7438_v36  ;;  %v2553_v25 = vld [vmem:[%s6916_s2 + $0x178] sm:$0xff]  ;;  %v695_v51 = vmul.f32 %v4949_v54, %v7440_v28 }
 0x23f   : > { %v1224_v29 = vmul.f32 %v4932_v1, %v7441_v42  ;;  %v1225_v36 = vmul.f32 %v4937_v57, %v7441_v42  ;;  %v698_v31 = vmul.f32 %v4946_v47, %v7443_v22  ;;  %v699_v35 = vmul.f32 %v4949_v54, %v7443_v22  ;;  %v2519_v42 = vld [vmem:[%s6916_s2 + $0x68] sm:$0xff] }
 0x240   : > { %v1229_v28 = vmul.f32 %v4937_v57, %v7444_v9  ;;  %v1232_v22 = vmul.f32 %v4932_v1, %v7447_v10  ;;  %v5106_v9 = vadd.f32 %v1204_v7, %v674_v49  ;;  %v5110_v11 = vadd.f32 %v1208_v63, %v678_v40 }
 0x241   : > { %2632 = vperm.xlu1 %3656, %v2518_v60   ;;  %v5083_v32 = vpop.permute.xlu1 %2041  ;;  %v5093_v20 = vpop.permute.xlu0 %423  ;;  %v7446_v60 = vld [vmem:[#allocation26_spill] sm:$0xff]  ;;  %v5112_v18 = vadd.f32 %v1209_v41, %v679_v8  ;;  %v5119_v17 = vadd.f32 %v1213_v43, %v683_v61  ;;  %v5121_v14 = vadd.f32 %v1216_v44, %v686_v46  ;;  %v5123_v10 = vadd.f32 %v1217_v62, %v687_v27  ;;  %v7460_v27 = vld [vmem:[#allocation28_spill] sm:$0xff]  ;;  %v7465_v41 = vld [vmem:[#allocation33_spill] sm:$0xff] }
 0x242   : > { %7442 = vst [vmem:[#allocation14_spill] sm:$0xff] %v5083_v32  ;;  %7445 = vst [vmem:[#allocation15_spill] sm:$0xff] %v5093_v20  ;;  %v702_v32 = vmul.f32 %v4946_v47, %v7446_v60  ;;  %v703_v34 = vmul.f32 %v4949_v54, %v7446_v60  ;;  %2807 = vperm.xlu0 %3673, %v2553_v25   ;;  %v5108_v20 = vadd.f32 %v1205_v48, %v675_v38  ;;  %v7466_v44 = vld [vmem:[#allocation34_spill] sm:$0xff] }
 0x243   : > { %v5117_v60 = vadd.f32 %v1212_v4, %v682_v21  ;;  %7448 = vst [vmem:[#allocation16_spill] sm:$0xff] %v5121_v14  ;;  %7449 = vst [vmem:[#allocation17_spill] sm:$0xff] %v5123_v10  ;;  %v5127_v49 = vadd.f32 %v1220_v2, %v690_v23  ;;  %v5129_v38 = vadd.f32 %v1221_v59, %v691_v24  ;;  %v7461_v2 = vld [vmem:[#allocation29_spill] sm:$0xff] }
 0x244   : > { %v5131_v48 = vadd.f32 %v1224_v29, %v694_v5  ;;  %v5133_v40 = vadd.f32 %v1225_v36, %v695_v51  ;;  %v5137_v4 = vadd.f32 %v1228_v33, %v698_v31  ;;  %v5139_v61 = vadd.f32 %v1229_v28, %v699_v35  ;;  %v7462_v33 = vld [vmem:[#allocation30_spill] sm:$0xff]  ;;  %v3677_v36 = vld [vmem:[%s6915_s1 + $0x178] sm:$0xff] }
 0x245   : > { %2637 = vperm.xlu1 %3656, %v2519_v42   ;;  %v5125_v7 = vpop.permute.xlu1 %2049  ;;  %7451 = vst [vmem:[#allocation19_spill] sm:$0xff] %v5127_v49  ;;  %7452 = vst [vmem:[#allocation20_spill] sm:$0xff] %v5129_v38  ;;  %v5135_v8 = vpop.permute.xlu0 %433  ;;  %v5141_v21 = vadd.f32 %v1232_v22, %v702_v32  ;;  %v5143_v62 = vadd.f32 %v1233_v19, %v703_v34  ;;  %v706_v23 = vmul.f32 %v4946_v47, %v7460_v27  ;;  %v2557_v32 = vld [vmem:[%s6916_s2 + $0x198] sm:$0xff]  ;;  %v7463_v34 = vld [vmem:[#allocation31_spill] sm:$0xff] }
 0x246   : > { %7450 = vst [vmem:[#allocation18_spill] sm:$0xff] %v5125_v7  ;;  %7453 = vst [vmem:[#allocation21_spill] sm:$0xff] %v5131_v48  ;;  %2817 = vperm.xlu0 %3673, %v2555_v12   ;;  %v707_v29 = vmul.f32 %v4949_v54, %v7460_v27  ;;  %v1236_v59 = vmul.f32 %v4932_v1, %v7461_v2  ;;  %v1237_v31 = vmul.f32 %v4937_v57, %v7461_v2  ;;  %v7468_v28 = vld [vmem:[#allocation36_spill] sm:$0xff]  ;;  %v7469_v27 = vld [vmem:[#allocation37_spill] sm:$0xff] }
 0x247   : > { %7454 = vst [vmem:[#allocation22_spill] sm:$0xff] %v5133_v40  ;;  %7455 = vst [vmem:[#allocation23_spill] sm:$0xff] %v5135_v8  ;;  %v710_v19 = vmul.f32 %v4946_v47, %v7462_v33  ;;  %v711_v12 = vmul.f32 %v4949_v54, %v7462_v33  ;;  %v1240_v35 = vmul.f32 %v4932_v1, %v7463_v34 }
 0x248   : > { %7456 = vst [vmem:[#allocation24_spill] sm:$0xff] %v5137_v4  ;;  %7457 = vst [vmem:[#allocation25_spill] sm:$0xff] %v5139_v61  ;;  %v1241_v24 = vmul.f32 %v4937_v57, %v7463_v34  ;;  %v714_v46 = vmul.f32 %v4946_v47, %v7465_v41  ;;  %v715_v43 = vmul.f32 %v4949_v54, %v7465_v41  ;;  %v7470_v34 = vld [vmem:[#allocation42_spill] sm:$0xff] }
 0x249   : > { %7458 = vst [vmem:[#allocation26_spill] sm:$0xff] %v5141_v21  ;;  %7459 = vst [vmem:[#allocation27_spill] sm:$0xff] %v5143_v62  ;;  %3657 = vset.pattern.permute.xlu1 %v7322_v30  ;;  %v5165_v63 = vpop.permute.xlu1 %2057  ;;  %v1244_v25 = vmul.f32 %v4932_v1, %v7466_v44  ;;  %v1245_v5 = vmul.f32 %v4937_v57, %v7466_v44  ;;  %v5175_v51 = vpop.permute.xlu0 %443  ;;  %v718_v42 = vmul.f32 %v4946_v47, %v7468_v28  ;;  %v7473_v21 = vld [vmem:[#allocation46_spill] sm:$0xff] }
 0x24a   : > { %7464 = vst [vmem:[#allocation28_spill] sm:$0xff] %v5165_v63  ;;  %7467 = vst [vmem:[#allocation29_spill] sm:$0xff] %v5175_v51  ;;  %2165 = vperm.xlu1 %3657, %v3677_v36   ;;  %v719_v22 = vmul.f32 %v4949_v54, %v7468_v28  ;;  %v1248_v2 = vmul.f32 %v4932_v1, %v7469_v27  ;;  %v1249_v33 = vmul.f32 %v4937_v57, %v7469_v27  ;;  %v7471_v36 = vld [vmem:[#allocation43_spill] sm:$0xff]  ;;  %v7472_v27 = vld [vmem:[#allocation45_spill] sm:$0xff] }
 0x24b   : > { %2827 = vperm.xlu0 %3673, %v2557_v32   ;;  %v726_v41 = vmul.f32 %v4946_v47, %v7470_v34  ;;  %v727_v44 = vmul.f32 %v4949_v54, %v7470_v34  ;;  %v1256_v51 = vmul.f32 %v4932_v1, %v7471_v36  ;;  %v1257_v8 = vmul.f32 %v4937_v57, %v7471_v36  ;;  %v2559_v28 = vld [vmem:[%s6916_s2 + $0x1a8] sm:$0xff]  ;;  %v2550_v32 = vld [vmem:[%s6916_s2 + $0x160] sm:$0xff] }
 0x24c   : > { %v730_v62 = vmul.f32 %v4946_v47, %v7472_v27  ;;  %v731_v34 = vmul.f32 %v4949_v54, %v7472_v27  ;;  %v1260_v63 = vmul.f32 %v4932_v1, %v7473_v21  ;;  %v1261_v36 = vmul.f32 %v4937_v57, %v7473_v21 }
 0x24d   : > { %v5210_v61 = vpop.permute.xlu1 %2065  ;;  %v5212_v4 = vadd.f32 %v1236_v59, %v706_v23  ;;  %v5214_v7 = vadd.f32 %v1237_v31, %v707_v29  ;;  %v5216_v40 = vadd.f32 %v1240_v35, %v710_v19  ;;  %v5218_v48 = vadd.f32 %v1241_v24, %v711_v12  ;;  %v5220_v38 = vpop.permute.xlu0 %453  ;;  %v7484_v23 = vld [vmem:[#allocation39_spill] sm:$0xff]  ;;  %v2561_v19 = vld [vmem:[%s6916_s2 + $0x1b8] sm:$0xff] }
 0x24e   : > { %7474 = vst [vmem:[#allocation30_spill] sm:$0xff] %v5210_v61  ;;  %7479 = vst [vmem:[#allocation37_spill] sm:$0xff] %v5220_v38  ;;  %3658 = vset.pattern.permute.xlu1 %v7318_v26  ;;  %v5223_v27 = vadd.f32 %v1244_v25, %v714_v46  ;;  %v5225_v49 = vadd.f32 %v1245_v5, %v715_v43  ;;  %v5227_v10 = vadd.f32 %v1248_v2, %v718_v42  ;;  %v2520_v12 = vld [vmem:[%s6916_s2 + $0x70] sm:$0xff]  ;;  %v7489_v42 = vld [vmem:[#allocation49_spill] sm:$0xff] }
 0x24f   : > { %7475 = vst [vmem:[#allocation31_spill] sm:$0xff] %v5212_v4  ;;  %7476 = vst [vmem:[#allocation33_spill] sm:$0xff] %v5214_v7  ;;  %2837 = vperm.xlu0 %3673, %v2559_v28   ;;  %2792 = vperm.xlu1 %3658, %v2550_v32   ;;  %v5229_v21 = vadd.f32 %v1249_v33, %v719_v22  ;;  %v5233_v29 = vmul.f32 %v4946_v47, %v7484_v23  ;;  %v7487_v43 = vld [vmem:[#allocation48_spill] sm:$0xff]  ;;  %v7493_v32 = vld [vmem:[#allocation53_spill] sm:$0xff] }
 0x250   : > { %7477 = vst [vmem:[#allocation34_spill] sm:$0xff] %v5216_v40  ;;  %7478 = vst [vmem:[#allocation36_spill] sm:$0xff] %v5218_v48  ;;  %v5237_v59 = vmul.f32 %v4949_v54, %v7484_v23  ;;  %v5239_v31 = vadd.f32 %v1256_v51, %v726_v41  ;;  %v5247_v35 = vadd.f32 %v1257_v8, %v727_v44  ;;  %v7490_v8 = vld [vmem:[#allocation51_spill] sm:$0xff]  ;;  %v7492_v41 = vld [vmem:[#allocation52_spill] sm:$0xff] }
 0x251   : > { %7480 = vst [vmem:[#allocation42_spill] sm:$0xff] %v5223_v27  ;;  %7481 = vst [vmem:[#allocation43_spill] sm:$0xff] %v5225_v49  ;;  %v5249_v24 = vadd.f32 %v1260_v63, %v730_v62  ;;  %v5251_v46 = vadd.f32 %v1261_v36, %v731_v34  ;;  %v734_v25 = vmul.f32 %v4946_v47, %v7487_v43  ;;  %v5255_v5 = vpop.permute.xlu1 %2073  ;;  %v5265_v63 = vpop.permute.xlu0 %463  ;;  %v7494_v23 = vld [vmem:[#allocation54_spill] sm:$0xff]  ;;  %v7498_v49 = vld [vmem:[#allocation56_spill] sm:$0xff] }
 0x252   : > { %7482 = vst [vmem:[#allocation45_spill] sm:$0xff] %v5227_v10  ;;  %7483 = vst [vmem:[#allocation46_spill] sm:$0xff] %v5229_v21  ;;  %v735_v51 = vmul.f32 %v4949_v54, %v7487_v43  ;;  %v1264_v22 = vmul.f32 %v4932_v1, %v7489_v42  ;;  %v1265_v2 = vmul.f32 %v4937_v57, %v7489_v42  ;;  %v5280_v42 = vsub.s32 3, %v4883_v50  ;;  %v7499_v48 = vld [vmem:[#allocation57_spill] sm:$0xff] }
 0x253   : > { %7485 = vst [vmem:[#allocation39_spill] sm:$0xff] %v5233_v29  ;;  %7486 = vst [vmem:[#allocation214_spill] sm:$0xff] %v5237_v59  ;;  %v738_v62 = vmul.f32 %v4946_v47, %v7490_v8  ;;  %v739_v33 = vmul.f32 %v4949_v54, %v7490_v8  ;;  %v1268_v44 = vmul.f32 %v4932_v1, %v7492_v41  ;;  %2847 = vperm.xlu0 %3673, %v2561_v19   ;;  %v2563_v8 = vld [vmem:[%s6916_s2 + $0x1c8] sm:$0xff]  ;;  %v2521_v19 = vld [vmem:[%s6916_s2 + $0x78] sm:$0xff] }
 0x254   : > { %7488 = vst [vmem:[#allocation48_spill] sm:$0xff] %v5255_v5  ;;  %7491 = vst [vmem:[#allocation49_spill] sm:$0xff] %v5265_v63  ;;  %v1269_v28 = vmul.f32 %v4937_v57, %v7492_v41  ;;  %2642 = vperm.xlu1 %3658, %v2520_v12   ;;  %v742_v34 = vmul.f32 %v4946_v47, %v7493_v32  ;;  %v743_v36 = vmul.f32 %v4949_v54, %v7493_v32  ;;  %v7496_v41 = vld [vmem:[#allocation55_spill] sm:$0xff] }
 0x255   : > { %v1272_v43 = vmul.f32 %v4932_v1, %v7494_v23  ;;  %7495 = vst [vmem:[#allocation51_spill] sm:$0xff] %v5280_v42  ;;  %v1273_v12 = vmul.f32 %v4937_v57, %v7494_v23  ;;  %v746_v32 = vmul.f32 %v4946_v47, %v7496_v41  ;;  %v747_v21 = vmul.f32 %v4949_v54, %v7496_v41  ;;  %v5295_v63 = vpop.permute.xlu1 %2081  ;;  %v7500_v23 = vld [vmem:[#allocation58_spill] sm:$0xff]  ;;  %v5305_v7 = vpop.permute.xlu0 %473 }
 0x256   : > { %v2238_v10 = vsub.s32 7, %v4883_v50  ;;  %7497 = vst [vmem:[#allocation52_spill] sm:$0xff] %v5295_v63  ;;  %v1276_v27 = vmul.f32 %v4932_v1, %v7498_v49  ;;  %v1277_v38 = vmul.f32 %v4937_v57, %v7498_v49  ;;  %v750_v40 = vmul.f32 %v4946_v47, %v7499_v48  ;;  %7501 = vst [vmem:[#allocation53_spill] sm:$0xff] %v5305_v7 }
 0x257   : > { %v1280_v5 = vmul.f32 %v4932_v1, %v7500_v23  ;;  %v5307_v4 = vadd.f32 %v1264_v22, %v734_v25  ;;  %v751_v41 = vmul.f32 %v4949_v54, %v7499_v48  ;;  %v1281_v50 = vmul.f32 %v4937_v57, %v7500_v23  ;;  %2857 = vperm.xlu0 %3673, %v2563_v8   ;;  %v2565_v25 = vld [vmem:[%s6916_s2 + $0x1d8] sm:$0xff] }
 0x258   : > { %2647 = vperm.xlu1 %3658, %v2521_v19   ;;  %v5313_v63 = vadd.f32 %v1265_v2, %v735_v51  ;;  %v5315_v49 = vadd.f32 %v1268_v44, %v738_v62  ;;  %v5317_v61 = vadd.f32 %v1269_v28, %v739_v33  ;;  %v2235_v59 = vrot.slane %v4907_v37, %v5280_v42 }
 0x259   : > { %v5324_v22 = vadd.f32 %v1272_v43, %v742_v34  ;;  %v5326_v48 = vadd.f32 %v1273_v12, %v743_v36  ;;  %v1194_v8 = vmul.f32 %v4932_v1, %v4449_v3  ;;  %v2239_v51 = vrot.slane %v4907_v37, %v2238_v10  ;;  %v5331_v2 = vpop.permute.xlu1 %2089  ;;  %v5341_v34 = vpop.permute.xlu0 %483  ;;  %v7506_v43 = vld [vmem:[#allocation59_spill] sm:$0xff]  ;;  %v7508_v37 = vld [vmem:[#allocation77_spill] sm:$0xff] }
 0x25a   : > { %7502 = vst [vmem:[#allocation54_spill] sm:$0xff] %v5331_v2  ;;  %v5333_v62 = vadd.f32 %v1276_v27, %v746_v32  ;;  %v5335_v33 = vadd.f32 %v1277_v38, %v747_v21  ;;  %v5337_v44 = vadd.f32 %v1280_v5, %v750_v40  ;;  %v1195_v28 = vmul.f32 %v4937_v57, %v4449_v3  ;;  %v7509_v3 = vld [vmem:[#allocation78_spill] sm:$0xff]  ;;  %v7511_v32 = vld [vmem:[#allocation79_spill] sm:$0xff] }
 0x25b   : > { %v5343_v36 = vadd.f32 %v1281_v50, %v751_v41  ;;  %v5347_v19 = vmul.f32 %v4946_v47, %v7506_v43  ;;  %v5351_v10 = vmul.f32 %v4932_v1, %v7508_v37  ;;  %2867 = vperm.xlu0 %3673, %v2565_v25   ;;  %v5356_v38 = vmul.f32 %v4937_v57, %v7508_v37  ;;  %v3678_v21 = vld [vmem:[%s6915_s1 + $0x188] sm:$0xff] }
 0x25c   : > { %7503 = vst [vmem:[#allocation55_spill] sm:$0xff] %v5335_v33  ;;  %7504 = vst [vmem:[#allocation56_spill] sm:$0xff] %v5337_v44  ;;  %3659 = vset.pattern.permute.xlu1 %v7322_v30  ;;  %v5360_v40 = vmul.f32 %v5016_v45, %v7509_v3  ;;  %v5364_v50 = vmul.f32 %v5019_v52, %v7509_v3  ;;  %v5367_v27 = vrot.slane %v2235_v59, %v5280_v42  ;;  %v2567_v5 = vld [vmem:[%s6916_s2 + $0x1e8] sm:$0xff]  ;;  %v7516_v3 = vld [vmem:[#allocation80_spill] sm:$0xff] }
 0x25d   : > { %7505 = vst [vmem:[#allocation57_spill] sm:$0xff] %v5343_v36  ;;  %7507 = vst [vmem:[#allocation58_spill] sm:$0xff] %v5347_v19  ;;  %2173 = vperm.xlu1 %3659, %v3678_v21   ;;  %v5376_v12 = vadd.f32 %v1194_v8, %v4986_v53  ;;  %v5380_v23 = vmul.f32 %v5016_v45, %v7511_v32  ;;  %v5384_v59 = vmul.f32 %v5019_v52, %v7511_v32  ;;  %v5389_v25 = vpop.permute.xlu1 %2097  ;;  %v5406_v32 = vpop.permute.xlu0 %493  ;;  %v7532_v44 = vld [vmem:[#allocation83_spill] sm:$0xff] }
 0x25e   : > { %7510 = vst [vmem:[#allocation77_spill] sm:$0xff] %v5364_v50  ;;  %v5387_v41 = vrot.slane %v2239_v51, %v5280_v42  ;;  %7514 = vst [vmem:[#allocation215_spill] sm:$0xff] %v5389_v25  ;;  %v5392_v37 = vadd.f32 %v1195_v28, %v4990_v6  ;;  %v5396_v53 = vmul.f32 %v4932_v1, %v4455_v55  ;;  %v2552_v51 = vld [vmem:[%s6916_s2 + $0x170] sm:$0xff]  ;;  %v7522_v25 = vld [vmem:[#allocation81_spill] sm:$0xff] }
 0x25f   : > { %7512 = vst [vmem:[#allocation78_spill] sm:$0xff] %v5380_v23  ;;  %7513 = vst [vmem:[#allocation79_spill] sm:$0xff] %v5384_v59  ;;  %v5400_v8 = vmul.f32 %v4937_v57, %v4455_v55  ;;  %v5404_v21 = vmul.f32 %v5016_v45, %v7516_v3  ;;  %v5413_v6 = vmul.f32 %v5019_v52, %v7516_v3  ;;  %2877 = vperm.xlu0 %3673, %v2567_v5   ;;  %v7527_v42 = vld [vmem:[#allocation82_spill] sm:$0xff]  ;;  %v2568_v5 = vld [vmem:[%s6916_s2 + $0x1f0] sm:$0xff] }
 0x260   : > { %7518 = vst [vmem:[#allocation217_spill] sm:$0xff] %v5406_v32  ;;  %v5417_v28 = vmul.f32 %v4932_v1, %v4461_v39  ;;  %v5421_v55 = vmul.f32 %v4937_v57, %v4461_v39  ;;  %v5425_v7 = vmul.f32 %v5016_v45, %v7522_v25  ;;  %v5429_v2 = vmul.f32 %v5019_v52, %v7522_v25  ;;  %v3147_v32 = vld [vmem:[#allocation2] sm:$0x1]  ;;  %v7582_v23 = vld [vmem:[#allocation208_spill] sm:$0xff] }
 0x261   : > { %7515 = vst [vmem:[#allocation216_spill] sm:$0xff] %v5400_v8  ;;  %7517 = vst [vmem:[#allocation80_spill] sm:$0xff] %v5404_v21  ;;  %v5433_v3 = vmul.f32 %v4932_v1, %v4467_v0  ;;  %v5437_v29 = vmul.f32 %v4937_v57, %v4467_v0  ;;  %v5441_v39 = vmul.f32 %v5016_v45, %v7527_v42  ;;  %3660 = vset.pattern.permute.xlu1 %v7318_v26  ;;  %v5463_v43 = vpop.permute.xlu1 %2105  ;;  %v7581_v21 = vld [vmem:[#allocation135_spill] sm:$0xff] }
 0x262   : > { %7519 = vst [vmem:[#allocation218_spill] sm:$0xff] %v5413_v6  ;;  %7520 = vst [vmem:[#allocation219_spill] sm:$0xff] %v5417_v28  ;;  %v5449_v25 = vmul.f32 %v5019_v52, %v7527_v42  ;;  %v5453_v36 = vmul.f32 %v4932_v1, %v4473_v58  ;;  %v5457_v0 = vmul.f32 %v4937_v57, %v4473_v58  ;;  %2802 = vperm.xlu1 %3660, %v2552_v51   ;;  %v2522_v51 = vld [vmem:[%s6916_s2 + $0x80] sm:$0xff]  ;;  %v7595_v28 = vld [vmem:[#allocation44_spill] sm:$0xff] }
 0x263   : > { %7521 = vst [vmem:[#allocation220_spill] sm:$0xff] %v5421_v55  ;;  %7523 = vst [vmem:[#allocation81_spill] sm:$0xff] %v5425_v7  ;;  %v5461_v19 = vmul.f32 %v5016_v45, %v7532_v44  ;;  %v5467_v14 = vmul.f32 %v5019_v52, %v7532_v44  ;;  %v5471_v42 = vmul.f32 %v4932_v1, %v4479_v56  ;;  %2882 = vperm.xlu0 %3673, %v2568_v5  }
 0x264   : > { %7524 = vst [vmem:[#allocation221_spill] sm:$0xff] %v5429_v2  ;;  %7525 = vst [vmem:[#allocation222_spill] sm:$0xff] %v5433_v3  ;;  %v5475_v33 = vmul.f32 %v4937_v57, %v4479_v56  ;;  %v5479_v58 = vmul.f32 %v5016_v45, %v4535_v15  ;;  %v5488_v44 = vmul.f32 %v5019_v52, %v4535_v15  ;;  %v7584_v3 = vld [vmem:[#allocation137_spill] sm:$0xff] }
 0x265   : > { %7526 = vst [vmem:[#allocation223_spill] sm:$0xff] %v5437_v29  ;;  %7528 = vst [vmem:[#allocation82_spill] sm:$0xff] %v5441_v39  ;;  %v5496_v56 = vmul.f32 %v4937_v57, %v4539_v13  ;;  %v2260_v59 = vmul.f32 %v5367_v27, %v7581_v21  ;;  %v2264_v55 = vmul.f32 %v5367_v27, %v7584_v3 }
 0x266   : > { %7529 = vst [vmem:[#allocation224_spill] sm:$0xff] %v5449_v25  ;;  %7530 = vst [vmem:[#allocation225_spill] sm:$0xff] %v5453_v36  ;;  %v7540_v25 = vld [vmem:[#allocation102_spill] sm:$0xff]  ;;  %2652 = vperm.xlu1 %3660, %v2522_v51  }
 0x267   : > { %7531 = vst [vmem:[#allocation226_spill] sm:$0xff] %v5457_v0  ;;  %7533 = vst [vmem:[#allocation83_spill] sm:$0xff] %v5461_v19  ;;  %v5481_v19 = vpop.permute.xlu0 %503  ;;  %v5508_v15 = vmul.f32 %v4932_v1, %v7540_v25  ;;  %v5512_v39 = vmul.f32 %v4937_v57, %v7540_v25  ;;  %v2523_v51 = vld [vmem:[%s6916_s2 + $0x88] sm:$0xff]  ;;  %3150 = vperm.xlu0 %3673, %v3147_v32  }
 0x268   : > { %7534 = vst [vmem:[#allocation227_spill] sm:$0xff] %v5467_v14  ;;  %7535 = vst [vmem:[#allocation228_spill] sm:$0xff] %v5471_v42  ;;  %v5492_v14 = vmul.f32 %v4932_v1, %v4539_v13  ;;  %v5504_v42 = vmul.f32 %v5019_v52, %v4541_v16  ;;  %v7570_v36 = vld [vmem:[#allocation138_spill] sm:$0xff] }
 0x269   : > { %7536 = vst [vmem:[#allocation229_spill] sm:$0xff] %v5475_v33  ;;  %7537 = vst [vmem:[#allocation230_spill] sm:$0xff] %v5481_v19  ;;  %v5500_v33 = vmul.f32 %v5016_v45, %v4541_v16  ;;  %v7543_v19 = vld [vmem:[#allocation103_spill] sm:$0xff] }
 0x26a   : > { %7539 = vst [vmem:[#allocation232_spill] sm:$0xff] %v5504_v42  ;;  %7541 = vst [vmem:[#allocation102_spill] sm:$0xff] %v5508_v15  ;;  %v5516_v13 = vmul.f32 %v5016_v45, %v7543_v19  ;;  %v5520_v5 = vmul.f32 %v5019_v52, %v7543_v19  ;;  %v7549_v15 = vld [vmem:[#allocation105_spill] sm:$0xff]  ;;  %v7553_v19 = vld [vmem:[#allocation106_spill] sm:$0xff]  ;;  %2657 = vperm.xlu1 %3660, %v2523_v51  }
 0x26b   : > { %7538 = vst [vmem:[#allocation231_spill] sm:$0xff] %v5500_v33  ;;  %7542 = vst [vmem:[#allocation233_spill] sm:$0xff] %v5512_v39  ;;  %v7546_v33 = vld [vmem:[#allocation104_spill] sm:$0xff]  ;;  %v5532_v25 = vmul.f32 %v5016_v45, %v7549_v15  ;;  %v5534_v39 = vpop.permute.xlu1 %2113 }
 0x26c   : > { %7544 = vst [vmem:[#allocation103_spill] sm:$0xff] %v5516_v13  ;;  %7545 = vst [vmem:[#allocation234_spill] sm:$0xff] %v5520_v5  ;;  %v5524_v16 = vmul.f32 %v4932_v1, %v7546_v33  ;;  %v5528_v42 = vmul.f32 %v4937_v57, %v7546_v33  ;;  %v5538_v13 = vmul.f32 %v5019_v52, %v7549_v15  ;;  %v7556_v33 = vld [vmem:[#allocation107_spill] sm:$0xff] }
 0x26d   : > { %7550 = vst [vmem:[#allocation105_spill] sm:$0xff] %v5532_v25  ;;  %7551 = vst [vmem:[#allocation236_spill] sm:$0xff] %v5534_v39  ;;  %v5542_v5 = vmul.f32 %v4932_v1, %v7553_v19  ;;  %v5552_v25 = vpop.permute.xlu0 %513  ;;  %v5559_v15 = vmul.f32 %v5019_v52, %v7556_v33  ;;  %v7564_v39 = vld [vmem:[#allocation109_spill] sm:$0xff] }
 0x26e   : > { %7547 = vst [vmem:[#allocation104_spill] sm:$0xff] %v5524_v16  ;;  %7548 = vst [vmem:[#allocation235_spill] sm:$0xff] %v5528_v42  ;;  %v5546_v16 = vmul.f32 %v4937_v57, %v7553_v19  ;;  %v5550_v42 = vmul.f32 %v5016_v45, %v7556_v33  ;;  %v5577_v33 = vmul.f32 %v5019_v52, %v7564_v39  ;;  %3661 = vset.pattern.permute.xlu1 %v7322_v30 }
 0x26f   : > { %7552 = vst [vmem:[#allocation237_spill] sm:$0xff] %v5538_v13  ;;  %7554 = vst [vmem:[#allocation106_spill] sm:$0xff] %v5542_v5  ;;  %v7560_v13 = vld [vmem:[#allocation108_spill] sm:$0xff] }
 0x270   : > { %7555 = vst [vmem:[#allocation238_spill] sm:$0xff] %v5546_v16  ;;  %7557 = vst [vmem:[#allocation107_spill] sm:$0xff] %v5550_v42  ;;  %v5563_v5 = vmul.f32 %v4932_v1, %v7560_v13  ;;  %v5567_v19 = vmul.f32 %v4937_v57, %v7560_v13  ;;  %v7563_v16 = vld [vmem:[#allocation136_spill] sm:$0xff]  ;;  %v7568_v13 = vld [vmem:[#allocation110_spill] sm:$0xff] }
 0x271   : > { %7558 = vst [vmem:[#allocation239_spill] sm:$0xff] %v5552_v25  ;;  %7559 = vst [vmem:[#allocation240_spill] sm:$0xff] %v5559_v15  ;;  %v1726_v42 = vmul.f32 %v5016_v45, %v7563_v16  ;;  %v5573_v25 = vmul.f32 %v5016_v45, %v7564_v39  ;;  %v7567_v15 = vld [vmem:[#allocation134_spill] sm:$0xff]  ;;  %v1731_v39 = vmul.f32 %v5019_v52, %v7570_v36 }
 0x272   : > { %7561 = vst [vmem:[#allocation108_spill] sm:$0xff] %v5563_v5  ;;  %7562 = vst [vmem:[#allocation241_spill] sm:$0xff] %v5567_v19  ;;  %v1724_v0 = vmul.f32 %v5016_v45, %v7567_v15  ;;  %v1727_v5 = vmul.f32 %v5019_v52, %v7563_v16  ;;  %v5585_v19 = vmul.f32 %v4932_v1, %v7568_v13  ;;  %v7573_v16 = vld [vmem:[#allocation131_spill] sm:$0xff] }
 0x273   : > { %7565 = vst [vmem:[#allocation136_spill] sm:$0xff] %v5573_v25  ;;  %7566 = vst [vmem:[#allocation109_spill] sm:$0xff] %v5577_v33  ;;  %v1725_v32 = vmul.f32 %v5019_v52, %v7567_v15  ;;  %v1730_v25 = vmul.f32 %v5016_v45, %v7570_v36  ;;  %v5593_v33 = vpop.permute.xlu1 %2121  ;;  %v5597_v6 = vmul.f32 %v4937_v57, %v7568_v13  ;;  %v5611_v36 = vpop.permute.xlu0 %523  ;;  %v7578_v13 = vld [vmem:[#allocation133_spill] sm:$0xff] }
 0x274   : > { %7569 = vst [vmem:[#allocation134_spill] sm:$0xff] %v5585_v19  ;;  %7571 = vst [vmem:[#allocation110_spill] sm:$0xff] %v5593_v33  ;;  %v5601_v1 = vmul.f32 %v5367_v27, %v7573_v16  ;;  %v5605_v15 = vmul.f32 %v5387_v41, %v7573_v16  ;;  %v7576_v19 = vld [vmem:[#allocation132_spill] sm:$0xff]  ;;  %v2256_v57 = vmul.f32 %v5367_v27, %v7578_v13  ;;  %v7579_v33 = vld [vmem:[#allocation7_spill] sm:$0xff] }
 0x275   : > { %7572 = vst [vmem:[#allocation138_spill] sm:$0xff] %v5597_v6  ;;  %v5609_v2 = vmul.f32 %v5016_v45, %v7576_v19  ;;  %7577 = vst [vmem:[#allocation132_spill] sm:$0xff] %v5611_v36  ;;  %v5615_v51 = vmul.f32 %v5019_v52, %v7576_v19  ;;  %v2257_v6 = vmul.f32 %v5387_v41, %v7578_v13  ;;  %v7585_v13 = vld [vmem:[#allocation210_spill] sm:$0xff] }
 0x276   : > { %7574 = vst [vmem:[#allocation131_spill] sm:$0xff] %v5601_v1  ;;  %7575 = vst [vmem:[#allocation242_spill] sm:$0xff] %v5605_v15  ;;  %v1854_v7 = vadd.f32 %v1726_v42, %v7579_v33  ;;  %v5623_v16 = vadd.f32 %v1724_v0, %v5376_v12  ;;  %v2261_v36 = vmul.f32 %v5387_v41, %v7581_v21  ;;  %v7586_v42 = vld [vmem:[#allocation211_spill] sm:$0xff]  ;;  %v7588_v21 = vld [vmem:[#allocation140_spill] sm:$0xff] }
 0x277   : > { %v1855_v19 = vadd.f32 %v1727_v5, %v7582_v23  ;;  %v5631_v29 = vadd.f32 %v1725_v32, %v5392_v37  ;;  %v1858_v15 = vadd.f32 %v1730_v25, %v7585_v13  ;;  %v1859_v33 = vadd.f32 %v1731_v39, %v7586_v42  ;;  %v5638_v12 = vpop.permute.xlu1 %2129  ;;  %v5648_v32 = vpop.permute.xlu0 %533  ;;  %v3679_v25 = vld [vmem:[%s6915_s1 + $0x198] sm:$0xff] }
 0x278   : > { %7580 = vst [vmem:[#allocation133_spill] sm:$0xff] %v5623_v16  ;;  %7587 = vst [vmem:[#allocation135_spill] sm:$0xff] %v5638_v12  ;;  %v2265_v0 = vmul.f32 %v5387_v41, %v7584_v3  ;;  %v1734_v23 = vmul.f32 %v5016_v45, %v7588_v21  ;;  %v724_v37 = vmul.f32 %v4946_v47, %v5341_v34  ;;  %2181 = vperm.xlu1 %3661, %v3679_v25   ;;  %v7590_v3 = vld [vmem:[#allocation142_spill] sm:$0xff]  ;;  %v7593_v16 = vld [vmem:[#allocation144_spill] sm:$0xff] }
 0x279   : > { %7583 = vst [vmem:[#allocation7_spill] sm:$0xff] %v5631_v29  ;;  %v725_v5 = vmul.f32 %v4949_v54, %v5341_v34  ;;  %7589 = vst [vmem:[#allocation208_spill] sm:$0xff] %v5648_v32  ;;  %v1735_v39 = vmul.f32 %v5019_v52, %v7588_v21  ;;  %v1738_v13 = vmul.f32 %v5016_v45, %v7590_v3  ;;  %v7592_v29 = vld [vmem:[#allocation139_spill] sm:$0xff]  ;;  %v2554_v21 = vld [vmem:[%s6916_s2 + $0x180] sm:$0xff] }
 0x27a   : > { %v1739_v42 = vmul.f32 %v5019_v52, %v7590_v3  ;;  %v5659_v12 = vadd.f32 %v2256_v57, %v1854_v7  ;;  %v2268_v34 = vmul.f32 %v5367_v27, %v7592_v29  ;;  %v2269_v32 = vmul.f32 %v5387_v41, %v7592_v29 }
 0x27b   : > { %v1742_v25 = vmul.f32 %v5016_v45, %v7593_v16  ;;  %v5670_v1 = vadd.f32 %v2257_v6, %v1855_v19  ;;  %v1786_v3 = vmul.f32 %v5016_v45, %v7595_v28  ;;  %v1787_v57 = vmul.f32 %v5019_v52, %v7595_v28  ;;  %v5685_v19 = vpop.permute.xlu0 %543  ;;  %v7597_v28 = vld [vmem:[#allocation141_spill] sm:$0xff] }
 0x27c   : > { %7591 = vst [vmem:[#allocation137_spill] sm:$0xff] %v5659_v12  ;;  %v5676_v7 = vadd.f32 %v2260_v59, %v1858_v15  ;;  %v5678_v12 = vadd.f32 %v2261_v36, %v1859_v33  ;;  %v1862_v29 = vadd.f32 %v1734_v23, %v5106_v9  ;;  %v1743_v50 = vmul.f32 %v5019_v52, %v7593_v16  ;;  %v7598_v23 = vld [vmem:[#allocation160_spill] sm:$0xff] }
 0x27d   : > { %7594 = vst [vmem:[#allocation210_spill] sm:$0xff] %v5670_v1  ;;  %v1382_v8 = vadd.f32 %v5492_v14, %v724_v37  ;;  %v1383_v6 = vadd.f32 %v5496_v56, %v725_v5  ;;  %7596 = vst [vmem:[#allocation211_spill] sm:$0xff] %v5685_v19  ;;  %3662 = vset.pattern.permute.xlu1 %v7318_v26  ;;  %v5688_v1 = vpop.permute.xlu1 %2572  ;;  %v1863_v59 = vadd.f32 %v1735_v39, %v5108_v20  ;;  %v2524_v20 = vld [vmem:[%s6916_s2 + $0x90] sm:$0xff]  ;;  %v7644_v19 = vld [vmem:[#allocation222_spill] sm:$0xff] }
 0x27e   : > { %v2272_v15 = vmul.f32 %v5367_v27, %v7597_v28  ;;  %v1866_v9 = vadd.f32 %v1738_v13, %v5110_v11  ;;  %v1867_v36 = vadd.f32 %v1739_v42, %v5112_v18  ;;  %2812 = vperm.xlu1 %3662, %v2554_v21   ;;  %v2273_v14 = vmul.f32 %v5387_v41, %v7597_v28  ;;  %v7600_v21 = vld [vmem:[#allocation146_spill] sm:$0xff] }
 0x27f   : > { %v1870_v56 = vadd.f32 %v1742_v25, %v5117_v60  ;;  %v2314_v16 = vmul.f32 %v5367_v27, %v5463_v43  ;;  %v2315_v33 = vmul.f32 %v5387_v41, %v5463_v43  ;;  %v2316_v11 = vmul.f32 %v5367_v27, %v7598_v23  ;;  %v5714_v13 = vpop.permute.xlu0 %553 }
 0x280   : > { %v2317_v18 = vmul.f32 %v5387_v41, %v7598_v23  ;;  %v1914_v37 = vadd.f32 %v1786_v3, %v5239_v31  ;;  %v1915_v60 = vadd.f32 %v1787_v57, %v5247_v35  ;;  %v1871_v5 = vadd.f32 %v1743_v50, %v5119_v17  ;;  %7599 = vst [vmem:[#allocation140_spill] sm:$0xff] %v5714_v13  ;;  %v7602_v17 = vld [vmem:[#allocation47_spill] sm:$0xff]  ;;  %v7605_v57 = vld [vmem:[#allocation161_spill] sm:$0xff]  ;;  %v7642_v13 = vld [vmem:[#allocation242_spill] sm:$0xff] }
 0x281   : > { %v1912_v39 = vadd.f32 %v5479_v58, %v1382_v8  ;;  %v1913_v43 = vadd.f32 %v5488_v44, %v1383_v6  ;;  %v2733_v42 = vpop.permute.xlu1 %2732  ;;  %v5716_v25 = vadd.f32 %v2264_v55, %v1862_v29  ;;  %v5720_v28 = vmul.f32 %v5016_v45, %v7600_v21  ;;  %v2525_v55 = vld [vmem:[%s6916_s2 + $0x98] sm:$0xff] }
 0x282   : > { %2662 = vperm.xlu1 %3662, %v2524_v20   ;;  %v5722_v23 = vadd.f32 %v2265_v0, %v1863_v59  ;;  %v5724_v31 = vadd.f32 %v2268_v34, %v1866_v9  ;;  %v5726_v35 = vadd.f32 %v2269_v32, %v1867_v36  ;;  %v1790_v50 = vmul.f32 %v5016_v45, %v7602_v17  ;;  %v7608_v20 = vld [vmem:[#allocation50_spill] sm:$0xff] }
 0x283   : > { %7601 = vst [vmem:[#allocation142_spill] sm:$0xff] %v5720_v28  ;;  %v1791_v8 = vmul.f32 %v5019_v52, %v7602_v17  ;;  %v2442_v58 = vadd.f32 %v2314_v16, %v1912_v39  ;;  %v2443_v44 = vadd.f32 %v2315_v33, %v1913_v43  ;;  %v5737_v0 = vmul.f32 %v5019_v52, %v7600_v21  ;;  %v5743_v59 = vpop.permute.xlu0 %563  ;;  %v7645_v28 = vld [vmem:[#allocation223_spill] sm:$0xff] }
 0x284   : > { %v2444_v34 = vadd.f32 %v2316_v11, %v1914_v37  ;;  %v2445_v3 = vadd.f32 %v2317_v18, %v1915_v60  ;;  %v5739_v32 = vadd.f32 %v2272_v15, %v1870_v56  ;;  %v2320_v29 = vmul.f32 %v5367_v27, %v7605_v57  ;;  %7606 = vst [vmem:[#allocation44_spill] sm:$0xff] %v5743_v59  ;;  %v7609_v56 = vld [vmem:[#allocation162_spill] sm:$0xff] }
 0x285   : > { %7603 = vst [vmem:[#allocation139_spill] sm:$0xff] %v5737_v0  ;;  %v2954_v6 = vadd.f32 %v2733_v42, %v2442_v58  ;;  %v2738_v9 = vpop.permute.xlu1 %2737  ;;  %v2955_v36 = vadd.f32 %v2733_v42, %v2443_v44  ;;  %v5745_v16 = vadd.f32 %v2273_v14, %v1871_v5  ;;  %v2321_v33 = vmul.f32 %v5387_v41, %v7605_v57  ;;  %v7610_v5 = vld [vmem:[#allocation165_spill] sm:$0xff]  ;;  %v7613_v57 = vld [vmem:[#allocation188_spill] sm:$0xff] }
 0x286   : > { %7604 = vst [vmem:[#allocation144_spill] sm:$0xff] %v5739_v32  ;;  %v1794_v39 = vmul.f32 %v5016_v45, %v7608_v20  ;;  %v2956_v11 = vadd.f32 %v2738_v9, %v2444_v34  ;;  %2667 = vperm.xlu1 %3662, %v2525_v55   ;;  %v2957_v15 = vadd.f32 %v2738_v9, %v2445_v3  ;;  %v7611_v55 = vld [vmem:[#allocation163_spill] sm:$0xff] }
 0x287   : > { %7607 = vst [vmem:[#allocation141_spill] sm:$0xff] %v5745_v16  ;;  %v2324_v18 = vmul.f32 %v5367_v27, %v7609_v56  ;;  %v1918_v37 = vadd.f32 %v1790_v50, %v5249_v24  ;;  %v1919_v60 = vadd.f32 %v1791_v8, %v5251_v46  ;;  %v1795_v14 = vmul.f32 %v5019_v52, %v7608_v20  ;;  %v5765_v24 = vpop.permute.xlu0 %573  ;;  %v7673_v16 = vld [vmem:[#allocation224_spill] sm:$0xff] }
 0x288   : > { %v1798_v43 = vmul.f32 %v5016_v45, %v7610_v5  ;;  %v1799_v42 = vmul.f32 %v5019_v52, %v7610_v5  ;;  %v3085_v21 = vmax.f32 %v2957_v15, 0.0  ;;  %v3084_v17 = vmax.f32 %v2956_v11, 0.0  ;;  %7612 = vst [vmem:[#allocation160_spill] sm:$0xff] %v5765_v24  ;;  %v7614_v5 = vld [vmem:[#allocation190_spill] sm:$0xff]  ;;  %v7615_v24 = vld [vmem:[#allocation164_spill] sm:$0xff] }
 0x289   : > { %v2325_v58 = vmul.f32 %v5387_v41, %v7609_v56  ;;  %v2328_v44 = vmul.f32 %v5367_v27, %v7611_v55  ;;  %v5767_v46 = vpop.permute.xlu1 %2587  ;;  %v3083_v50 = vmax.f32 %v2955_v36, 0.0  ;;  %v3082_v8 = vmax.f32 %v2954_v6, 0.0  ;;  %v3680_v36 = vld [vmem:[%s6915_s1 + $0x1a8] sm:$0xff] }
 0x28a   : > { %v2329_v34 = vmul.f32 %v5387_v41, %v7611_v55  ;;  %v1922_v3 = vadd.f32 %v1794_v39, %v5307_v4  ;;  %v660_v9 = vmul.f32 %v4946_v47, %v7613_v57  ;;  %v661_v20 = vmul.f32 %v4949_v54, %v7613_v57  ;;  %3663 = vset.pattern.permute.xlu1 %v7322_v30 }
 0x28b   : > { %v1923_v11 = vadd.f32 %v1795_v14, %v5313_v63  ;;  %2189 = vperm.xlu1 %3663, %v3680_v36   ;;  %v3515_v6 = vpack.c.bf16 %v3085_v21, %v3083_v50  ;;  %v5781_v15 = vadd.f32 %v2320_v29, %v1918_v37  ;;  %v3517_v56 = vpack.c.bf16 %v3084_v17, %v3082_v8  ;;  %v7616_v14 = vld [vmem:[#allocation167_spill] sm:$0xff]  ;;  %v5799_v37 = vpop.permute.xlu0 %583  ;;  %v7619_v21 = vld [vmem:[#allocation6_spill] sm:$0xff] }
 0x28c   : > { %v1926_v4 = vadd.f32 %v1798_v43, %v5315_v49  ;;  %v1927_v39 = vadd.f32 %v1799_v42, %v5317_v61  ;;  %v662_v55 = vmul.f32 %v4946_v47, %v7614_v5  ;;  %v5787_v57 = vadd.f32 %v2321_v33, %v1919_v60  ;;  %7617 = vst [vmem:[#allocation146_spill] sm:$0xff] %v5799_v37  ;;  %v2556_v33 = vld [vmem:[%s6916_s2 + $0x190] sm:$0xff]  ;;  %v7620_v8 = vld [vmem:[#allocation166_spill] sm:$0xff] }
 0x28d   : > { %v5791_v63 = vmul.f32 %v5367_v27, %v7615_v24  ;;  %v1802_v36 = vmul.f32 %v5016_v45, %v7616_v14  ;;  %v1803_v29 = vmul.f32 %v5019_v52, %v7616_v14  ;;  %v663_v49 = vmul.f32 %v4949_v54, %v7614_v5  ;;  %3516 = vmatprep.subr.bf16.mxu0 %v3515_v6  ;;  %v5801_v61 = vpop.permute.xlu1 %2747  ;;  %v7618_v43 = vld [vmem:[#allocation11_spill] sm:$0xff]  ;;  %v7623_v14 = vld [vmem:[#allocation169_spill] sm:$0xff] }
 0x28e   : > { %v5808_v60 = vmul.f32 %v5387_v41, %v7615_v24  ;;  %v1318_v42 = vadd.f32 %v7618_v43, %v660_v9  ;;  %v1319_v17 = vadd.f32 %v7619_v21, %v661_v20  ;;  %3518 = vmatpush1.bf16.msra.mxu0 %v3517_v56  ;;  %v5812_v50 = vadd.f32 %v2324_v18, %v1922_v3  ;;  %v7624_v20 = vld [vmem:[#allocation192_spill] sm:$0xff] }
 0x28f   : > { %v5816_v6 = vmul.f32 %v5367_v27, %v7620_v8  ;;  %v5820_v5 = vmul.f32 %v5387_v41, %v7620_v8  ;;  %v1806_v37 = vmul.f32 %v5016_v45, %v7623_v14  ;;  %3664 = vset.pattern.permute.xlu1 %v7318_v26  ;;  %v5825_v24 = vadd.f32 %v2325_v58, %v1923_v11 }
 0x290   : > { %v1320_v9 = vadd.f32 %v5351_v10, %v662_v55  ;;  %v668_v18 = vmul.f32 %v4946_v47, %v7624_v20  ;;  %2822 = vperm.xlu1 %3664, %v2556_v33   ;;  %v5830_v3 = vadd.f32 %v2328_v44, %v1926_v4  ;;  %v5832_v56 = vadd.f32 %v2329_v34, %v1927_v39  ;;  %v5843_v10 = vpop.permute.xlu0 %593  ;;  %v2526_v44 = vld [vmem:[%s6916_s2 + $0xa0] sm:$0xff]  ;;  %v7634_v33 = vld [vmem:[#allocation191_spill] sm:$0xff] }
 0x291   : > { %7621 = vst [vmem:[#allocation47_spill] sm:$0xff] %v5816_v6  ;;  %7622 = vst [vmem:[#allocation161_spill] sm:$0xff] %v5820_v5  ;;  %v5835_v43 = vadd.f32 %v1802_v36, %v5324_v22  ;;  %v5838_v21 = vadd.f32 %v1803_v29, %v5326_v48  ;;  %v1321_v8 = vadd.f32 %v5356_v38, %v663_v49  ;;  %v5845_v11 = vpop.permute.xlu1 %2597  ;;  %v7631_v34 = vld [vmem:[#allocation194_spill] sm:$0xff]  ;;  %v7657_v6 = vld [vmem:[#allocation225_spill] sm:$0xff] }
 0x292   : > { %7625 = vst [vmem:[#allocation50_spill] sm:$0xff] %v5830_v3  ;;  %7626 = vst [vmem:[#allocation162_spill] sm:$0xff] %v5832_v56  ;;  %v669_v58 = vmul.f32 %v4949_v54, %v7624_v20  ;;  %v5852_v22 = vmul.f32 %v5019_v52, %v7623_v14  ;;  %v672_v48 = vmul.f32 %v4946_v47, %v7631_v34  ;;  %v7633_v36 = vld [vmem:[#allocation198_spill] sm:$0xff]  ;;  %v7675_v3 = vld [vmem:[#allocation235_spill] sm:$0xff] }
 0x293   : > { %7627 = vst [vmem:[#allocation165_spill] sm:$0xff] %v5835_v43  ;;  %7628 = vst [vmem:[#allocation163_spill] sm:$0xff] %v5838_v21  ;;  %v1848_v38 = vadd.f32 %v5609_v2, %v1318_v42  ;;  %v1849_v4 = vadd.f32 %v5615_v51, %v1319_v17  ;;  %v5859_v39 = vadd.f32 %v1806_v37, %v5333_v62  ;;  %v7635_v37 = vld [vmem:[#allocation216_spill] sm:$0xff]  ;;  %v7636_v17 = vld [vmem:[#allocation193_spill] sm:$0xff] }
 0x294   : > { %7629 = vst [vmem:[#allocation188_spill] sm:$0xff] %v5843_v10  ;;  %7630 = vst [vmem:[#allocation190_spill] sm:$0xff] %v5852_v22  ;;  %v673_v55 = vmul.f32 %v4949_v54, %v7631_v34  ;;  %v676_v29 = vmul.f32 %v4946_v47, %v7633_v36  ;;  %v677_v49 = vmul.f32 %v4949_v54, %v7633_v36  ;;  %2672 = vperm.xlu1 %3664, %v2526_v44   ;;  %v5878_v36 = vpop.permute.xlu0 %603  ;;  %v7639_v44 = vld [vmem:[#allocation219_spill] sm:$0xff]  ;;  %v7659_v22 = vld [vmem:[#allocation217_spill] sm:$0xff] }
 0x295   : > { %7632 = vst [vmem:[#allocation164_spill] sm:$0xff] %v5859_v39  ;;  %v2252_v14 = vmul.f32 %v5367_v27, %v7634_v33  ;;  %v2253_v2 = vmul.f32 %v5387_v41, %v7634_v33  ;;  %v1326_v51 = vadd.f32 %v5396_v53, %v668_v18  ;;  %v1850_v62 = vadd.f32 %v5360_v40, %v1320_v9  ;;  %v5880_v10 = vpop.permute.xlu1 %2757  ;;  %v2527_v33 = vld [vmem:[%s6916_s2 + $0xa8] sm:$0xff]  ;;  %v7638_v53 = vld [vmem:[#allocation77_spill] sm:$0xff] }
 0x296   : > { %v1327_v42 = vadd.f32 %v7635_v37, %v669_v58  ;;  %v2254_v20 = vmul.f32 %v5367_v27, %v7636_v17  ;;  %v2255_v34 = vmul.f32 %v5387_v41, %v7636_v17  ;;  %7637 = vst [vmem:[#allocation167_spill] sm:$0xff] %v5878_v36  ;;  %v1851_v18 = vadd.f32 %v7638_v53, %v1321_v8  ;;  %v7640_v9 = vld [vmem:[#allocation197_spill] sm:$0xff]  ;;  %v7641_v37 = vld [vmem:[#allocation131_spill] sm:$0xff]  ;;  %v7643_v36 = vld [vmem:[#allocation220_spill] sm:$0xff] }
 0x297   : > { %v1330_v40 = vadd.f32 %v7639_v44, %v672_v48  ;;  %v2258_v58 = vmul.f32 %v5367_v27, %v7640_v9  ;;  %v5890_v59 = vadd.f32 %v7641_v37, %v1848_v38  ;;  %v5893_v17 = vadd.f32 %v7642_v13, %v1849_v4  ;;  %v7646_v53 = vld [vmem:[#allocation201_spill] sm:$0xff]  ;;  %v7647_v13 = vld [vmem:[#allocation78_spill] sm:$0xff] }
 0x298   : > { %v1331_v52 = vadd.f32 %v7643_v36, %v673_v55  ;;  %v2259_v45 = vmul.f32 %v5387_v41, %v7640_v9  ;;  %v1334_v0 = vadd.f32 %v7644_v19, %v676_v29  ;;  %v1335_v8 = vadd.f32 %v7645_v28, %v677_v49  ;;  %2677 = vperm.xlu1 %3664, %v2527_v33   ;;  %v5907_v37 = vpop.permute.xlu0 %613  ;;  %v7649_v19 = vld [vmem:[#allocation133_spill] sm:$0xff]  ;;  %v7650_v28 = vld [vmem:[#allocation7_spill] sm:$0xff]  ;;  %v7653_v33 = vld [vmem:[#allocation80_spill] sm:$0xff] }
 0x299   : > { %v680_v48 = vmul.f32 %v4946_v47, %v7646_v53  ;;  %v681_v44 = vmul.f32 %v4949_v54, %v7646_v53  ;;  %v5904_v38 = vadd.f32 %v2252_v14, %v1850_v62  ;;  %v1856_v4 = vadd.f32 %v7647_v13, %v1326_v51  ;;  %7648 = vst [vmem:[#allocation11_spill] sm:$0xff] %v5907_v37  ;;  %v5909_v55 = vpop.permute.xlu1 %2607  ;;  %v7651_v9 = vld [vmem:[#allocation79_spill] sm:$0xff]  ;;  %v7652_v53 = vld [vmem:[#allocation200_spill] sm:$0xff]  ;;  %v7655_v37 = vld [vmem:[#allocation221_spill] sm:$0xff] }
 0x29a   : > { %v5911_v36 = vadd.f32 %v2253_v2, %v1851_v18  ;;  %v5914_v29 = vadd.f32 %v2254_v20, %v7649_v19  ;;  %v5917_v49 = vadd.f32 %v2255_v34, %v7650_v28  ;;  %v1857_v5 = vadd.f32 %v7651_v9, %v1327_v42  ;;  %v7654_v2 = vld [vmem:[#allocation81_spill] sm:$0xff]  ;;  %v7656_v34 = vld [vmem:[#allocation218_spill] sm:$0xff] }
 0x29b   : > { %v2262_v14 = vmul.f32 %v5367_v27, %v7652_v53  ;;  %v2263_v51 = vmul.f32 %v5387_v41, %v7652_v53  ;;  %v5924_v62 = vadd.f32 %v2258_v58, %v1856_v4  ;;  %v1860_v13 = vadd.f32 %v7653_v33, %v1330_v40  ;;  %v7658_v9 = vld [vmem:[#allocation226_spill] sm:$0xff]  ;;  %v7660_v40 = vld [vmem:[#allocation203_spill] sm:$0xff] }
 0x29c   : > { %v1864_v18 = vadd.f32 %v7654_v2, %v1334_v0  ;;  %v1865_v20 = vadd.f32 %v7655_v37, %v1335_v8  ;;  %v5929_v19 = vadd.f32 %v2259_v45, %v1857_v5  ;;  %v1861_v28 = vadd.f32 %v7656_v34, %v1331_v52  ;;  %3665 = vset.pattern.permute.xlu1 %v7322_v30  ;;  %v7661_v5 = vld [vmem:[#allocation230_spill] sm:$0xff]  ;;  %v5947_v8 = vpop.permute.xlu0 %623 }
 0x29d   : > { %v1338_v42 = vadd.f32 %v7657_v6, %v680_v48  ;;  %v1339_v39 = vadd.f32 %v7658_v9, %v681_v44  ;;  %v728_v32 = vmul.f32 %v4946_v47, %v7659_v22  ;;  %v729_v58 = vmul.f32 %v4949_v54, %v7659_v22  ;;  %7662 = vst [vmem:[#allocation6_spill] sm:$0xff] %v5947_v8  ;;  %v3681_v22 = vld [vmem:[%s6915_s1 + $0x1b8] sm:$0xff]  ;;  %v5956_v37 = vpop.permute.xlu1 %2141  ;;  %v7666_v2 = vld [vmem:[#allocation206_spill] sm:$0xff] }
 0x29e   : > { %v2266_v0 = vmul.f32 %v5367_v27, %v7660_v40  ;;  %v2267_v45 = vmul.f32 %v5387_v41, %v7660_v40  ;;  %v732_v52 = vmul.f32 %v4946_v47, %v7661_v5  ;;  %v733_v6 = vmul.f32 %v4949_v54, %v7661_v5  ;;  %2197 = vperm.xlu1 %3665, %v3681_v22   ;;  %v7663_v48 = vld [vmem:[#allocation8_spill] sm:$0xff]  ;;  %v7669_v40 = vld [vmem:[#allocation239_spill] sm:$0xff]  ;;  %v7672_v8 = vld [vmem:[#allocation82_spill] sm:$0xff] }
 0x29f   : > { %v2270_v44 = vmul.f32 %v5367_v27, %v7663_v48  ;;  %v2271_v4 = vmul.f32 %v5387_v41, %v7663_v48  ;;  %v5958_v53 = vadd.f32 %v2262_v14, %v1860_v13  ;;  %v5960_v33 = vadd.f32 %v2263_v51, %v1861_v28  ;;  %v2558_v14 = vld [vmem:[%s6916_s2 + $0x1a0] sm:$0xff] }
 0x2a0   : > { %v5964_v34 = vmul.f32 %v4946_v47, %v7666_v2  ;;  %v5968_v9 = vmul.f32 %v4949_v54, %v7666_v2  ;;  %v736_v5 = vmul.f32 %v4946_v47, %v7669_v40  ;;  %v737_v22 = vmul.f32 %v4949_v54, %v7669_v40  ;;  %v7670_v51 = vld [vmem:[#allocation102_spill] sm:$0xff]  ;;  %v7671_v28 = vld [vmem:[#allocation233_spill] sm:$0xff]  ;;  %v7674_v2 = vld [vmem:[#allocation104_spill] sm:$0xff]  ;;  %v5983_v43 = vpop.permute.xlu0 %633 }
 0x2a1   : > { %7664 = vst [vmem:[#allocation166_spill] sm:$0xff] %v5958_v53  ;;  %7665 = vst [vmem:[#allocation169_spill] sm:$0xff] %v5960_v33  ;;  %v1386_v13 = vadd.f32 %v7670_v51, %v728_v32  ;;  %v1387_v48 = vadd.f32 %v7671_v28, %v729_v58  ;;  %v1869_v56 = vadd.f32 %v7673_v16, %v1339_v39  ;;  %v7677_v53 = vld [vmem:[#allocation236_spill] sm:$0xff] }
 0x2a2   : > { %7667 = vst [vmem:[#allocation192_spill] sm:$0xff] %v5964_v34  ;;  %7668 = vst [vmem:[#allocation194_spill] sm:$0xff] %v5968_v9  ;;  %v1868_v34 = vadd.f32 %v7672_v8, %v1338_v42  ;;  %v1390_v9 = vadd.f32 %v7674_v2, %v732_v52  ;;  %v1391_v21 = vadd.f32 %v7675_v3, %v733_v6  ;;  %3666 = vset.pattern.permute.xlu1 %v7318_v26  ;;  %v7680_v3 = vld [vmem:[#allocation106_spill] sm:$0xff]  ;;  %v7686_v2 = vld [vmem:[#allocation103_spill] sm:$0xff] }
 0x2a3   : > { %7676 = vst [vmem:[#allocation198_spill] sm:$0xff] %v5983_v43  ;;  %v5986_v40 = vadd.f32 %v2266_v0, %v1864_v18  ;;  %v5988_v33 = vadd.f32 %v2267_v45, %v1865_v20  ;;  %v2318_v32 = vmul.f32 %v5367_v27, %v7677_v53  ;;  %v2319_v42 = vmul.f32 %v5387_v41, %v7677_v53  ;;  %v7681_v52 = vld [vmem:[#allocation238_spill] sm:$0xff]  ;;  %v6004_v0 = vpop.permute.xlu1 %2762  ;;  %v2528_v45 = vld [vmem:[%s6916_s2 + $0xb0] sm:$0xff] }
 0x2a4   : > { %2832 = vperm.xlu1 %3666, %v2558_v14   ;;  %v5994_v16 = vadd.f32 %v2270_v44, %v1868_v34  ;;  %v5996_v39 = vadd.f32 %v2271_v4, %v1869_v56  ;;  %v1394_v58 = vadd.f32 %v7680_v3, %v736_v5  ;;  %v1395_v6 = vadd.f32 %v7681_v52, %v737_v22  ;;  %v7682_v8 = vld [vmem:[#allocation110_spill] sm:$0xff]  ;;  %v7683_v44 = vld [vmem:[#allocation132_spill] sm:$0xff]  ;;  %v7684_v53 = vld [vmem:[#allocation231_spill] sm:$0xff]  ;;  %v2578_v51 = vpop.permute.xlu0 %2577 }
 0x2a5   : > { %v2322_v18 = vmul.f32 %v5367_v27, %v7682_v8  ;;  %v2323_v20 = vmul.f32 %v5387_v41, %v7682_v8  ;;  %v740_v56 = vmul.f32 %v4946_v47, %v7683_v44  ;;  %v741_v4 = vmul.f32 %v4949_v54, %v7683_v44  ;;  %v7685_v5 = vld [vmem:[#allocation232_spill] sm:$0xff]  ;;  %v7687_v52 = vld [vmem:[#allocation234_spill] sm:$0xff] }
 0x2a6   : > { %7678 = vst [vmem:[#allocation191_spill] sm:$0xff] %v5994_v16  ;;  %7679 = vst [vmem:[#allocation216_spill] sm:$0xff] %v5996_v39  ;;  %v1916_v34 = vadd.f32 %v7684_v53, %v1386_v13  ;;  %v1917_v22 = vadd.f32 %v7685_v5, %v1387_v48  ;;  %v2890_v14 = vadd.f32 %v5688_v1, %v5890_v59  ;;  %v7688_v53 = vld [vmem:[#allocation105_spill] sm:$0xff] }
 0x2a7   : > { %v2891_v28 = vadd.f32 %v5688_v1, %v5893_v17  ;;  %v1920_v3 = vadd.f32 %v7686_v2, %v1390_v9  ;;  %v1921_v8 = vadd.f32 %v7687_v52, %v1391_v21  ;;  %v2892_v43 = vadd.f32 %v2578_v51, %v5904_v38  ;;  %v7689_v5 = vld [vmem:[#allocation237_spill] sm:$0xff]  ;;  %v6025_v59 = vpop.permute.xlu1 %2612  ;;  %v7690_v38 = vld [vmem:[#allocation108_spill] sm:$0xff] }
 0x2a8   : > { %v2893_v16 = vadd.f32 %v2578_v51, %v5911_v36  ;;  %2682 = vperm.xlu1 %3666, %v2528_v45   ;;  %v2446_v44 = vadd.f32 %v2318_v32, %v1916_v34  ;;  %v2447_v13 = vadd.f32 %v2319_v42, %v1917_v22  ;;  %v1924_v48 = vadd.f32 %v7688_v53, %v1394_v58  ;;  %v2529_v1 = vld [vmem:[%s6916_s2 + $0xb8] sm:$0xff]  ;;  %v2583_v51 = vpop.permute.xlu0 %2582  ;;  %v7694_v53 = vld [vmem:[#allocation135_spill] sm:$0xff] }
 0x2a9   : > { %v1925_v39 = vadd.f32 %v7689_v5, %v1395_v6  ;;  %v6030_v17 = vadd.f32 %v2322_v18, %v1920_v3  ;;  %v6032_v21 = vadd.f32 %v2323_v20, %v1921_v8  ;;  %v1398_v9 = vadd.f32 %v7690_v38, %v740_v56  ;;  %v7691_v36 = vld [vmem:[#allocation241_spill] sm:$0xff]  ;;  %v7693_v6 = vld [vmem:[#allocation210_spill] sm:$0xff]  ;;  %v7695_v20 = vld [vmem:[#allocation208_spill] sm:$0xff] }
 0x2aa   : > { %v1399_v45 = vadd.f32 %v7691_v36, %v741_v4  ;;  %v3020_v32 = vmax.f32 %v2892_v43, 0.0  ;;  %v3021_v42 = vmax.f32 %v2893_v16, 0.0  ;;  %v7692_v34 = vld [vmem:[#allocation137_spill] sm:$0xff]  ;;  %v2897_v22 = vadd.f32 %v5767_v46, %v7693_v6 }
 0x2ab   : > { %v2896_v58 = vadd.f32 %v5767_v46, %v7692_v34  ;;  %v3019_v2 = vmax.f32 %v2891_v28, 0.0  ;;  %v3018_v52 = vmax.f32 %v2890_v14, 0.0  ;;  %v2326_v18 = vmul.f32 %v5367_v27, %v7694_v53  ;;  %v6050_v4 = vpop.permute.xlu1 %2617  ;;  %v7696_v34 = vld [vmem:[#allocation107_spill] sm:$0xff] }
 0x2ac   : > { %v744_v3 = vmul.f32 %v4946_v47, %v7695_v20  ;;  %v2894_v56 = vadd.f32 %v2583_v51, %v5914_v29  ;;  %v2895_v43 = vadd.f32 %v2583_v51, %v5917_v49  ;;  %2687 = vperm.xlu1 %3666, %v2529_v1   ;;  %v745_v16 = vmul.f32 %v4949_v54, %v7695_v20  ;;  %v2743_v36 = vpop.permute.xlu0 %2742  ;;  %v7697_v51 = vld [vmem:[#allocation240_spill] sm:$0xff]  ;;  %v7698_v20 = vld [vmem:[#allocation134_spill] sm:$0xff] }
 0x2ad   : > { %v2960_v46 = vadd.f32 %v5801_v61, %v5781_v15  ;;  %v3451_v14 = vpack.c.bf16 %v3021_v42, %v3019_v2  ;;  %v3453_v28 = vpack.c.bf16 %v3020_v32, %v3018_v52  ;;  %v2327_v8 = vmul.f32 %v5387_v41, %v7694_v53  ;;  %v7699_v2 = vld [vmem:[#allocation138_spill] sm:$0xff] }
 0x2ae   : > { %v2961_v5 = vadd.f32 %v5801_v61, %v5787_v57  ;;  %v3022_v29 = vmax.f32 %v2894_v56, 0.0  ;;  %v3023_v38 = vmax.f32 %v2895_v43, 0.0  ;;  %v3024_v49 = vmax.f32 %v2896_v58, 0.0  ;;  %v3682_v61 = vld [vmem:[%s6915_s1 + $0x1c8] sm:$0xff] }
 0x2af   : > { %v3025_v1 = vmax.f32 %v2897_v22, 0.0  ;;  %3452 = vmatprep.subr.bf16.mxu1 %v3451_v14  ;;  %v1928_v6 = vadd.f32 %v7696_v34, %v1398_v9  ;;  %v1929_v15 = vadd.f32 %v7697_v51, %v1399_v45  ;;  %v1402_v47 = vadd.f32 %v7698_v20, %v744_v3 }
 0x2b0   : > { %v2958_v42 = vadd.f32 %v2743_v36, %v2446_v44  ;;  %v2959_v32 = vadd.f32 %v2743_v36, %v2447_v13  ;;  %3454 = vmatpush1.bf16.msra.mxu1 %v3453_v28  ;;  %3667 = vset.pattern.permute.xlu1 %v7322_v30  ;;  %v1403_v52 = vadd.f32 %v7699_v2, %v745_v16  ;;  %v3088_v57 = vmax.f32 %v2960_v46, 0.0  ;;  %v6066_v13 = vpop.permute.xlu1 %2149  ;;  %v2593_v46 = vpop.permute.xlu0 %2592 }
 0x2b1   : > { %2205 = vperm.xlu1 %3667, %v3682_v61   ;;  %v3455_v58 = vpack.c.bf16 %v3025_v1, %v3023_v38  ;;  %v3457_v22 = vpack.c.bf16 %v3024_v49, %v3022_v29  ;;  %v3089_v9 = vmax.f32 %v2961_v5, 0.0  ;;  %v2900_v45 = vadd.f32 %v5845_v11, %v5676_v7  ;;  %v2560_v7 = vld [vmem:[%s6916_s2 + $0x1b0] sm:$0xff]  ;;  %v2531_v61 = vld [vmem:[%s6916_s2 + $0xc8] sm:$0xff] }
 0x2b2   : > { %v3086_v53 = vmax.f32 %v2958_v42, 0.0  ;;  %v3087_v44 = vmax.f32 %v2959_v32, 0.0  ;;  %v2901_v3 = vadd.f32 %v5845_v11, %v5678_v12  ;;  %v2964_v56 = vadd.f32 %v5880_v10, %v5812_v50 }
 0x2b3   : > { %v2965_v43 = vadd.f32 %v5880_v10, %v5825_v24  ;;  %v2454_v16 = vadd.f32 %v2326_v18, %v1924_v48  ;;  %3456 = vmatprep.subr.bf16.mxu1 %v3455_v58  ;;  %v2898_v14 = vadd.f32 %v2593_v46, %v5924_v62  ;;  %v2899_v28 = vadd.f32 %v2593_v46, %v5929_v19  ;;  %v7700_v10 = vld [vmem:[#allocation136_spill] sm:$0xff]  ;;  %v7701_v19 = vld [vmem:[#allocation109_spill] sm:$0xff] }
 0x2b4   : > { %3458 = vmatpush1.bf16.msra.mxu1 %v3457_v22  ;;  %v3519_v5 = vpack.c.bf16 %v3089_v9, %v3087_v44  ;;  %v3521_v12 = vpack.c.bf16 %v3088_v57, %v3086_v53  ;;  %v2455_v11 = vadd.f32 %v2327_v8, %v1925_v39  ;;  %v6081_v50 = vadd.f32 %v5791_v63, %v1928_v6  ;;  %v2753_v1 = vpop.permute.xlu0 %2752  ;;  %v7702_v22 = vld [vmem:[#allocation166_spill] sm:$0xff] }
 0x2b5   : > { %3668 = vset.pattern.permute.xlu1 %v7318_v26  ;;  %v6084_v24 = vadd.f32 %v5808_v60, %v1929_v15  ;;  %v6087_v48 = vadd.f32 %v7700_v10, %v1402_v47  ;;  %v3028_v18 = vmax.f32 %v2900_v45, 0.0  ;;  %v3026_v29 = vmax.f32 %v2898_v14, 0.0  ;;  %v2773_v60 = vpop.permute.xlu1 %2772  ;;  %v2530_v47 = vld [vmem:[%s6916_s2 + $0xc0] sm:$0xff] }
 0x2b6   : > { %v3027_v62 = vmax.f32 %v2899_v28, 0.0  ;;  %3520 = vmatprep.subr.bf16.mxu0 %v3519_v5  ;;  %2842 = vperm.xlu1 %3668, %v2560_v7   ;;  %v6090_v38 = vadd.f32 %v7701_v19, %v1403_v52  ;;  %v3029_v39 = vmax.f32 %v2901_v3, 0.0  ;;  %v3092_v8 = vmax.f32 %v2964_v56, 0.0  ;;  %v7703_v45 = vld [vmem:[#allocation169_spill] sm:$0xff]  ;;  %v7705_v3 = vld [vmem:[#allocation163_spill] sm:$0xff]  ;;  %v7706_v28 = vld [vmem:[#allocation216_spill] sm:$0xff] }
 0x2b7   : > { %v3093_v49 = vmax.f32 %v2965_v43, 0.0  ;;  %v2904_v63 = vadd.f32 %v5909_v55, %v5716_v25  ;;  %3522 = vmatpush1.bf16.msra.mxu0 %v3521_v12  ;;  %v2905_v36 = vadd.f32 %v5909_v55, %v5722_v23  ;;  %v2909_v34 = vadd.f32 %v6050_v4, %v5726_v35  ;;  %v7707_v10 = vld [vmem:[#allocation50_spill] sm:$0xff]  ;;  %v7709_v19 = vld [vmem:[#allocation141_spill] sm:$0xff] }
 0x2b8   : > { %v2962_v6 = vadd.f32 %v2753_v1, %v6030_v17  ;;  %v2963_v51 = vadd.f32 %v2753_v1, %v6032_v21  ;;  %v2332_v25 = vmul.f32 %v5367_v27, %v5956_v37  ;;  %v2333_v15 = vmul.f32 %v5387_v41, %v5956_v37  ;;  %v2603_v37 = vpop.permute.xlu0 %2602 }
 0x2b9   : > { %v3459_v20 = vpack.c.bf16 %v3029_v39, %v3027_v62  ;;  %v3461_v42 = vpack.c.bf16 %v3028_v18, %v3026_v29  ;;  %v2966_v32 = vadd.f32 %v6004_v0, %v2454_v16  ;;  %v2907_v23 = vadd.f32 %v6025_v59, %v5988_v33  ;;  %v2623_v57 = vpop.permute.xlu1 %2622  ;;  %v7708_v29 = vld [vmem:[#allocation162_spill] sm:$0xff] }
 0x2ba   : > { %v3090_v55 = vmax.f32 %v2962_v6, 0.0  ;;  %v3091_v2 = vmax.f32 %v2963_v51, 0.0  ;;  %2692 = vperm.xlu1 %3668, %v2530_v47   ;;  %v3032_v35 = vmax.f32 %v2904_v63, 0.0  ;;  %v2967_v17 = vadd.f32 %v6004_v0, %v2455_v11  ;;  %v7710_v6 = vld [vmem:[#allocation144_spill] sm:$0xff] }
 0x2bb   : > { %v2906_v21 = vadd.f32 %v6025_v59, %v5986_v40  ;;  %v2908_v52 = vadd.f32 %v6050_v4, %v5724_v31  ;;  %3460 = vmatprep.subr.bf16.mxu1 %v3459_v20  ;;  %v3033_v33 = vmax.f32 %v2905_v36, 0.0  ;;  %v3037_v58 = vmax.f32 %v2909_v34, 0.0  ;;  %v7704_v40 = vld [vmem:[#allocation165_spill] sm:$0xff] }
 0x2bc   : > { %v2902_v9 = vadd.f32 %v2603_v37, %v7702_v22  ;;  %v2903_v53 = vadd.f32 %v2603_v37, %v7703_v45  ;;  %3462 = vmatpush1.bf16.msra.mxu1 %v3461_v42  ;;  %v3523_v0 = vpack.c.bf16 %v3093_v49, %v3091_v2  ;;  %v3525_v44 = vpack.c.bf16 %v3092_v8, %v3090_v55  ;;  %v2768_v12 = vpop.permute.xlu0 %2767  ;;  %v7711_v42 = vld [vmem:[#allocation191_spill] sm:$0xff]  ;;  %v7713_v37 = vld [vmem:[#allocation190_spill] sm:$0xff] }
 0x2bd   : > { %v2460_v59 = vadd.f32 %v2332_v25, %v7704_v40  ;;  %v2461_v31 = vadd.f32 %v2333_v15, %v7705_v3  ;;  %v3094_v4 = vmax.f32 %v2966_v32, 0.0  ;;  %v3035_v56 = vmax.f32 %v2907_v23, 0.0  ;;  %v2628_v11 = vpop.permute.xlu1 %2627  ;;  %v2562_v22 = vld [vmem:[%s6916_s2 + $0x1c0] sm:$0xff] }
 0x2be   : > { %v3030_v43 = vmax.f32 %v2902_v9, 0.0  ;;  %v3031_v16 = vmax.f32 %v2903_v53, 0.0  ;;  %2697 = vperm.xlu1 %3668, %v2531_v61   ;;  %v3095_v46 = vmax.f32 %v2967_v17, 0.0  ;;  %v3034_v7 = vmax.f32 %v2906_v21, 0.0  ;;  %3524 = vmatprep.subr.bf16.mxu0 %v3523_v0  ;;  %v7717_v40 = vld [vmem:[#allocation229_spill] sm:$0xff] }
 0x2bf   : > { %v3036_v14 = vmax.f32 %v2908_v52, 0.0  ;;  %v2911_v5 = vadd.f32 %v2623_v57, %v7706_v28  ;;  %v2968_v18 = vadd.f32 %v2768_v12, %v7707_v10  ;;  %v2969_v62 = vadd.f32 %v2768_v12, %v7708_v29  ;;  %3526 = vmatpush1.bf16.msra.mxu0 %v3525_v44  ;;  %v7716_v44 = vld [vmem:[#allocation194_spill] sm:$0xff] }
 0x2c0   : > { %v2913_v39 = vadd.f32 %v2628_v11, %v7709_v19  ;;  %v3467_v8 = vpack.c.bf16 %v3037_v58, %v3035_v56  ;;  %v2336_v49 = vmul.f32 %v5367_v27, %v6066_v13  ;;  %v2971_v63 = vadd.f32 %v2773_v60, %v6084_v24  ;;  %v2778_v55 = vpop.permute.xlu0 %2777  ;;  %v3683_v24 = vld [vmem:[%s6915_s1 + $0x1d8] sm:$0xff]  ;;  %v7721_v12 = vld [vmem:[#allocation10_spill] sm:$0xff]  ;;  %v2532_v19 = vld [vmem:[%s6916_s2 + $0xd0] sm:$0xff] }
 0x2c1   : > { %v3463_v1 = vpack.c.bf16 %v3033_v33, %v3031_v16  ;;  %v3465_v47 = vpack.c.bf16 %v3032_v35, %v3030_v43  ;;  %v3096_v36 = vmax.f32 %v2968_v18, 0.0  ;;  %v3097_v34 = vmax.f32 %v2969_v62, 0.0  ;;  %v6138_v17 = vpop.permute.xlu1 %2157 }
 0x2c2   : > { %v2912_v51 = vadd.f32 %v2628_v11, %v7710_v6  ;;  %v3041_v25 = vmax.f32 %v2913_v39, 0.0  ;;  %3669 = vset.pattern.permute.xlu1 %v7322_v30  ;;  %v2337_v15 = vmul.f32 %v5387_v41, %v6066_v13  ;;  %v2970_v20 = vadd.f32 %v2773_v60, %v6081_v50  ;;  %v7712_v13 = vld [vmem:[#allocation55_spill] sm:$0xff]  ;;  %v7714_v60 = vld [vmem:[#allocation192_spill] sm:$0xff]  ;;  %v7725_v6 = vld [vmem:[#allocation17_spill] sm:$0xff] }
 0x2c3   : > { %v2910_v32 = vadd.f32 %v2623_v57, %v7711_v42  ;;  %v3039_v23 = vmax.f32 %v2911_v5, 0.0  ;;  %3464 = vmatprep.subr.bf16.mxu1 %v3463_v1  ;;  %2213 = vperm.xlu1 %3669, %v3683_v24   ;;  %v2972_v2 = vadd.f32 %v2778_v55, %v2460_v59  ;;  %v2973_v35 = vadd.f32 %v2778_v55, %v2461_v31  ;;  %v7715_v57 = vld [vmem:[#allocation228_spill] sm:$0xff]  ;;  %v7727_v42 = vld [vmem:[#allocation83_spill] sm:$0xff] }
 0x2c4   : > { %3466 = vmatpush1.bf16.msra.mxu1 %v3465_v47  ;;  %v3527_v21 = vpack.c.bf16 %v3097_v34, %v3095_v46  ;;  %v3529_v52 = vpack.c.bf16 %v3096_v36, %v3094_v4  ;;  %v1935_v50 = vadd.f32 %v7713_v37, %v7712_v13  ;;  %v1342_v61 = vadd.f32 %v7715_v57, %v7714_v60  ;;  %v2788_v31 = vpop.permute.xlu0 %2787  ;;  %v7718_v4 = vld [vmem:[#allocation164_spill] sm:$0xff]  ;;  %v7719_v46 = vld [vmem:[#allocation47_spill] sm:$0xff]  ;;  %v7724_v36 = vld [vmem:[#allocation142_spill] sm:$0xff] }
 0x2c5   : > { %3468 = vmatprep.subr.bf16.mxu1 %v3467_v8  ;;  %v3469_v33 = vpack.c.bf16 %v3036_v14, %v3034_v7  ;;  %v3471_v58 = vpack.c.bf16 %v3041_v25, %v3039_v23  ;;  %v3099_v9 = vmax.f32 %v2971_v63, 0.0  ;;  %v3040_v45 = vmax.f32 %v2912_v51, 0.0  ;;  %v7720_v14 = vld [vmem:[#allocation161_spill] sm:$0xff]  ;;  %v2783_v29 = vpop.permute.xlu1 %2782  ;;  %v7723_v47 = vld [vmem:[#allocation16_spill] sm:$0xff]  ;;  %v7726_v51 = vld [vmem:[#allocation139_spill] sm:$0xff] }
 0x2c6   : > { %v3100_v53 = vmax.f32 %v2972_v2, 0.0  ;;  %v3101_v0 = vmax.f32 %v2973_v35, 0.0  ;;  %3528 = vmatprep.subr.bf16.mxu0 %v3527_v21  ;;  %v1343_v59 = vadd.f32 %v7717_v40, %v7716_v44  ;;  %v3098_v3 = vmax.f32 %v2970_v20, 0.0  ;;  %v7728_v23 = vld [vmem:[#allocation227_spill] sm:$0xff]  ;;  %v7730_v35 = vld [vmem:[#allocation60_spill] sm:$0xff]  ;;  %v7731_v21 = vld [vmem:[#allocation202_spill] sm:$0xff] }
 0x2c7   : > { %v2464_v56 = vadd.f32 %v2336_v49, %v7718_v4  ;;  %v2465_v43 = vadd.f32 %v2337_v15, %v1935_v50  ;;  %3530 = vmatpush1.bf16.msra.mxu0 %v3529_v52  ;;  %3670 = vset.pattern.permute.xlu1 %v7318_v26  ;;  %v3038_v16 = vmax.f32 %v2910_v32, 0.0  ;;  %v2462_v7 = vadd.f32 %v7719_v46, %v6087_v48  ;;  %v7722_v49 = vld [vmem:[#allocation143_spill] sm:$0xff]  ;;  %v2533_v60 = vld [vmem:[%s6916_s2 + $0xd8] sm:$0xff] }
 0x2c8   : > { %3470 = vmatpush1.bf16.msra.mxu1 %v3469_v33  ;;  %2852 = vperm.xlu1 %3670, %v2562_v22   ;;  %v2463_v28 = vadd.f32 %v7720_v14, %v6090_v38  ;;  %v3531_v5 = vpack.c.bf16 %v3101_v0, %v3099_v9  ;;  %v2274_v11 = vmul.f32 %v5367_v27, %v7721_v12  ;;  %v7729_v24 = vld [vmem:[#allocation59_spill] sm:$0xff]  ;;  %v7735_v0 = vld [vmem:[#allocation204_spill] sm:$0xff] }
 0x2c9   : > { %v2976_v10 = vadd.f32 %v2788_v31, %v2464_v56  ;;  %v2977_v18 = vadd.f32 %v2788_v31, %v2465_v43  ;;  %3472 = vmatprep.subr.bf16.mxu1 %v3471_v58  ;;  %v3533_v62 = vpack.c.bf16 %v3100_v53, %v3098_v3  ;;  %v2275_v39 = vmul.f32 %v5387_v41, %v7721_v12  ;;  %v2633_v50 = vpop.permute.xlu1 %2632  ;;  %v7732_v57 = vld [vmem:[#allocation211_spill] sm:$0xff]  ;;  %v7738_v14 = vld [vmem:[#allocation212_spill] sm:$0xff] }
 0x2ca   : > { %v2974_v48 = vadd.f32 %v2783_v29, %v2462_v7  ;;  %v2975_v8 = vadd.f32 %v2783_v29, %v2463_v28  ;;  %3532 = vmatprep.subr.bf16.mxu0 %v3531_v5  ;;  %v3473_v38 = vpack.c.bf16 %v3040_v45, %v3038_v16  ;;  %v2276_v63 = vmul.f32 %v5367_v27, %v7722_v49  ;;  %v7733_v33 = vld [vmem:[#allocation207_spill] sm:$0xff]  ;;  %v7734_v45 = vld [vmem:[#allocation112_spill] sm:$0xff]  ;;  %v7736_v16 = vld [vmem:[#allocation58_spill] sm:$0xff] }
 0x2cb   : > { %v2277_v1 = vmul.f32 %v5387_v41, %v7722_v49  ;;  %v1874_v34 = vadd.f32 %v7724_v36, %v7723_v47  ;;  %v1875_v25 = vadd.f32 %v7726_v51, %v7725_v6  ;;  %3534 = vmatpush1.bf16.msra.mxu0 %v3533_v62  ;;  %v1872_v32 = vadd.f32 %v7727_v42, %v1342_v61  ;;  %v7737_v7 = vld [vmem:[#allocation171_spill] sm:$0xff]  ;;  %v7739_v5 = vld [vmem:[#allocation213_spill] sm:$0xff]  ;;  %v7741_v36 = vld [vmem:[#allocation56_spill] sm:$0xff] }
 0x2cc   : > { %v3102_v15 = vmax.f32 %v2974_v48, 0.0  ;;  %v3103_v20 = vmax.f32 %v2975_v8, 0.0  ;;  %3474 = vmatpush1.bf16.msra.mxu1 %v3473_v38  ;;  %2702 = vperm.xlu1 %3670, %v2532_v19   ;;  %v1873_v55 = vadd.f32 %v7728_v23, %v1343_v59  ;;  %v755_v2 = vmul.f32 %v4949_v54, %v7729_v24  ;;  %v7740_v19 = vld [vmem:[#allocation111_spill] sm:$0xff]  ;;  %v7742_v6 = vld [vmem:[#allocation57_spill] sm:$0xff] }
 0x2cd   : > { %v1284_v52 = vmul.f32 %v7731_v21, %v7730_v35  ;;  %v3104_v13 = vmax.f32 %v2976_v10, 0.0  ;;  %v3105_v37 = vmax.f32 %v2977_v18, 0.0  ;;  %v748_v58 = vmul.f32 %v7733_v33, %v7732_v57 }
 0x2ce   : > { %v749_v61 = vmul.f32 %v4949_v54, %v7732_v57  ;;  %v2402_v22 = vadd.f32 %v2274_v11, %v1872_v32  ;;  %v2403_v9 = vadd.f32 %v2275_v39, %v1873_v55  ;;  %v1278_v53 = vmul.f32 %v7731_v21, %v7734_v45  ;;  %v2638_v11 = vpop.permute.xlu1 %2637  ;;  %v2798_v57 = vpop.permute.xlu0 %2797 }
 0x2cf   : > { %v1279_v44 = vmul.f32 %v7735_v0, %v7734_v45  ;;  %v3535_v40 = vpack.c.bf16 %v3105_v37, %v3103_v20  ;;  %v3537_v59 = vpack.c.bf16 %v3104_v13, %v3102_v15  ;;  %v2404_v4 = vadd.f32 %v2276_v63, %v1874_v34 }
 0x2d0   : > { %v2914_v3 = vadd.f32 %v2633_v50, %v2402_v22  ;;  %v2915_v31 = vadd.f32 %v2633_v50, %v2403_v9  ;;  %2707 = vperm.xlu1 %3670, %v2533_v60   ;;  %v2405_v56 = vadd.f32 %v2277_v1, %v1875_v25  ;;  %v1285_v43 = vmul.f32 %v7735_v0, %v7730_v35  ;;  %v7743_v25 = vld [vmem:[#allocation9_spill] sm:$0xff]  ;;  %v7745_v50 = vld [vmem:[#allocation148_spill] sm:$0xff] }
 0x2d1   : > { %v6190_v46 = vadd.f32 %v1284_v52, %v7736_v16  ;;  %v1810_v28 = vmul.f32 %v7738_v14, %v7737_v7  ;;  %v1811_v12 = vmul.f32 %v7739_v5, %v7737_v7  ;;  %3536 = vmatprep.subr.bf16.mxu0 %v3535_v40  ;;  %v1406_v10 = vadd.f32 %v1278_v53, %v748_v58  ;;  %v7744_v52 = vld [vmem:[#allocation85_spill] sm:$0xff]  ;;  %v2564_v58 = vld [vmem:[%s6916_s2 + $0x1d0] sm:$0xff] }
 0x2d2   : > { %v1407_v18 = vadd.f32 %v1279_v44, %v749_v61  ;;  %v2916_v29 = vadd.f32 %v2638_v11, %v2404_v4  ;;  %v2917_v62 = vadd.f32 %v2638_v11, %v2405_v56  ;;  %3538 = vmatpush1.bf16.msra.mxu0 %v3537_v59  ;;  %v1808_v39 = vmul.f32 %v7738_v14, %v7740_v19  ;;  %v6214_v42 = vpop.permute.xlu1 %2165  ;;  %v7746_v61 = vld [vmem:[#allocation168_spill] sm:$0xff] }
 0x2d3   : > { %v1809_v48 = vmul.f32 %v7739_v5, %v7740_v19  ;;  %v2340_v8 = vmul.f32 %v5367_v27, %v6138_v17  ;;  %v2341_v38 = vmul.f32 %v5387_v41, %v6138_v17  ;;  %v3042_v49 = vmax.f32 %v2914_v3, 0.0  ;;  %v3684_v17 = vld [vmem:[%s6915_s1 + $0x1e8] sm:$0xff]  ;;  %v7747_v56 = vld [vmem:[#allocation84_spill] sm:$0xff] }
 0x2d4   : > { %v3043_v63 = vmax.f32 %v2915_v31, 0.0  ;;  %v3044_v1 = vmax.f32 %v2916_v29, 0.0  ;;  %v3045_v47 = vmax.f32 %v2917_v62, 0.0  ;;  %3671 = vset.pattern.permute.xlu1 %v7322_v30  ;;  %v1938_v34 = vadd.f32 %v1810_v28, %v7741_v36  ;;  %v7748_v7 = vld [vmem:[#allocation12_spill] sm:$0xff] }
 0x2d5   : > { %v1939_v51 = vadd.f32 %v1811_v12, %v7742_v6  ;;  %v688_v15 = vmul.f32 %v7733_v33, %v7743_v25  ;;  %v689_v20 = vmul.f32 %v4949_v54, %v7743_v25  ;;  %2221 = vperm.xlu1 %3671, %v3684_v17   ;;  %v1936_v55 = vadd.f32 %v1808_v39, %v1406_v10  ;;  %v2534_v10 = vld [vmem:[%s6916_s2 + $0xe0] sm:$0xff] }
 0x2d6   : > { %v3475_v32 = vpack.c.bf16 %v3045_v47, %v3043_v63  ;;  %v3477_v23 = vpack.c.bf16 %v3044_v1, %v3042_v49  ;;  %v1937_v24 = vadd.f32 %v1809_v48, %v1407_v18  ;;  %v6216_v35 = vadd.f32 %v1285_v43, %v755_v2  ;;  %v2793_v11 = vpop.permute.xlu1 %2792  ;;  %v7749_v18 = vld [vmem:[#allocation145_spill] sm:$0xff]  ;;  %v7750_v48 = vld [vmem:[#allocation19_spill] sm:$0xff] }
 0x2d7   : > { %v1218_v13 = vmul.f32 %v7731_v21, %v7744_v52  ;;  %v1219_v37 = vmul.f32 %v7735_v0, %v7744_v52  ;;  %v1750_v60 = vmul.f32 %v7738_v14, %v7745_v50  ;;  %v2338_v22 = vmul.f32 %v5367_v27, %v7746_v61 }
 0x2d8   : > { %v2339_v2 = vmul.f32 %v5387_v41, %v7746_v61  ;;  %v2468_v9 = vadd.f32 %v2340_v8, %v1938_v34  ;;  %v2469_v45 = vadd.f32 %v2341_v38, %v1939_v51  ;;  %3476 = vmatprep.subr.bf16.mxu1 %v3475_v32  ;;  %v1751_v53 = vmul.f32 %v7739_v5, %v7745_v50  ;;  %v7751_v38 = vld [vmem:[#allocation20_spill] sm:$0xff]  ;;  %v7752_v51 = vld [vmem:[#allocation61_spill] sm:$0xff] }
 0x2d9   : > { %v1346_v44 = vadd.f32 %v1218_v13, %v688_v15  ;;  %v1347_v40 = vadd.f32 %v1219_v37, %v689_v20  ;;  %3672 = vset.pattern.permute.xlu1 %v7318_v26  ;;  %3478 = vmatpush1.bf16.msra.mxu1 %v3477_v23  ;;  %v2466_v31 = vadd.f32 %v2338_v22, %v1936_v55  ;;  %v7753_v15 = vld [vmem:[#allocation62_spill] sm:$0xff] }
 0x2da   : > { %v2980_v59 = vadd.f32 %v2798_v57, %v2468_v9  ;;  %v2981_v3 = vadd.f32 %v2798_v57, %v2469_v45  ;;  %2862 = vperm.xlu1 %3672, %v2564_v58   ;;  %v2467_v4 = vadd.f32 %v2339_v2, %v1937_v24  ;;  %v1748_v43 = vmul.f32 %v7738_v14, %v7747_v56  ;;  %v2643_v17 = vpop.permute.xlu1 %2642  ;;  %v2535_v55 = vld [vmem:[%s6916_s2 + $0xe8] sm:$0xff]  ;;  %v7754_v24 = vld [vmem:[#allocation140_spill] sm:$0xff] }
 0x2db   : > { %v1749_v16 = vmul.f32 %v7739_v5, %v7747_v56  ;;  %v2278_v28 = vmul.f32 %v5367_v27, %v7748_v7  ;;  %v2279_v12 = vmul.f32 %v5387_v41, %v7748_v7  ;;  %v2280_v29 = vmul.f32 %v5367_v27, %v7749_v18  ;;  %v7755_v57 = vld [vmem:[#allocation114_spill] sm:$0xff]  ;;  %v7757_v7 = vld [vmem:[#allocation113_spill] sm:$0xff] }
 0x2dc   : > { %v2281_v62 = vmul.f32 %v5387_v41, %v7749_v18  ;;  %v2978_v19 = vadd.f32 %v2793_v11, %v2466_v31  ;;  %v2979_v39 = vadd.f32 %v2793_v11, %v2467_v4  ;;  %v1878_v8 = vadd.f32 %v1750_v60, %v7750_v48 }
 0x2dd   : > { %v1879_v49 = vadd.f32 %v1751_v53, %v7751_v38  ;;  %v1876_v63 = vadd.f32 %v1748_v43, %v1346_v44  ;;  %v1877_v1 = vadd.f32 %v1749_v16, %v1347_v40  ;;  %v3108_v47 = vmax.f32 %v2980_v59, 0.0  ;;  %v7756_v40 = vld [vmem:[#allocation173_spill] sm:$0xff] }
 0x2de   : > { %v3109_v36 = vmax.f32 %v2981_v3, 0.0  ;;  %v3106_v34 = vmax.f32 %v2978_v19, 0.0  ;;  %v3107_v6 = vmax.f32 %v2979_v39, 0.0  ;;  %2712 = vperm.xlu1 %3672, %v2534_v10   ;;  %v758_v25 = vmul.f32 %v7733_v33, %v7752_v51  ;;  %v2648_v31 = vpop.permute.xlu1 %2647 }
 0x2df   : > { %v1288_v20 = vmul.f32 %v7731_v21, %v7753_v15  ;;  %v2406_v32 = vadd.f32 %v2278_v28, %v1876_v63  ;;  %v2407_v23 = vadd.f32 %v2279_v12, %v1877_v1  ;;  %v752_v52 = vmul.f32 %v7733_v33, %v7754_v24 }
 0x2e0   : > { %v753_v13 = vmul.f32 %v4949_v54, %v7754_v24  ;;  %v3539_v37 = vpack.c.bf16 %v3109_v36, %v3107_v6  ;;  %v3541_v50 = vpack.c.bf16 %v3108_v47, %v3106_v34  ;;  %v759_v60 = vmul.f32 %v4949_v54, %v7752_v51 }
 0x2e1   : > { %v1282_v58 = vmul.f32 %v7731_v21, %v7755_v57  ;;  %v1283_v61 = vmul.f32 %v7735_v0, %v7755_v57  ;;  %v2408_v22 = vadd.f32 %v2280_v29, %v1878_v8  ;;  %v2918_v2 = vadd.f32 %v2643_v17, %v2406_v32  ;;  %v7758_v8 = vld [vmem:[#allocation209_spill] sm:$0xff]  ;;  %v7761_v32 = vld [vmem:[#allocation170_spill] sm:$0xff]  ;;  %v2808_v57 = vpop.permute.xlu0 %2807 }
 0x2e2   : > { %v2919_v9 = vadd.f32 %v2643_v17, %v2407_v23  ;;  %2717 = vperm.xlu1 %3672, %v2535_v55   ;;  %3540 = vmatprep.subr.bf16.mxu0 %v3539_v37  ;;  %v2409_v45 = vadd.f32 %v2281_v62, %v1879_v49  ;;  %v1289_v53 = vmul.f32 %v7735_v0, %v7753_v15  ;;  %v6294_v63 = vpop.permute.xlu1 %2173  ;;  %v7760_v15 = vld [vmem:[#allocation87_spill] sm:$0xff] }
 0x2e3   : > { %v6270_v44 = vadd.f32 %v1288_v20, %v758_v25  ;;  %v1814_v59 = vmul.f32 %v7738_v14, %v7756_v40  ;;  %v1815_v3 = vmul.f32 %v7739_v5, %v7756_v40  ;;  %3542 = vmatpush1.bf16.msra.mxu0 %v3541_v50  ;;  %v1410_v4 = vadd.f32 %v1282_v58, %v752_v52  ;;  %v2566_v25 = vld [vmem:[%s6916_s2 + $0x1e0] sm:$0xff] }
 0x2e4   : > { %v1411_v56 = vadd.f32 %v1283_v61, %v753_v13  ;;  %v2920_v43 = vadd.f32 %v2648_v31, %v2408_v22  ;;  %v2921_v16 = vadd.f32 %v2648_v31, %v2409_v45  ;;  %v1812_v28 = vmul.f32 %v7738_v14, %v7757_v7  ;;  %v7762_v52 = vld [vmem:[#allocation150_spill] sm:$0xff] }
 0x2e5   : > { %v1813_v12 = vmul.f32 %v7739_v5, %v7757_v7  ;;  %v2344_v11 = vmul.f32 %v5367_v27, %v6214_v42  ;;  %v2345_v10 = vmul.f32 %v5387_v41, %v6214_v42  ;;  %v3046_v18 = vmax.f32 %v2918_v2, 0.0  ;;  %v3685_v42 = vld [vmem:[%s6915_s1 + $0x1f8] sm:$0xff]  ;;  %v7763_v22 = vld [vmem:[#allocation86_spill] sm:$0xff] }
 0x2e6   : > { %v3047_v29 = vmax.f32 %v2919_v9, 0.0  ;;  %v3048_v62 = vmax.f32 %v2920_v43, 0.0  ;;  %v3049_v19 = vmax.f32 %v2921_v16, 0.0  ;;  %3674 = vset.pattern.permute.xlu1 %v7322_v30  ;;  %v1942_v39 = vadd.f32 %v1814_v59, %v6190_v46  ;;  %v2803_v40 = vpop.permute.xlu1 %2802  ;;  %v7764_v59 = vld [vmem:[#allocation14_spill] sm:$0xff]  ;;  %v7765_v43 = vld [vmem:[#allocation147_spill] sm:$0xff] }
 0x2e7   : > { %v1943_v48 = vadd.f32 %v1815_v3, %v6216_v35  ;;  %v692_v38 = vmul.f32 %v7733_v33, %v7758_v8  ;;  %v693_v49 = vmul.f32 %v4949_v54, %v7758_v8  ;;  %2229 = vperm.xlu1 %3674, %v3685_v42   ;;  %v1940_v30 = vadd.f32 %v1812_v28, %v1410_v4  ;;  %v7759_v35 = vld [vmem:[#allocation63_spill] sm:$0xff]  ;;  %v7766_v28 = vld [vmem:[#allocation21_spill] sm:$0xff] }
 0x2e8   : > { %v3479_v1 = vpack.c.bf16 %v3049_v19, %v3047_v29  ;;  %v3481_v47 = vpack.c.bf16 %v3048_v62, %v3046_v18  ;;  %v1941_v36 = vadd.f32 %v1813_v12, %v1411_v56  ;;  %v6296_v46 = vadd.f32 %v1289_v53, %v759_v60 }
 0x2e9   : > { %v6300_v34 = vmul.f32 %v7733_v33, %v7759_v35  ;;  %v2472_v6 = vadd.f32 %v2344_v11, %v1942_v39  ;;  %v2473_v51 = vadd.f32 %v2345_v10, %v1943_v48  ;;  %v1222_v20 = vmul.f32 %v7731_v21, %v7760_v15  ;;  %v7767_v11 = vld [vmem:[#allocation22_spill] sm:$0xff]  ;;  %v7768_v39 = vld [vmem:[#allocation44_spill] sm:$0xff] }
 0x2ea   : > { %v1223_v17 = vmul.f32 %v7735_v0, %v7760_v15  ;;  %v2342_v23 = vmul.f32 %v5367_v27, %v7761_v32  ;;  %v2343_v55 = vmul.f32 %v5387_v41, %v7761_v32  ;;  %3480 = vmatprep.subr.bf16.mxu1 %v3479_v1  ;;  %v6315_v24 = vmul.f32 %v4949_v54, %v7759_v35 }
 0x2eb   : > { %v1754_v13 = vmul.f32 %v7738_v14, %v7762_v52  ;;  %v1755_v37 = vmul.f32 %v7739_v5, %v7762_v52  ;;  %3675 = vset.pattern.permute.xlu1 %v7318_v26  ;;  %3482 = vmatpush1.bf16.msra.mxu1 %v3481_v47  ;;  %v1350_v50 = vadd.f32 %v1222_v20, %v692_v38  ;;  %v2536_v26 = vld [vmem:[%s6916_s2 + $0xf0] sm:$0xff]  ;;  %v2653_v38 = vpop.permute.xlu1 %2652 }
 0x2ec   : > { %v1351_v60 = vadd.f32 %v1223_v17, %v693_v49  ;;  %2872 = vperm.xlu1 %3675, %v2566_v25   ;;  %v2470_v58 = vadd.f32 %v2342_v23, %v1940_v30  ;;  %v2471_v61 = vadd.f32 %v2343_v55, %v1941_v36  ;;  %v1752_v2 = vmul.f32 %v7738_v14, %v7763_v22  ;;  %v2537_v49 = vld [vmem:[%s6916_s2 + $0xf8] sm:$0xff] }
 0x2ed   : > { %v1753_v9 = vmul.f32 %v7739_v5, %v7763_v22  ;;  %v2984_v45 = vadd.f32 %v2808_v57, %v2472_v6  ;;  %v2985_v53 = vadd.f32 %v2808_v57, %v2473_v51  ;;  %v2282_v3 = vmul.f32 %v5367_v27, %v7764_v59  ;;  %v7769_v47 = vld [vmem:[#allocation116_spill] sm:$0xff]  ;;  %v7770_v51 = vld [vmem:[#allocation175_spill] sm:$0xff] }
 0x2ee   : > { %v2283_v31 = vmul.f32 %v5387_v41, %v7764_v59  ;;  %v2982_v4 = vadd.f32 %v2803_v40, %v2470_v58  ;;  %v2983_v56 = vadd.f32 %v2803_v40, %v2471_v61  ;;  %v2284_v16 = vmul.f32 %v5367_v27, %v7765_v43  ;;  %v2569_v61 = vld [vmem:[%s6916_s2 + $0x1f8] sm:$0xff] }
 0x2ef   : > { %v2285_v7 = vmul.f32 %v5387_v41, %v7765_v43  ;;  %v1882_v12 = vadd.f32 %v1754_v13, %v7766_v28  ;;  %v1883_v10 = vadd.f32 %v1755_v37, %v7767_v11  ;;  %v1880_v62 = vadd.f32 %v1752_v2, %v1350_v50  ;;  %v7771_v13 = vld [vmem:[#allocation64_spill] sm:$0xff]  ;;  %v2658_v58 = vpop.permute.xlu1 %2657 }
 0x2f0   : > { %v3110_v18 = vmax.f32 %v2982_v4, 0.0  ;;  %v3111_v29 = vmax.f32 %v2983_v56, 0.0  ;;  %2722 = vperm.xlu1 %3675, %v2536_v26   ;;  %v1881_v19 = vadd.f32 %v1753_v9, %v1351_v60  ;;  %v756_v48 = vmul.f32 %v7733_v33, %v7768_v39 }
 0x2f1   : > { %v757_v8 = vmul.f32 %v4949_v54, %v7768_v39  ;;  %v3113_v42 = vmax.f32 %v2985_v53, 0.0  ;;  %v3112_v1 = vmax.f32 %v2984_v45, 0.0  ;;  %v1286_v30 = vmul.f32 %v7731_v21, %v7769_v47  ;;  %v7772_v53 = vld [vmem:[#allocation115_spill] sm:$0xff] }
 0x2f2   : > { %v1287_v36 = vmul.f32 %v7735_v0, %v7769_v47  ;;  %v2410_v35 = vadd.f32 %v2282_v3, %v1880_v62  ;;  %v2411_v6 = vadd.f32 %v2283_v31, %v1881_v19  ;;  %v1818_v25 = vmul.f32 %v7738_v14, %v7770_v51  ;;  %v7774_v19 = vld [vmem:[#allocation89_spill] sm:$0xff] }
 0x2f3   : > { %v1819_v15 = vmul.f32 %v7739_v5, %v7770_v51  ;;  %v3543_v20 = vpack.c.bf16 %v3113_v42, %v3111_v29  ;;  %v3545_v17 = vpack.c.bf16 %v3112_v1, %v3110_v18  ;;  %v2412_v55 = vadd.f32 %v2284_v16, %v1882_v12  ;;  %v7773_v16 = vld [vmem:[#allocation13_spill] sm:$0xff]  ;;  %v7777_v1 = vld [vmem:[#allocation172_spill] sm:$0xff] }
 0x2f4   : > { %v2922_v32 = vadd.f32 %v2653_v38, %v2410_v35  ;;  %v2923_v23 = vadd.f32 %v2653_v38, %v2411_v6  ;;  %2727 = vperm.xlu1 %3675, %v2537_v49   ;;  %v2413_v52 = vadd.f32 %v2285_v7, %v1883_v10  ;;  %v1292_v37 = vmul.f32 %v7731_v21, %v7771_v13  ;;  %v7776_v49 = vld [vmem:[#allocation152_spill] sm:$0xff]  ;;  %v2818_v6 = vpop.permute.xlu0 %2817 }
 0x2f5   : > { %v1293_v50 = vmul.f32 %v7735_v0, %v7771_v13  ;;  %v1414_v60 = vadd.f32 %v1286_v30, %v756_v48  ;;  %v1415_v57 = vadd.f32 %v1287_v36, %v757_v8  ;;  %3544 = vmatprep.subr.bf16.mxu0 %v3543_v20  ;;  %v2348_v22 = vmul.f32 %v5367_v27, %v6294_v63  ;;  %v7775_v8 = vld [vmem:[#allocation88_spill] sm:$0xff] }
 0x2f6   : > { %v2349_v2 = vmul.f32 %v5387_v41, %v6294_v63  ;;  %v2924_v9 = vadd.f32 %v2658_v58, %v2412_v55  ;;  %v2925_v45 = vadd.f32 %v2658_v58, %v2413_v52  ;;  %3546 = vmatpush1.bf16.msra.mxu0 %v3545_v17  ;;  %v1816_v40 = vmul.f32 %v7738_v14, %v7772_v53  ;;  %v7778_v51 = vld [vmem:[#allocation196_spill] sm:$0xff]  ;;  %v7779_v55 = vld [vmem:[#allocation149_spill] sm:$0xff] }
 0x2f7   : > { %v1817_v26 = vmul.f32 %v7739_v5, %v7772_v53  ;;  %v1946_v59 = vadd.f32 %v1818_v25, %v6270_v44  ;;  %v1947_v3 = vadd.f32 %v1819_v15, %v6296_v46  ;;  %v3050_v31 = vmax.f32 %v2922_v32, 0.0  ;;  %v6375_v18 = vpop.permute.xlu1 %2181  ;;  %v7783_v53 = vld [vmem:[#allocation25_spill] sm:$0xff] }
 0x2f8   : > { %v3051_v4 = vmax.f32 %v2923_v23, 0.0  ;;  %v3052_v56 = vmax.f32 %v2924_v9, 0.0  ;;  %v3053_v43 = vmax.f32 %v2925_v45, 0.0  ;;  %2887 = vperm.xlu1 %3675, %v2569_v61   ;;  %v696_v63 = vmul.f32 %v7733_v33, %v7773_v16  ;;  %v7782_v9 = vld [vmem:[#allocation24_spill] sm:$0xff] }
 0x2f9   : > { %v697_v7 = vmul.f32 %v4949_v54, %v7773_v16  ;;  %v1944_v28 = vadd.f32 %v1816_v40, %v1414_v60  ;;  %v1945_v12 = vadd.f32 %v1817_v26, %v1415_v57  ;;  %v2476_v11 = vadd.f32 %v2348_v22, %v1946_v59  ;;  %v7781_v57 = vld [vmem:[#allocation18_spill] sm:$0xff] }
 0x2fa   : > { %v2477_v10 = vadd.f32 %v2349_v2, %v1947_v3  ;;  %v3483_v44 = vpack.c.bf16 %v3053_v43, %v3051_v4  ;;  %v3485_v29 = vpack.c.bf16 %v3052_v56, %v3050_v31  ;;  %v6378_v46 = vadd.f32 %v1292_v37, %v6300_v34  ;;  %v7784_v43 = vld [vmem:[#allocation65_spill] sm:$0xff] }
 0x2fb   : > { %v6381_v62 = vadd.f32 %v1293_v50, %v6315_v24  ;;  %v1226_v39 = vmul.f32 %v7731_v21, %v7774_v19  ;;  %v1227_v48 = vmul.f32 %v7735_v0, %v7774_v19  ;;  %v1756_v38 = vmul.f32 %v7738_v14, %v7775_v8  ;;  %v3146_v24 = vld [vmem:[%s6917_s3] sm:$0xf]  ;;  %v7780_v50 = vld [vmem:[#allocation51_spill] sm:$0xff] }
 0x2fc   : > { %v1758_v42 = vmul.f32 %v7738_v14, %v7776_v49  ;;  %v2346_v47 = vmul.f32 %v5367_v27, %v7777_v1  ;;  %v2347_v34 = vmul.f32 %v5387_v41, %v7777_v1  ;;  %3484 = vmatprep.subr.bf16.mxu1 %v3483_v44  ;;  %v1759_v30 = vmul.f32 %v7739_v5, %v7776_v49 }
 0x2fd   : > { %v1354_v36 = vadd.f32 %v1226_v39, %v696_v63  ;;  %v1355_v35 = vadd.f32 %v1227_v48, %v697_v7  ;;  %3486 = vmatpush1.bf16.msra.mxu1 %v3485_v29  ;;  %v3165_v25 = vrot.slane %v3146_v24, %v7778_v51  ;;  %v2988_v15 = vadd.f32 %v2818_v6, %v2476_v11  ;;  %v2813_v37 = vpop.permute.xlu1 %2812  ;;  %v7785_v7 = vld [vmem:[#allocation160_spill] sm:$0xff]  ;;  %v7786_v39 = vld [vmem:[#allocation118_spill] sm:$0xff] }
 0x2fe   : > { %v2989_v20 = vadd.f32 %v2818_v6, %v2477_v10  ;;  %v2474_v17 = vadd.f32 %v2346_v47, %v1944_v28  ;;  %v2475_v32 = vadd.f32 %v2347_v34, %v1945_v12  ;;  %v1757_v23 = vmul.f32 %v7739_v5, %v7775_v8 }
 0x2ff   : > { %v2288_v52 = vmul.f32 %v5367_v27, %v7779_v55  ;;  %v2289_v13 = vmul.f32 %v5387_v41, %v7779_v55  ;;  %3242 = vmatprep.mubr.f32.mxu1 %v3165_v25  ;;  %v3173_v60 = vrot.slane %v3146_v24, %v7780_v50  ;;  %v2286_v58 = vmul.f32 %v5367_v27, %v7781_v57 }
 0x300   : > { %v2287_v61 = vmul.f32 %v5387_v41, %v7781_v57  ;;  %v2986_v22 = vadd.f32 %v2813_v37, %v2474_v17  ;;  %v2987_v2 = vadd.f32 %v2813_v37, %v2475_v32  ;;  %v1886_v45 = vadd.f32 %v1758_v42, %v7782_v9 }
 0x301   : > { %v1887_v40 = vadd.f32 %v1759_v30, %v7783_v53  ;;  %v1884_v26 = vadd.f32 %v1756_v38, %v1354_v36  ;;  %v1885_v59 = vadd.f32 %v1757_v23, %v1355_v35  ;;  %3313 = vmatprep.mubr.f32.mxu0 %v3173_v60  ;;  %v3117_v4 = vmax.f32 %v2989_v20, 0.0  ;;  %v2663_v11 = vpop.permute.xlu1 %2662  ;;  %v7787_v38 = vld [vmem:[#allocation177_spill] sm:$0xff]  ;;  %v7788_v30 = vld [vmem:[#allocation66_spill] sm:$0xff] }
 0x302   : > { %v3114_v3 = vmax.f32 %v2986_v22, 0.0  ;;  %v3115_v31 = vmax.f32 %v2987_v2, 0.0  ;;  %v3116_v56 = vmax.f32 %v2988_v15, 0.0  ;;  %v766_v16 = vmul.f32 %v7733_v33, %v7784_v43  ;;  %v7789_v23 = vld [vmem:[#allocation117_spill] sm:$0xff] }
 0x303   : > { %v767_v63 = vmul.f32 %v4949_v54, %v7784_v43  ;;  %v760_v28 = vmul.f32 %v7733_v33, %v7785_v7  ;;  %v761_v12 = vmul.f32 %v4949_v54, %v7785_v7  ;;  %v2414_v10 = vadd.f32 %v2286_v58, %v1884_v26 }
 0x304   : > { %v2415_v44 = vadd.f32 %v2287_v61, %v1885_v59  ;;  %v3547_v29 = vpack.c.bf16 %v3117_v4, %v3115_v31  ;;  %v3549_v19 = vpack.c.bf16 %v3116_v56, %v3114_v3  ;;  %v1290_v48 = vmul.f32 %v7731_v21, %v7786_v39  ;;  %v7790_v61 = vld [vmem:[#allocation15_spill] sm:$0xff]  ;;  %v7791_v59 = vld [vmem:[#allocation40_spill] sm:$0xff] }
 0x305   : > { %v1291_v8 = vmul.f32 %v7735_v0, %v7786_v39  ;;  %v1822_v49 = vmul.f32 %v7738_v14, %v7787_v38  ;;  %v1823_v42 = vmul.f32 %v7739_v5, %v7787_v38  ;;  %v2926_v1 = vadd.f32 %v2663_v11, %v2414_v10  ;;  %v2668_v25 = vpop.permute.xlu1 %2667  ;;  %v7792_v31 = vld [vmem:[#allocation91_spill] sm:$0xff]  ;;  %v7794_v10 = vld [vmem:[#allocation154_spill] sm:$0xff] }
 0x306   : > { %v2927_v47 = vadd.f32 %v2663_v11, %v2415_v44  ;;  %3548 = vmatprep.subr.bf16.mxu0 %v3547_v29  ;;  %v2416_v34 = vadd.f32 %v2288_v52, %v1886_v45  ;;  %v2417_v24 = vadd.f32 %v2289_v13, %v1887_v40  ;;  %v1296_v36 = vmul.f32 %v7731_v21, %v7788_v30 }
 0x307   : > { %v1297_v35 = vmul.f32 %v7735_v0, %v7788_v30  ;;  %v1418_v6 = vadd.f32 %v1290_v48, %v760_v28  ;;  %v1419_v51 = vadd.f32 %v1291_v8, %v761_v12  ;;  %3550 = vmatpush1.bf16.msra.mxu0 %v3549_v19  ;;  %v2352_v15 = vmul.f32 %v5367_v27, %v6375_v18  ;;  %v7793_v28 = vld [vmem:[#allocation174_spill] sm:$0xff]  ;;  %v2828_v48 = vpop.permute.xlu0 %2827 }
 0x308   : > { %v2353_v20 = vmul.f32 %v5387_v41, %v6375_v18  ;;  %v2928_v17 = vadd.f32 %v2668_v25, %v2416_v34  ;;  %v2929_v32 = vadd.f32 %v2668_v25, %v2417_v24  ;;  %v1820_v55 = vmul.f32 %v7738_v14, %v7789_v23 }
 0x309   : > { %v1821_v52 = vmul.f32 %v7739_v5, %v7789_v23  ;;  %v1950_v13 = vadd.f32 %v1822_v49, %v6378_v46  ;;  %v1951_v37 = vadd.f32 %v1823_v42, %v6381_v62  ;;  %v3054_v50 = vmax.f32 %v2926_v1, 0.0  ;;  %v7795_v49 = vld [vmem:[#allocation90_spill] sm:$0xff] }
 0x30a   : > { %v3055_v60 = vmax.f32 %v2927_v47, 0.0  ;;  %v3056_v57 = vmax.f32 %v2928_v17, 0.0  ;;  %v3057_v58 = vmax.f32 %v2929_v32, 0.0  ;;  %v700_v22 = vmul.f32 %v7733_v33, %v7790_v61  ;;  %v6448_v40 = vpop.permute.xlu1 %2189  ;;  %v7796_v47 = vld [vmem:[#allocation151_spill] sm:$0xff] }
 0x30b   : > { %v701_v18 = vmul.f32 %v4949_v54, %v7790_v61  ;;  %v1948_v2 = vadd.f32 %v1820_v55, %v1418_v6  ;;  %v1949_v9 = vadd.f32 %v1821_v52, %v1419_v51  ;;  %v2480_v45 = vadd.f32 %v2352_v15, %v1950_v13  ;;  %v7798_v15 = vld [vmem:[#allocation26_spill] sm:$0xff]  ;;  %v7799_v17 = vld [vmem:[#allocation27_spill] sm:$0xff] }
 0x30c   : > { %v2481_v53 = vadd.f32 %v2353_v20, %v1951_v37  ;;  %v3487_v26 = vpack.c.bf16 %v3057_v58, %v3055_v60  ;;  %v3489_v46 = vpack.c.bf16 %v3056_v57, %v3054_v50  ;;  %v6452_v62 = vmul.f32 %v7731_v21, %v7791_v59  ;;  %v7800_v60 = vld [vmem:[#allocation67_spill] sm:$0xff]  ;;  %v7801_v61 = vld [vmem:[#allocation146_spill] sm:$0xff] }
 0x30d   : > { %v6456_v3 = vmul.f32 %v7735_v0, %v7791_v59  ;;  %v1230_v4 = vmul.f32 %v7731_v21, %v7792_v31  ;;  %v1231_v56 = vmul.f32 %v7735_v0, %v7792_v31  ;;  %v1424_v43 = vadd.f32 %v1296_v36, %v766_v16  ;;  %v7797_v36 = vld [vmem:[#allocation28_spill] sm:$0xff] }
 0x30e   : > { %v1425_v7 = vadd.f32 %v1297_v35, %v767_v63  ;;  %v2350_v12 = vmul.f32 %v5367_v27, %v7793_v28  ;;  %v2351_v11 = vmul.f32 %v5387_v41, %v7793_v28  ;;  %3488 = vmatprep.subr.bf16.mxu1 %v3487_v26  ;;  %v1762_v44 = vmul.f32 %v7738_v14, %v7794_v10 }
 0x30f   : > { %v1763_v29 = vmul.f32 %v7739_v5, %v7794_v10  ;;  %v1358_v19 = vadd.f32 %v1230_v4, %v700_v22  ;;  %v1359_v39 = vadd.f32 %v1231_v56, %v701_v18  ;;  %3490 = vmatpush1.bf16.msra.mxu1 %v3489_v46  ;;  %v2992_v8 = vadd.f32 %v2828_v48, %v2480_v45  ;;  %v2823_v30 = vpop.permute.xlu1 %2822  ;;  %v7802_v46 = vld [vmem:[#allocation120_spill] sm:$0xff]  ;;  %v7803_v4 = vld [vmem:[#allocation179_spill] sm:$0xff] }
 0x310   : > { %v2993_v16 = vadd.f32 %v2828_v48, %v2481_v53  ;;  %v2478_v63 = vadd.f32 %v2350_v12, %v1948_v2  ;;  %v2479_v38 = vadd.f32 %v2351_v11, %v1949_v9  ;;  %v1760_v42 = vmul.f32 %v7738_v14, %v7795_v49 }
 0x311   : > { %v1761_v1 = vmul.f32 %v7739_v5, %v7795_v49  ;;  %v2292_v34 = vmul.f32 %v5367_v27, %v7796_v47  ;;  %v2293_v24 = vmul.f32 %v5387_v41, %v7796_v47  ;;  %v2290_v35 = vmul.f32 %v5367_v27, %v7797_v36 }
 0x312   : > { %v2291_v6 = vmul.f32 %v5387_v41, %v7797_v36  ;;  %v2990_v51 = vadd.f32 %v2823_v30, %v2478_v63  ;;  %v2991_v25 = vadd.f32 %v2823_v30, %v2479_v38  ;;  %v1890_v20 = vadd.f32 %v1762_v44, %v7798_v15 }
 0x313   : > { %v1891_v32 = vadd.f32 %v1763_v29, %v7799_v17  ;;  %v1888_v23 = vadd.f32 %v1760_v42, %v1358_v19  ;;  %v1889_v55 = vadd.f32 %v1761_v1, %v1359_v39  ;;  %v3121_v37 = vmax.f32 %v2993_v16, 0.0  ;;  %v2673_v2 = vpop.permute.xlu1 %2672  ;;  %v7804_v29 = vld [vmem:[#allocation68_spill] sm:$0xff]  ;;  %v7805_v1 = vld [vmem:[#allocation119_spill] sm:$0xff] }
 0x314   : > { %v3118_v52 = vmax.f32 %v2990_v51, 0.0  ;;  %v3119_v13 = vmax.f32 %v2991_v25, 0.0  ;;  %v3120_v50 = vmax.f32 %v2992_v8, 0.0  ;;  %v770_v57 = vmul.f32 %v7733_v33, %v7800_v60  ;;  %v7806_v25 = vld [vmem:[#allocation23_spill] sm:$0xff] }
 0x315   : > { %v771_v58 = vmul.f32 %v4949_v54, %v7800_v60  ;;  %v764_v22 = vmul.f32 %v7733_v33, %v7801_v61  ;;  %v765_v18 = vmul.f32 %v4949_v54, %v7801_v61  ;;  %v2418_v9 = vadd.f32 %v2290_v35, %v1888_v23  ;;  %v7809_v60 = vld [vmem:[#allocation93_spill] sm:$0xff] }
 0x316   : > { %v2419_v45 = vadd.f32 %v2291_v6, %v1889_v55  ;;  %v3551_v53 = vpack.c.bf16 %v3121_v37, %v3119_v13  ;;  %v3553_v26 = vpack.c.bf16 %v3120_v50, %v3118_v52  ;;  %v1294_v59 = vmul.f32 %v7731_v21, %v7802_v46  ;;  %v7808_v37 = vld [vmem:[#allocation214_spill] sm:$0xff] }
 0x317   : > { %v1295_v31 = vmul.f32 %v7735_v0, %v7802_v46  ;;  %v1826_v56 = vmul.f32 %v7738_v14, %v7803_v4  ;;  %v1827_v28 = vmul.f32 %v7739_v5, %v7803_v4  ;;  %v2930_v12 = vadd.f32 %v2673_v2, %v2418_v9  ;;  %v2678_v16 = vpop.permute.xlu1 %2677  ;;  %v7810_v9 = vld [vmem:[#allocation176_spill] sm:$0xff] }
 0x318   : > { %v2931_v11 = vadd.f32 %v2673_v2, %v2419_v45  ;;  %3552 = vmatprep.subr.bf16.mxu0 %v3551_v53  ;;  %v2420_v10 = vadd.f32 %v2292_v34, %v1890_v20  ;;  %v2421_v44 = vadd.f32 %v2293_v24, %v1891_v32  ;;  %v1300_v19 = vmul.f32 %v7731_v21, %v7804_v29 }
 0x319   : > { %v1301_v39 = vmul.f32 %v7735_v0, %v7804_v29  ;;  %v1422_v48 = vadd.f32 %v1294_v59, %v764_v22  ;;  %v1423_v8 = vadd.f32 %v1295_v31, %v765_v18  ;;  %3554 = vmatpush1.bf16.msra.mxu0 %v3553_v26  ;;  %v2356_v63 = vmul.f32 %v5367_v27, %v6448_v40  ;;  %v2838_v31 = vpop.permute.xlu0 %2837 }
 0x31a   : > { %v2357_v38 = vmul.f32 %v5387_v41, %v6448_v40  ;;  %v2932_v49 = vadd.f32 %v2678_v16, %v2420_v10  ;;  %v2933_v42 = vadd.f32 %v2678_v16, %v2421_v44  ;;  %v1824_v47 = vmul.f32 %v7738_v14, %v7805_v1  ;;  %v7813_v10 = vld [vmem:[#allocation153_spill] sm:$0xff] }
 0x31b   : > { %v1825_v34 = vmul.f32 %v7739_v5, %v7805_v1  ;;  %v1954_v24 = vadd.f32 %v1826_v56, %v1424_v43  ;;  %v1955_v30 = vadd.f32 %v1827_v28, %v1425_v7  ;;  %v3058_v36 = vmax.f32 %v2930_v12, 0.0  ;;  %v7807_v43 = vld [vmem:[#allocation39_spill] sm:$0xff]  ;;  %v7812_v28 = vld [vmem:[#allocation92_spill] sm:$0xff] }
 0x31c   : > { %v3059_v35 = vmax.f32 %v2931_v11, 0.0  ;;  %v3060_v6 = vmax.f32 %v2932_v49, 0.0  ;;  %v3061_v51 = vmax.f32 %v2933_v42, 0.0  ;;  %v704_v15 = vmul.f32 %v7733_v33, %v7806_v25  ;;  %v7816_v42 = vld [vmem:[#allocation33_spill] sm:$0xff] }
 0x31d   : > { %v705_v40 = vmul.f32 %v4949_v54, %v7806_v25  ;;  %v1952_v20 = vadd.f32 %v1824_v47, %v1422_v48  ;;  %v1953_v17 = vadd.f32 %v1825_v34, %v1423_v8  ;;  %v2484_v32 = vadd.f32 %v2356_v63, %v1954_v24  ;;  %v6516_v55 = vpop.permute.xlu1 %2197 }
 0x31e   : > { %v2485_v23 = vadd.f32 %v2357_v38, %v1955_v30  ;;  %v3491_v52 = vpack.c.bf16 %v3061_v51, %v3059_v35  ;;  %v3493_v13 = vpack.c.bf16 %v3060_v6, %v3058_v36  ;;  %v6520_v7 = vadd.f32 %v6452_v62, %v7807_v43  ;;  %v7811_v62 = vld [vmem:[#allocation156_spill] sm:$0xff]  ;;  %v7815_v38 = vld [vmem:[#allocation31_spill] sm:$0xff]  ;;  %v7817_v6 = vld [vmem:[#allocation69_spill] sm:$0xff] }
 0x31f   : > { %v6524_v50 = vadd.f32 %v6456_v3, %v7808_v37  ;;  %v1234_v61 = vmul.f32 %v7731_v21, %v7809_v60  ;;  %v1235_v22 = vmul.f32 %v7735_v0, %v7809_v60  ;;  %v1428_v18 = vadd.f32 %v1300_v19, %v770_v57  ;;  %v7819_v43 = vld [vmem:[#allocation122_spill] sm:$0xff] }
 0x320   : > { %v1429_v2 = vadd.f32 %v1301_v39, %v771_v58  ;;  %v2354_v45 = vmul.f32 %v5367_v27, %v7810_v9  ;;  %v2355_v53 = vmul.f32 %v5387_v41, %v7810_v9  ;;  %3492 = vmatprep.subr.bf16.mxu1 %v3491_v52  ;;  %v1766_v26 = vmul.f32 %v7738_v14, %v7811_v62  ;;  %v7814_v39 = vld [vmem:[#allocation30_spill] sm:$0xff] }
 0x321   : > { %v1767_v3 = vmul.f32 %v7739_v5, %v7811_v62  ;;  %v1362_v46 = vadd.f32 %v1234_v61, %v704_v15  ;;  %v1363_v59 = vadd.f32 %v1235_v22, %v705_v40  ;;  %3494 = vmatpush1.bf16.msra.mxu1 %v3493_v13  ;;  %v2996_v4 = vadd.f32 %v2838_v31, %v2484_v32  ;;  %v7818_v15 = vld [vmem:[#allocation188_spill] sm:$0xff]  ;;  %v7820_v61 = vld [vmem:[#allocation181_spill] sm:$0xff] }
 0x322   : > { %v2997_v57 = vadd.f32 %v2838_v31, %v2485_v23  ;;  %v2482_v58 = vadd.f32 %v2354_v45, %v1952_v20  ;;  %v2483_v56 = vadd.f32 %v2355_v53, %v1953_v17  ;;  %v1764_v12 = vmul.f32 %v7738_v14, %v7812_v28 }
 0x323   : > { %v1765_v11 = vmul.f32 %v7739_v5, %v7812_v28  ;;  %v2296_v44 = vmul.f32 %v5367_v27, %v7813_v10  ;;  %v2297_v29 = vmul.f32 %v5387_v41, %v7813_v10  ;;  %v2833_v19 = vpop.permute.xlu1 %2832  ;;  %v2294_v48 = vmul.f32 %v5367_v27, %v7814_v39 }
 0x324   : > { %v2295_v8 = vmul.f32 %v5387_v41, %v7814_v39  ;;  %v2994_v16 = vadd.f32 %v2833_v19, %v2482_v58  ;;  %v2995_v63 = vadd.f32 %v2833_v19, %v2483_v56  ;;  %v1894_v49 = vadd.f32 %v1766_v26, %v7815_v38 }
 0x325   : > { %v1895_v1 = vadd.f32 %v1767_v3, %v7816_v42  ;;  %v1892_v47 = vadd.f32 %v1764_v12, %v1362_v46  ;;  %v1893_v34 = vadd.f32 %v1765_v11, %v1363_v59  ;;  %v3125_v36 = vmax.f32 %v2997_v57, 0.0  ;;  %v7821_v3 = vld [vmem:[#allocation70_spill] sm:$0xff]  ;;  %v7822_v11 = vld [vmem:[#allocation121_spill] sm:$0xff] }
 0x326   : > { %v3122_v24 = vmax.f32 %v2994_v16, 0.0  ;;  %v3123_v30 = vmax.f32 %v2995_v63, 0.0  ;;  %v3124_v35 = vmax.f32 %v2996_v4, 0.0  ;;  %v774_v51 = vmul.f32 %v7733_v33, %v7817_v6  ;;  %v7823_v63 = vld [vmem:[#allocation29_spill] sm:$0xff] }
 0x327   : > { %v775_v25 = vmul.f32 %v4949_v54, %v7817_v6  ;;  %v768_v40 = vmul.f32 %v7733_v33, %v7818_v15  ;;  %v769_v20 = vmul.f32 %v4949_v54, %v7818_v15  ;;  %v2683_v17 = vpop.permute.xlu1 %2682  ;;  %v2422_v32 = vadd.f32 %v2294_v48, %v1892_v47  ;;  %v7825_v15 = vld [vmem:[#allocation71_spill] sm:$0xff] }
 0x328   : > { %v2423_v23 = vadd.f32 %v2295_v8, %v1893_v34  ;;  %v3555_v52 = vpack.c.bf16 %v3125_v36, %v3123_v30  ;;  %v3557_v13 = vpack.c.bf16 %v3124_v35, %v3122_v24  ;;  %v1298_v37 = vmul.f32 %v7731_v21, %v7819_v43  ;;  %v7824_v36 = vld [vmem:[#allocation95_spill] sm:$0xff] }
 0x329   : > { %v1299_v60 = vmul.f32 %v7735_v0, %v7819_v43  ;;  %v1830_v22 = vmul.f32 %v7738_v14, %v7820_v61  ;;  %v1831_v9 = vmul.f32 %v7739_v5, %v7820_v61  ;;  %v2934_v45 = vadd.f32 %v2683_v17, %v2422_v32 }
 0x32a   : > { %v2935_v53 = vadd.f32 %v2683_v17, %v2423_v23  ;;  %3556 = vmatprep.subr.bf16.mxu0 %v3555_v52  ;;  %v2424_v62 = vadd.f32 %v2296_v44, %v1894_v49  ;;  %v2425_v26 = vadd.f32 %v2297_v29, %v1895_v1  ;;  %v1304_v46 = vmul.f32 %v7731_v21, %v7821_v3  ;;  %v7826_v17 = vld [vmem:[#allocation178_spill] sm:$0xff] }
 0x32b   : > { %v1305_v59 = vmul.f32 %v7735_v0, %v7821_v3  ;;  %v1426_v31 = vadd.f32 %v1298_v37, %v768_v40  ;;  %v1427_v4 = vadd.f32 %v1299_v60, %v769_v20  ;;  %v2688_v57 = vpop.permute.xlu1 %2687  ;;  %3558 = vmatpush1.bf16.msra.mxu0 %v3557_v13  ;;  %v2360_v58 = vmul.f32 %v5367_v27, %v6516_v55  ;;  %v2848_v37 = vpop.permute.xlu0 %2847 }
 0x32c   : > { %v2361_v56 = vmul.f32 %v5387_v41, %v6516_v55  ;;  %v2936_v28 = vadd.f32 %v2688_v57, %v2424_v62  ;;  %v2937_v12 = vadd.f32 %v2688_v57, %v2425_v26  ;;  %v1828_v10 = vmul.f32 %v7738_v14, %v7822_v11  ;;  %v7829_v26 = vld [vmem:[#allocation155_spill] sm:$0xff] }
 0x32d   : > { %v1829_v44 = vmul.f32 %v7739_v5, %v7822_v11  ;;  %v1958_v29 = vadd.f32 %v1830_v22, %v1428_v18  ;;  %v1959_v19 = vadd.f32 %v1831_v9, %v1429_v2  ;;  %v3062_v39 = vmax.f32 %v2934_v45, 0.0  ;;  %v7828_v45 = vld [vmem:[#allocation94_spill] sm:$0xff]  ;;  %v7832_v11 = vld [vmem:[#allocation36_spill] sm:$0xff] }
 0x32e   : > { %v3063_v48 = vmax.f32 %v2935_v53, 0.0  ;;  %v3064_v8 = vmax.f32 %v2936_v28, 0.0  ;;  %v3065_v16 = vmax.f32 %v2937_v12, 0.0  ;;  %v708_v38 = vmul.f32 %v7733_v33, %v7823_v63  ;;  %v7831_v28 = vld [vmem:[#allocation34_spill] sm:$0xff] }
 0x32f   : > { %v709_v55 = vmul.f32 %v4949_v54, %v7823_v63  ;;  %v1956_v49 = vadd.f32 %v1828_v10, %v1426_v31  ;;  %v1957_v42 = vadd.f32 %v1829_v44, %v1427_v4  ;;  %v2488_v1 = vadd.f32 %v2360_v58, %v1958_v29  ;;  %v7830_v31 = vld [vmem:[#allocation48_spill] sm:$0xff] }
 0x330   : > { %v2489_v47 = vadd.f32 %v2361_v56, %v1959_v19  ;;  %v6584_v34 = vpop.permute.xlu1 %2205  ;;  %v3495_v24 = vpack.c.bf16 %v3065_v16, %v3063_v48  ;;  %v3497_v30 = vpack.c.bf16 %v3064_v8, %v3062_v39  ;;  %v6586_v18 = vadd.f32 %v1304_v46, %v774_v51  ;;  %v7833_v16 = vld [vmem:[#allocation72_spill] sm:$0xff] }
 0x331   : > { %v6588_v2 = vadd.f32 %v1305_v59, %v775_v25  ;;  %v1238_v35 = vmul.f32 %v7731_v21, %v7824_v36  ;;  %v1239_v6 = vmul.f32 %v7735_v0, %v7824_v36  ;;  %v778_v40 = vmul.f32 %v7733_v33, %v7825_v15  ;;  %v7827_v25 = vld [vmem:[#allocation32_spill] sm:$0xff] }
 0x332   : > { %v779_v20 = vmul.f32 %v4949_v54, %v7825_v15  ;;  %v2358_v32 = vmul.f32 %v5367_v27, %v7826_v17  ;;  %v2359_v51 = vmul.f32 %v5387_v41, %v7826_v17  ;;  %3496 = vmatprep.subr.bf16.mxu1 %v3495_v24  ;;  %v1770_v23 = vmul.f32 %v7738_v14, %v7827_v25  ;;  %v7836_v17 = vld [vmem:[#allocation183_spill] sm:$0xff] }
 0x333   : > { %v1771_v52 = vmul.f32 %v7739_v5, %v7827_v25  ;;  %v1366_v13 = vadd.f32 %v1238_v35, %v708_v38  ;;  %v1367_v43 = vadd.f32 %v1239_v6, %v709_v55  ;;  %3498 = vmatpush1.bf16.msra.mxu1 %v3497_v30  ;;  %v3000_v60 = vadd.f32 %v2848_v37, %v2488_v1  ;;  %v7834_v55 = vld [vmem:[#allocation167_spill] sm:$0xff]  ;;  %v7835_v35 = vld [vmem:[#allocation124_spill] sm:$0xff] }
 0x334   : > { %v3001_v61 = vadd.f32 %v2848_v37, %v2489_v47  ;;  %v2486_v22 = vadd.f32 %v2358_v32, %v1956_v49  ;;  %v2487_v9 = vadd.f32 %v2359_v51, %v1957_v42  ;;  %v1768_v53 = vmul.f32 %v7738_v14, %v7828_v45 }
 0x335   : > { %v1769_v62 = vmul.f32 %v7739_v5, %v7828_v45  ;;  %v2300_v3 = vmul.f32 %v5367_v27, %v7829_v26  ;;  %v2301_v46 = vmul.f32 %v5387_v41, %v7829_v26  ;;  %v2843_v59 = vpop.permute.xlu1 %2842  ;;  %v2298_v4 = vmul.f32 %v5367_v27, %v7830_v31  ;;  %v7837_v26 = vld [vmem:[#allocation123_spill] sm:$0xff] }
 0x336   : > { %v2299_v57 = vmul.f32 %v5387_v41, %v7830_v31  ;;  %v2998_v58 = vadd.f32 %v2843_v59, %v2486_v22  ;;  %v2999_v56 = vadd.f32 %v2843_v59, %v2487_v9  ;;  %v1898_v12 = vadd.f32 %v1770_v23, %v7831_v28 }
 0x337   : > { %v1899_v10 = vadd.f32 %v1771_v52, %v7832_v11  ;;  %v1896_v44 = vadd.f32 %v1768_v53, %v1366_v13  ;;  %v1897_v29 = vadd.f32 %v1769_v62, %v1367_v43  ;;  %v3129_v48 = vmax.f32 %v3001_v61, 0.0 }
 0x338   : > { %v3126_v19 = vmax.f32 %v2998_v58, 0.0  ;;  %v3127_v39 = vmax.f32 %v2999_v56, 0.0  ;;  %v3128_v8 = vmax.f32 %v3000_v60, 0.0  ;;  %v1308_v63 = vmul.f32 %v7731_v21, %v7833_v16  ;;  %v7838_v58 = vld [vmem:[#allocation37_spill] sm:$0xff] }
 0x339   : > { %v1309_v38 = vmul.f32 %v7735_v0, %v7833_v16  ;;  %v772_v49 = vmul.f32 %v7733_v33, %v7834_v55  ;;  %v773_v42 = vmul.f32 %v4949_v54, %v7834_v55  ;;  %v2693_v1 = vpop.permute.xlu1 %2692  ;;  %v2426_v47 = vadd.f32 %v2298_v4, %v1896_v44 }
 0x33a   : > { %v2427_v24 = vadd.f32 %v2299_v57, %v1897_v29  ;;  %v3559_v30 = vpack.c.bf16 %v3129_v48, %v3127_v39  ;;  %v3561_v36 = vpack.c.bf16 %v3128_v8, %v3126_v19  ;;  %v1302_v6 = vmul.f32 %v7731_v21, %v7835_v35  ;;  %v7839_v19 = vld [vmem:[#allocation73_spill] sm:$0xff] }
 0x33b   : > { %v1303_v15 = vmul.f32 %v7735_v0, %v7835_v35  ;;  %v1834_v32 = vmul.f32 %v7738_v14, %v7836_v17  ;;  %v1835_v51 = vmul.f32 %v7739_v5, %v7836_v17  ;;  %v2938_v25 = vadd.f32 %v2693_v1, %v2426_v47  ;;  %v7840_v48 = vld [vmem:[#allocation97_spill] sm:$0xff]  ;;  %v7843_v47 = vld [vmem:[#allocation35_spill] sm:$0xff] }
 0x33c   : > { %v2939_v23 = vadd.f32 %v2693_v1, %v2427_v24  ;;  %3560 = vmatprep.subr.bf16.mxu0 %v3559_v30  ;;  %v2428_v52 = vadd.f32 %v2300_v3, %v1898_v12  ;;  %v2429_v13 = vadd.f32 %v2301_v46, %v1899_v10  ;;  %v6636_v43 = vadd.f32 %v1308_v63, %v778_v40  ;;  %v7841_v63 = vld [vmem:[#allocation74_spill] sm:$0xff] }
 0x33d   : > { %v6638_v37 = vadd.f32 %v1309_v38, %v779_v20  ;;  %v1430_v60 = vadd.f32 %v1302_v6, %v772_v49  ;;  %v1431_v61 = vadd.f32 %v1303_v15, %v773_v42  ;;  %v2698_v22 = vpop.permute.xlu1 %2697  ;;  %3562 = vmatpush1.bf16.msra.mxu0 %v3561_v36  ;;  %v2364_v9 = vmul.f32 %v5367_v27, %v6584_v34  ;;  %v7842_v49 = vld [vmem:[#allocation180_spill] sm:$0xff]  ;;  %v2858_v6 = vpop.permute.xlu0 %2857 }
 0x33e   : > { %v2365_v45 = vmul.f32 %v5387_v41, %v6584_v34  ;;  %v2940_v53 = vadd.f32 %v2698_v22, %v2428_v52  ;;  %v2941_v62 = vadd.f32 %v2698_v22, %v2429_v13  ;;  %v1832_v3 = vmul.f32 %v7738_v14, %v7837_v26  ;;  %v7845_v13 = vld [vmem:[#allocation157_spill] sm:$0xff] }
 0x33f   : > { %v1833_v40 = vmul.f32 %v7739_v5, %v7837_v26  ;;  %v1962_v20 = vadd.f32 %v1834_v32, %v6586_v18  ;;  %v1963_v46 = vadd.f32 %v1835_v51, %v6588_v2  ;;  %v3066_v59 = vmax.f32 %v2938_v25, 0.0  ;;  %v7844_v25 = vld [vmem:[#allocation96_spill] sm:$0xff] }
 0x340   : > { %v3067_v31 = vmax.f32 %v2939_v23, 0.0  ;;  %v3068_v4 = vmax.f32 %v2940_v53, 0.0  ;;  %v3069_v57 = vmax.f32 %v2941_v62, 0.0  ;;  %v712_v56 = vmul.f32 %v7733_v33, %v7838_v58 }
 0x341   : > { %v713_v34 = vmul.f32 %v4949_v54, %v7838_v58  ;;  %v1960_v28 = vadd.f32 %v1832_v3, %v1430_v60  ;;  %v1961_v12 = vadd.f32 %v1833_v40, %v1431_v61  ;;  %v2492_v11 = vadd.f32 %v2364_v9, %v1962_v20  ;;  %v7846_v9 = vld [vmem:[#allocation52_spill] sm:$0xff]  ;;  %v7847_v3 = vld [vmem:[#allocation42_spill] sm:$0xff]  ;;  %v7848_v20 = vld [vmem:[#allocation43_spill] sm:$0xff] }
 0x342   : > { %v2493_v10 = vadd.f32 %v2365_v45, %v1963_v46  ;;  %v6654_v44 = vpop.permute.xlu1 %2213  ;;  %v3499_v29 = vpack.c.bf16 %v3069_v57, %v3067_v31  ;;  %v3501_v18 = vpack.c.bf16 %v3068_v4, %v3066_v59  ;;  %v6658_v2 = vmul.f32 %v7733_v33, %v7839_v19 }
 0x343   : > { %v6662_v39 = vmul.f32 %v4949_v54, %v7839_v19  ;;  %v1242_v8 = vmul.f32 %v7731_v21, %v7840_v48  ;;  %v1243_v16 = vmul.f32 %v7735_v0, %v7840_v48  ;;  %v6670_v38 = vmul.f32 %v7731_v21, %v7841_v63 }
 0x344   : > { %v6674_v55 = vmul.f32 %v7735_v0, %v7841_v63  ;;  %v2362_v42 = vmul.f32 %v5367_v27, %v7842_v49  ;;  %v2363_v1 = vmul.f32 %v5387_v41, %v7842_v49  ;;  %3500 = vmatprep.subr.bf16.mxu1 %v3499_v29  ;;  %v1774_v24 = vmul.f32 %v7738_v14, %v7843_v47  ;;  %v7851_v63 = vld [vmem:[#allocation126_spill] sm:$0xff] }
 0x345   : > { %v1775_v30 = vmul.f32 %v7739_v5, %v7843_v47  ;;  %v1370_v36 = vadd.f32 %v1242_v8, %v712_v56  ;;  %v1371_v35 = vadd.f32 %v1243_v16, %v713_v34  ;;  %3502 = vmatpush1.bf16.msra.mxu1 %v3501_v18  ;;  %v3004_v15 = vadd.f32 %v2858_v6, %v2492_v11  ;;  %v7849_v34 = vld [vmem:[#allocation75_spill] sm:$0xff] }
 0x346   : > { %v3005_v17 = vadd.f32 %v2858_v6, %v2493_v10  ;;  %v2490_v32 = vadd.f32 %v2362_v42, %v1960_v28  ;;  %v2491_v51 = vadd.f32 %v2363_v1, %v1961_v12  ;;  %v1772_v23 = vmul.f32 %v7738_v14, %v7844_v25  ;;  %v7850_v11 = vld [vmem:[#allocation11_spill] sm:$0xff]  ;;  %v7852_v1 = vld [vmem:[#allocation185_spill] sm:$0xff] }
 0x347   : > { %v1773_v52 = vmul.f32 %v7739_v5, %v7844_v25  ;;  %v2304_v60 = vmul.f32 %v5367_v27, %v7845_v13  ;;  %v2305_v61 = vmul.f32 %v5387_v41, %v7845_v13  ;;  %v2853_v22 = vpop.permute.xlu1 %2852  ;;  %v2302_v45 = vmul.f32 %v5367_v27, %v7846_v9 }
 0x348   : > { %v2303_v53 = vmul.f32 %v5387_v41, %v7846_v9  ;;  %v3002_v62 = vadd.f32 %v2853_v22, %v2490_v32  ;;  %v3003_v26 = vadd.f32 %v2853_v22, %v2491_v51  ;;  %v1902_v40 = vadd.f32 %v1774_v24, %v7847_v3 }
 0x349   : > { %v1903_v46 = vadd.f32 %v1775_v30, %v7848_v20  ;;  %v1900_v59 = vadd.f32 %v1772_v23, %v1370_v36  ;;  %v1901_v31 = vadd.f32 %v1773_v52, %v1371_v35  ;;  %v3133_v58 = vmax.f32 %v3005_v17, 0.0 }
 0x34a   : > { %v3130_v4 = vmax.f32 %v3002_v62, 0.0  ;;  %v3131_v57 = vmax.f32 %v3003_v26, 0.0  ;;  %v3132_v56 = vmax.f32 %v3004_v15, 0.0  ;;  %v786_v28 = vmul.f32 %v7733_v33, %v7849_v34  ;;  %v7853_v15 = vld [vmem:[#allocation76_spill] sm:$0xff] }
 0x34b   : > { %v787_v12 = vmul.f32 %v4949_v54, %v7849_v34  ;;  %v776_v10 = vmul.f32 %v7733_v33, %v7850_v11  ;;  %v777_v29 = vmul.f32 %v4949_v54, %v7850_v11  ;;  %v2703_v18 = vpop.permute.xlu1 %2702  ;;  %v2430_v19 = vadd.f32 %v2302_v45, %v1900_v59 }
 0x34c   : > { %v2431_v48 = vadd.f32 %v2303_v53, %v1901_v31  ;;  %v3563_v8 = vpack.c.bf16 %v3133_v58, %v3131_v57  ;;  %v3565_v16 = vpack.c.bf16 %v3132_v56, %v3130_v4  ;;  %v1306_v49 = vmul.f32 %v7731_v21, %v7851_v63 }
 0x34d   : > { %v1307_v42 = vmul.f32 %v7735_v0, %v7851_v63  ;;  %v1838_v47 = vmul.f32 %v7738_v14, %v7852_v1  ;;  %v1839_v24 = vmul.f32 %v7739_v5, %v7852_v1  ;;  %v2942_v30 = vadd.f32 %v2703_v18, %v2430_v19 }
 0x34e   : > { %v2943_v36 = vadd.f32 %v2703_v18, %v2431_v48  ;;  %3564 = vmatprep.subr.bf16.mxu0 %v3563_v8  ;;  %v2432_v35 = vadd.f32 %v2304_v60, %v1902_v40  ;;  %v2433_v6 = vadd.f32 %v2305_v61, %v1903_v46  ;;  %v1316_v17 = vmul.f32 %v7731_v21, %v7853_v15  ;;  %v7854_v60 = vld [vmem:[#allocation125_spill] sm:$0xff]  ;;  %v7857_v8 = vld [vmem:[#allocation182_spill] sm:$0xff] }
 0x34f   : > { %v1317_v32 = vmul.f32 %v7735_v0, %v7853_v15  ;;  %v1434_v51 = vadd.f32 %v1306_v49, %v776_v10  ;;  %v1435_v25 = vadd.f32 %v1307_v42, %v777_v29  ;;  %v2708_v23 = vpop.permute.xlu1 %2707  ;;  %3566 = vmatpush1.bf16.msra.mxu0 %v3565_v16  ;;  %v2368_v52 = vmul.f32 %v5367_v27, %v6654_v44  ;;  %v7855_v46 = vld [vmem:[#allocation49_spill] sm:$0xff]  ;;  %v7856_v10 = vld [vmem:[#allocation99_spill] sm:$0xff]  ;;  %v2868_v42 = vpop.permute.xlu0 %2867 }
 0x350   : > { %v2369_v13 = vmul.f32 %v5387_v41, %v6654_v44  ;;  %v2944_v22 = vadd.f32 %v2708_v23, %v2432_v35  ;;  %v2945_v9 = vadd.f32 %v2708_v23, %v2433_v6  ;;  %v1836_v61 = vmul.f32 %v7738_v14, %v7854_v60  ;;  %v7860_v35 = vld [vmem:[#allocation158_spill] sm:$0xff] }
 0x351   : > { %v1837_v45 = vmul.f32 %v7739_v5, %v7854_v60  ;;  %v1966_v53 = vadd.f32 %v1838_v47, %v6636_v43  ;;  %v1967_v62 = vadd.f32 %v1839_v24, %v6638_v37  ;;  %v3070_v26 = vmax.f32 %v2942_v30, 0.0  ;;  %v7859_v24 = vld [vmem:[#allocation98_spill] sm:$0xff] }
 0x352   : > { %v3071_v3 = vmax.f32 %v2943_v36, 0.0  ;;  %v3072_v40 = vmax.f32 %v2944_v22, 0.0  ;;  %v3073_v20 = vmax.f32 %v2945_v9, 0.0  ;;  %v716_v59 = vmul.f32 %v7733_v33, %v7855_v46  ;;  %v7863_v9 = vld [vmem:[#allocation46_spill] sm:$0xff] }
 0x353   : > { %v717_v44 = vmul.f32 %v4949_v54, %v7855_v46  ;;  %v1964_v31 = vadd.f32 %v1836_v61, %v1434_v51  ;;  %v1965_v4 = vadd.f32 %v1837_v45, %v1435_v25  ;;  %v2496_v57 = vadd.f32 %v2368_v52, %v1966_v53 }
 0x354   : > { %v2497_v58 = vadd.f32 %v2369_v13, %v1967_v62  ;;  %v6732_v56 = vpop.permute.xlu1 %2221  ;;  %v3503_v34 = vpack.c.bf16 %v3073_v20, %v3071_v3  ;;  %v3505_v43 = vpack.c.bf16 %v3072_v40, %v3070_v26  ;;  %v6736_v37 = vadd.f32 %v6670_v38, %v6658_v2  ;;  %v7858_v38 = vld [vmem:[#allocation38_spill] sm:$0xff]  ;;  %v7862_v13 = vld [vmem:[#allocation45_spill] sm:$0xff]  ;;  %v7864_v40 = vld [vmem:[#allocation100_spill] sm:$0xff] }
 0x355   : > { %v6740_v11 = vadd.f32 %v6674_v55, %v6662_v39  ;;  %v1246_v29 = vmul.f32 %v7731_v21, %v7856_v10  ;;  %v1247_v18 = vmul.f32 %v7735_v0, %v7856_v10  ;;  %v6746_v19 = vadd.f32 %v1316_v17, %v786_v28  ;;  %v7866_v10 = vld [vmem:[#allocation128_spill] sm:$0xff] }
 0x356   : > { %v6748_v48 = vadd.f32 %v1317_v32, %v787_v12  ;;  %v2366_v16 = vmul.f32 %v5367_v27, %v7857_v8  ;;  %v2367_v2 = vmul.f32 %v5387_v41, %v7857_v8  ;;  %3504 = vmatprep.subr.bf16.mxu1 %v3503_v34  ;;  %v1778_v39 = vmul.f32 %v7738_v14, %v7858_v38  ;;  %v7861_v32 = vld [vmem:[#allocation54_spill] sm:$0xff]  ;;  %v7867_v8 = vld [vmem:[#allocation187_spill] sm:$0xff] }
 0x357   : > { %v1779_v55 = vmul.f32 %v7739_v5, %v7858_v38  ;;  %v1374_v63 = vadd.f32 %v1246_v29, %v716_v59  ;;  %v1375_v49 = vadd.f32 %v1247_v18, %v717_v44  ;;  %3506 = vmatpush1.bf16.msra.mxu1 %v3505_v43  ;;  %v3008_v28 = vadd.f32 %v2868_v42, %v2496_v57  ;;  %v7865_v59 = vld [vmem:[#allocation6_spill] sm:$0xff] }
 0x358   : > { %v3009_v12 = vadd.f32 %v2868_v42, %v2497_v58  ;;  %v2494_v1 = vadd.f32 %v2366_v16, %v1964_v31  ;;  %v2495_v47 = vadd.f32 %v2367_v2, %v1965_v4  ;;  %v1776_v30 = vmul.f32 %v7738_v14, %v7859_v24 }
 0x359   : > { %v1777_v36 = vmul.f32 %v7739_v5, %v7859_v24  ;;  %v2308_v6 = vmul.f32 %v5367_v27, %v7860_v35  ;;  %v2309_v15 = vmul.f32 %v5387_v41, %v7860_v35  ;;  %v2863_v17 = vpop.permute.xlu1 %2862  ;;  %v2306_v51 = vmul.f32 %v5367_v27, %v7861_v32 }
 0x35a   : > { %v2307_v25 = vmul.f32 %v5387_v41, %v7861_v32  ;;  %v3006_v23 = vadd.f32 %v2863_v17, %v2494_v1  ;;  %v3007_v52 = vadd.f32 %v2863_v17, %v2495_v47  ;;  %v1906_v22 = vadd.f32 %v1778_v39, %v7862_v13 }
 0x35b   : > { %v1907_v60 = vadd.f32 %v1779_v55, %v7863_v9  ;;  %v1904_v61 = vadd.f32 %v1776_v30, %v1374_v63  ;;  %v1905_v45 = vadd.f32 %v1777_v36, %v1375_v49  ;;  %v3137_v26 = vmax.f32 %v3009_v12, 0.0  ;;  %v7868_v49 = vld [vmem:[#allocation101_spill] sm:$0xff] }
 0x35c   : > { %v3134_v53 = vmax.f32 %v3006_v23, 0.0  ;;  %v3135_v62 = vmax.f32 %v3007_v52, 0.0  ;;  %v3136_v3 = vmax.f32 %v3008_v28, 0.0  ;;  %v6774_v20 = vmul.f32 %v7738_v14, %v7864_v40 }
 0x35d   : > { %v6778_v46 = vmul.f32 %v7739_v5, %v7864_v40  ;;  %v780_v44 = vmul.f32 %v7733_v33, %v7865_v59  ;;  %v781_v31 = vmul.f32 %v4949_v54, %v7865_v59  ;;  %v2713_v4 = vpop.permute.xlu1 %2712  ;;  %v2434_v57 = vadd.f32 %v2306_v51, %v1904_v61  ;;  %v7872_v59 = vld [vmem:[#allocation198_spill] sm:$0xff] }
 0x35e   : > { %v2435_v58 = vadd.f32 %v2307_v25, %v1905_v45  ;;  %v3567_v34 = vpack.c.bf16 %v3137_v26, %v3135_v62  ;;  %v3569_v43 = vpack.c.bf16 %v3136_v3, %v3134_v53  ;;  %v1310_v29 = vmul.f32 %v7731_v21, %v7866_v10 }
 0x35f   : > { %v1311_v18 = vmul.f32 %v7735_v0, %v7866_v10  ;;  %v1842_v16 = vmul.f32 %v7738_v14, %v7867_v8  ;;  %v1843_v2 = vmul.f32 %v7739_v5, %v7867_v8  ;;  %v2946_v38 = vadd.f32 %v2713_v4, %v2434_v57 }
 0x360   : > { %v2947_v39 = vadd.f32 %v2713_v4, %v2435_v58  ;;  %3568 = vmatprep.subr.bf16.mxu0 %v3567_v34  ;;  %v2436_v55 = vadd.f32 %v2308_v6, %v1906_v22  ;;  %v2437_v63 = vadd.f32 %v2309_v15, %v1907_v60  ;;  %v1250_v42 = vmul.f32 %v7731_v21, %v7868_v49  ;;  %v7869_v6 = vld [vmem:[#allocation127_spill] sm:$0xff]  ;;  %v7870_v22 = vld [vmem:[#allocation53_spill] sm:$0xff]  ;;  %v7873_v4 = vld [vmem:[#allocation130_spill] sm:$0xff] }
 0x361   : > { %v1251_v28 = vmul.f32 %v7735_v0, %v7868_v49  ;;  %v1438_v12 = vadd.f32 %v1310_v29, %v780_v44  ;;  %v1439_v1 = vadd.f32 %v1311_v18, %v781_v31  ;;  %v2718_v47 = vpop.permute.xlu1 %2717  ;;  %3570 = vmatpush1.bf16.msra.mxu0 %v3569_v43  ;;  %v2372_v24 = vmul.f32 %v5367_v27, %v6732_v56  ;;  %v7874_v34 = vld [vmem:[#allocation184_spill] sm:$0xff]  ;;  %v7875_v29 = vld [vmem:[#allocation41_spill] sm:$0xff] }
 0x362   : > { %v2373_v30 = vmul.f32 %v5387_v41, %v6732_v56  ;;  %v2948_v36 = vadd.f32 %v2718_v47, %v2436_v55  ;;  %v2949_v35 = vadd.f32 %v2718_v47, %v2437_v63  ;;  %v1840_v15 = vmul.f32 %v7738_v14, %v7869_v6  ;;  %v7877_v47 = vld [vmem:[#allocation215_spill] sm:$0xff] }
 0x363   : > { %v1841_v17 = vmul.f32 %v7739_v5, %v7869_v6  ;;  %v1970_v32 = vadd.f32 %v1842_v16, %v6736_v37  ;;  %v1971_v51 = vadd.f32 %v1843_v2, %v6740_v11  ;;  %v3074_v25 = vmax.f32 %v2946_v38, 0.0  ;;  %v7871_v37 = vld [vmem:[#allocation129_spill] sm:$0xff]  ;;  %v2878_v16 = vpop.permute.xlu0 %2877 }
 0x364   : > { %v3075_v23 = vmax.f32 %v2947_v39, 0.0  ;;  %v3076_v52 = vmax.f32 %v2948_v36, 0.0  ;;  %v3077_v13 = vmax.f32 %v2949_v35, 0.0  ;;  %v720_v9 = vmul.f32 %v7733_v33, %v7870_v22  ;;  %v7876_v39 = vld [vmem:[#allocation159_spill] sm:$0xff] }
 0x365   : > { %v721_v56 = vmul.f32 %v4949_v54, %v7870_v22  ;;  %v1968_v60 = vadd.f32 %v1840_v15, %v1438_v12  ;;  %v1969_v61 = vadd.f32 %v1841_v17, %v1439_v1  ;;  %v2500_v45 = vadd.f32 %v2372_v24, %v1970_v32 }
 0x366   : > { %v2501_v53 = vadd.f32 %v2373_v30, %v1971_v51  ;;  %v2230_v62 = vpop.permute.xlu1 %2229  ;;  %v3507_v26 = vpack.c.bf16 %v3077_v13, %v3075_v23  ;;  %v3509_v3 = vpack.c.bf16 %v3076_v52, %v3074_v25  ;;  %v1844_v11 = vmul.f32 %v7738_v14, %v7871_v37  ;;  %v7878_v23 = vld [vmem:[#allocation189_spill] sm:$0xff] }
 0x367   : > { %v1845_v40 = vmul.f32 %v7739_v5, %v7871_v37  ;;  %v784_v44 = vmul.f32 %v7733_v33, %v7872_v59  ;;  %v785_v31 = vmul.f32 %v4949_v54, %v7872_v59  ;;  %v1314_v57 = vmul.f32 %v7731_v21, %v7873_v4 }
 0x368   : > { %v1315_v58 = vmul.f32 %v7735_v0, %v7873_v4  ;;  %v2370_v43 = vmul.f32 %v5367_v27, %v7874_v34  ;;  %v2371_v10 = vmul.f32 %v5387_v41, %v7874_v34  ;;  %3508 = vmatprep.subr.bf16.mxu1 %v3507_v26  ;;  %v1782_v18 = vmul.f32 %v7738_v14, %v7875_v29  ;;  %v2883_v26 = vpop.permute.xlu0 %2882 }
 0x369   : > { %v1783_v33 = vmul.f32 %v7739_v5, %v7875_v29  ;;  %v1378_v54 = vadd.f32 %v1250_v42, %v720_v9  ;;  %v1379_v8 = vadd.f32 %v1251_v28, %v721_v56  ;;  %3510 = vmatpush1.bf16.msra.mxu1 %v3509_v3  ;;  %v3012_v21 = vadd.f32 %v2878_v16, %v2500_v45 }
 0x36a   : > { %v3013_v2 = vadd.f32 %v2878_v16, %v2501_v53  ;;  %v2498_v0 = vadd.f32 %v2370_v43, %v1968_v60  ;;  %v2499_v38 = vadd.f32 %v2371_v10, %v1969_v61  ;;  %v2312_v55 = vmul.f32 %v5367_v27, %v7876_v39 }
 0x36b   : > { %v2313_v63 = vmul.f32 %v5387_v41, %v7876_v39  ;;  %v1442_v49 = vadd.f32 %v1314_v57, %v784_v44  ;;  %v1443_v12 = vadd.f32 %v1315_v58, %v785_v31  ;;  %v2873_v1 = vpop.permute.xlu1 %2872  ;;  %v2310_v24 = vmul.f32 %v5367_v27, %v7877_v47  ;;  %v7880_v39 = vld [vmem:[#allocation199_spill] sm:$0xff] }
 0x36c   : > { %v2311_v42 = vmul.f32 %v5387_v41, %v7877_v47  ;;  %v3010_v28 = vadd.f32 %v2873_v1, %v2498_v0  ;;  %v3011_v30 = vadd.f32 %v2873_v1, %v2499_v38  ;;  %v1910_v36 = vadd.f32 %v1782_v18, %v6520_v7  ;;  %v3151_v47 = vpop.permute.xlu0 %3150 }
 0x36d   : > { %v1911_v35 = vadd.f32 %v1783_v33, %v6524_v50  ;;  %v1908_v6 = vadd.f32 %v6774_v20, %v1378_v54  ;;  %v1909_v15 = vadd.f32 %v6778_v46, %v1379_v8  ;;  %v3141_v51 = vmax.f32 %v3013_v2, 0.0  ;;  %v7879_v20 = vld [vmem:[#allocation186_spill] sm:$0xff] }
 0x36e   : > { %v3138_v17 = vmax.f32 %v3010_v28, 0.0  ;;  %v3139_v32 = vmax.f32 %v3011_v30, 0.0  ;;  %v3140_v25 = vmax.f32 %v3012_v21, 0.0  ;;  %v1846_v52 = vmul.f32 %v7738_v14, %v7878_v23 }
 0x36f   : > { %v1847_v13 = vmul.f32 %v7739_v5, %v7878_v23  ;;  %v1972_v22 = vadd.f32 %v1844_v11, %v1442_v49  ;;  %v1973_v9 = vadd.f32 %v1845_v40, %v1443_v12  ;;  %v2723_v56 = vpop.permute.xlu1 %2722  ;;  %v2438_v7 = vadd.f32 %v2310_v24, %v1908_v6  ;;  %v7881_v12 = vld [vmem:[#allocation205_spill] sm:$0xff]  ;;  %v7882_v23 = vld [vmem:[#allocation195_spill] sm:$0xff] }
 0x370   : > { %v2439_v60 = vadd.f32 %v2311_v42, %v1909_v15  ;;  %v3571_v50 = vpack.c.bf16 %v3141_v51, %v3139_v32  ;;  %v3573_v61 = vpack.c.bf16 %v3140_v25, %v3138_v17  ;;  %v2374_v46 = vmul.f32 %v5367_v27, %v7879_v20 }
 0x371   : > { %v2375_v45 = vmul.f32 %v5387_v41, %v7879_v20  ;;  %v2376_v53 = vmul.f32 %v5367_v27, %v2230_v62  ;;  %v2377_v14 = vmul.f32 %v5387_v41, %v2230_v62  ;;  %v2950_v3 = vadd.f32 %v2723_v56, %v2438_v7 }
 0x372   : > { %v2951_v5 = vadd.f32 %v2723_v56, %v2439_v60  ;;  %3572 = vmatprep.subr.bf16.mxu0 %v3571_v50  ;;  %v2440_v37 = vadd.f32 %v2312_v55, %v1910_v36  ;;  %v2441_v11 = vadd.f32 %v2313_v63, %v1911_v35  ;;  %v2502_v40 = vadd.f32 %v2374_v46, %v1972_v22 }
 0x373   : > { %v2503_v59 = vadd.f32 %v2375_v45, %v1973_v9  ;;  %v2728_v44 = vpop.permute.xlu1 %2727  ;;  %3574 = vmatpush1.bf16.msra.mxu0 %v3573_v61  ;;  %v1974_v31 = vadd.f32 %v1846_v52, %v6746_v19  ;;  %v1975_v4 = vadd.f32 %v1847_v13, %v6748_v48  ;;  %v3078_v62 = vmax.f32 %v2950_v3, 0.0  ;;  %v3686_v48 = vld [vmem:[%s6917_s3] sm:$0xf] }
 0x374   : > { %v2952_v57 = vadd.f32 %v2728_v44, %v2440_v37  ;;  %v2953_v58 = vadd.f32 %v2728_v44, %v2441_v11  ;;  %v3014_v34 = vadd.f32 %v2883_v26, %v2502_v40  ;;  %v3079_v10 = vmax.f32 %v2951_v5, 0.0 }
 0x375   : > { %v3015_v27 = vadd.f32 %v2883_v26, %v2503_v59  ;;  %v2504_v43 = vadd.f32 %v2376_v53, %v1974_v31  ;;  %v2505_v41 = vadd.f32 %v2377_v14, %v1975_v4  ;;  %v3161_v55 = vrot.slane %v3686_v48, %v7880_v39 }
 0x376   : > { %v3080_v29 = vmax.f32 %v2952_v57, 0.0  ;;  %v3081_v18 = vmax.f32 %v2953_v58, 0.0  ;;  %v3142_v2 = vmax.f32 %v3014_v34, 0.0  ;;  %v3169_v1 = vrot.slane %v3686_v48, %v7881_v12 }
 0x377   : > { %v2888_v33 = vpop.permute.xlu1 %2887  ;;  %v3143_v0 = vmax.f32 %v3015_v27, 0.0  ;;  %v3771_v24 = vmov 1966171168   ;;  %v3156_v30 = vrot.slane %v3151_v47, %v7880_v39  ;;  %v7883_v9 = vlaneseq }
 0x378   : > { %v3016_v54 = vadd.f32 %v2888_v33, %v2504_v43  ;;  %v3017_v8 = vadd.f32 %v2888_v33, %v2505_v41  ;;  %v3511_v16 = vpack.c.bf16 %v3081_v18, %v3079_v10  ;;  %v3513_v21 = vpack.c.bf16 %v3080_v29, %v3078_v62 }
 0x379   : > { %v3324_v42 = vunpack.c.l.s4 %v3771_v24  ;;  %vm3340_vm0 = vcmp.lt.s32.totalorder %v7883_v9, 256 }
 0x37a   : > { %v3144_v19 = vmax.f32 %v3016_v54, 0.0  ;;  %v3145_v38 = vmax.f32 %v3017_v8, 0.0  ;;  %3512 = vmatprep.subr.bf16.mxu1 %v3511_v16 }
 0x37b   : > { %3514 = vmatpush1.bf16.msra.mxu1 %v3513_v21  ;;  %v3325_v35 = vunpack.c.0.s8 %v3324_v42 }
 0x37c   : > { %v3575_v63 = vpack.c.bf16 %v3145_v38, %v3143_v0  ;;  %v3577_v49 = vpack.c.bf16 %v3144_v19, %v3142_v2 }
 0x37d   : > { %v3328_v52 = vsub.s32 %v3325_v35, %v7882_v23 }
 0x37e   : > { %3243 = vmatmul.mubr.f32.vlgmr.msra.gmra.mrb[0].mxu1 %v3161_v55  ;;  %3576 = vmatprep.subr.bf16.mxu0 %v3575_v63 }
 0x37f   : > { %3578 = vmatpush1.bf16.msra.mxu0 %v3577_v49 }
 0x382   : > { %3314 = vmatmul.mubr.f32.vlgmr.msra.gmra.mrb[0].mxu0 %v3169_v1 }
 0x451   : > { %v3244_v28 = vpop.f32.mrb[0].mxu1 }
 0x452   : > { %v3246_v36 = vpop.f32.mrb[1].mxu1  ;;  %v3245_v6 = vadd.f32 %v3244_v28, %v3156_v30 }
 0x453   : > { %v3247_v15 = vadd.f32 %v3246_v36, %v3156_v30 }
 0x455   : > { %v3315_v17 = vpop.f32.mrb[0].mxu0 }
 0x456   : > { %v3316_v32 = vadd.f32 %v3315_v17, %v3245_v6  ;;  %v3317_v51 = vpop.f32.mrb[1].mxu0 }
 0x457   : > { %v3318_v25 = vadd.f32 %v3317_v51, %v3247_v15 }
 0x459   : > { %v3322_v13 = vcombine.low %v3316_v32, %v3318_v25 }
 0x45b   : > { %v3329_v22 = vrot.slane %v3322_v13, %v3328_v52 }
 0x45d   : > { %v3336_v56 = vrot.slane %v3329_v22, %v3328_v52 }
 0x45f   : > { %3342 = vst.msk [vmem:[%s244_s8] sm:$0x3] %vm3340_vm0, %v3336_v56 }
 0x460   : > { %3700 = shalt.err (!%p3697_p5)
}
 0x461   : > { %s3701_s17 = scalar_lea.hbm %s6867_s12, 32  ;;  %s3705_s4 = scalar_lea.hbm %s6919_s5, 64 }
 0x462   : > { %p3702_p6 = scmp.ne.s32.totalorder %s6867_s12, %s3701_s17  ;;  %p3706_p10 = scmp.lt.u32.totalorder %s6867_s12, %s6919_s5 }
 0x463   : > { %p3707_p11 = scmp.lt.u32.totalorder %s3705_s4, %s3701_s17  ;;  %p3709_p13 = scmp.lt.u32.totalorder %s3701_s17, %s6867_s12 }
 0x464   : > { %p3703_p7 = pnand %p3702_p6, %p3846_p4 }
 0x465   : > { %p3708_p12 = por %p3707_p11, %p3706_p10 }
 0x466   : > { %p3704_p9 = pneg %p3703_p7 }
 0x467   : > { %p3710_p0 = por %p3709_p13, %p3708_p12 }
 0x469   : > { %p3711_p1 = pnand %p3710_p0, %p3704_p9 }
 0x46b   : > { %3714 = shalt.err (!%p3711_p1)
}
 0x46c   : > { %3583 = dma.vmem_to_hbm [thread:$0]  (%p3846_p4), %s6869_s9, 32, %s6867_s12, %s3344_s13  }
 0x46d PF: > { %p3589_p2 = scmp.ge.s32.totalorder %s3765_s25, 2  ;;  %s3372_s30 = sand.u32 1, %s3745_s20  }
 0x46e   : > { %s3373_s8 = scalar_lea.sflag [#allocation4], %s3372_s30 }
 0x46f   : > { %p3586_p3 = pnand %p3589_p2, %p3853_p8 }
 0x471   : > { %3740 = dma.done.wait (!%p3586_p3), %s3373_s8, 32  }
 0x472   : > { %3742 = vsyncadd (!%p3586_p3), %s3373_s8, 4294967264  ;;  %s20_s25 = sadd.s32 1, %s3765_s25   ;;  %s7884_s20 = smov %s3749_s21 }
 0x473   : > { %p17_p5 = scmp.ge.s32.totalorder %s20_s25, 4   ;;  %s7885_s21 = smov %s3753_s22 }
 0x474   : > { %s7886_s22 = smov %s3859_s7  ;;  %s7887_s23 = smov %s3761_s24 }
 0x475   : > { %s7888_s24 = smov %s7890_s27  ;;  %19 = sbr.rel (!%p17_p5) target bundleno = 7 (0x7), region = 75 }
 0x47c   :  { %3378 = vsyncpa [#allocation4], 1 }
 0x47d   :  { %3380 = vsyncpa [#allocation4 + $0x1], 1 }

</bundles_post_ra>
